<compile_context>
chip_gen: v7x
topology: tpu7x:2x2x1
jax: 0.10.0
libtpu: 0.0.40
codegen_flags: <defaults>
</compile_context>

<pallas_src>
import functools

import jax
import jax.numpy as jnp
from jax.experimental import pallas as pl
from jax.experimental.pallas import tpu as pltpu


# ---------------------------------------------------------------------------
# Fused forward kernel
# ---------------------------------------------------------------------------
def _mpnn_fused_kernel(nf_ref, ef_ref, src_ref, tgt_ref, bat_ref,
                       w_in_ref, b_in_ref,
                       we1_ref, be1_ref, we2_ref, be2_ref,
                       w_ih_ref, w_hh_ref, b_rz_ref, b_ni_ref, b_nh_ref,
                       w_out_ref, b_out_ref,
                       out_ref,
                       *, n_nodes, n_edges, n_graphs, hidden, mp_steps):
    f32 = jnp.float32
    cd = jnp.bfloat16        # compute dtype for MXU operands (f32 accumulate)
    H = hidden

    # ---- one-hot gather / scatter / readout matrices, built once in VMEM ----
    # esrc[e, n] = 1 iff src[e] == n   (E, N)  -> gathers source rows
    # etgt[v, e] = 1 iff tgt[e] == v   (N, E)  -> scatter-add to target nodes
    # gmat[b, n] = 1 iff batch[n] == b (B, N)  -> per-graph sum readout
    # 0/1 values are exact in bf16 -> build them directly in the MXU dtype.
    col_n = jax.lax.broadcasted_iota(jnp.int32, (n_edges, n_nodes), 1)
    esrc = (col_n == src_ref[...]).astype(cd)                        # (E, N)
    row_n = jax.lax.broadcasted_iota(jnp.int32, (n_nodes, n_edges), 0)
    etgt = (row_n == tgt_ref[...]).astype(cd)                        # (N, E)
    row_b = jax.lax.broadcasted_iota(jnp.int32, (n_graphs, n_nodes), 0)
    gsel = (row_b == bat_ref[...])                                   # (B, N) bool
    gmat = gsel.astype(cd)                                           # exact 0/1
    counts = jnp.sum(gsel.astype(f32), axis=1, keepdims=True)        # (B, 1)

    # ---- EdgeEncoderMLP: relu(ef @ W1 + b1) @ W2 + b2 ----
    eh = jnp.dot(ef_ref[...].astype(cd), we1_ref[...],
                 preferred_element_type=f32) + be1_ref[...]
    eh = jnp.maximum(eh, 0.0)
    ed = jnp.dot(eh.astype(cd), we2_ref[...],
                 preferred_element_type=f32) + be2_ref[...]          # (E, H)

    # ---- input linear ----
    x = jnp.dot(nf_ref[...].astype(cd), w_in_ref[...],
                preferred_element_type=f32) + b_in_ref[...]          # (N, H)

    # ---- GRU weights / biases (broadcasts hoisted out of the serial loop) ----
    w_ih = w_ih_ref[...]                                             # (H, 3H) bf16
    w_hh = w_hh_ref[...]                                             # (H, 3H) bf16
    b_rz = jnp.broadcast_to(b_rz_ref[...], (n_nodes, 2 * H))         # (N, 2H) f32
    b_ni = jnp.broadcast_to(b_ni_ref[...], (n_nodes, H))             # (N, H)  f32
    b_nh = jnp.broadcast_to(b_nh_ref[...], (n_nodes, H))             # (N, H)  f32

    # ---- T message-passing steps with GRU node update ----
    def mp_step(_, h):
        xs = jnp.dot(esrc, h.astype(cd), preferred_element_type=f32)  # (E, H)
        msg = ed * xs                                                  # edge gate
        m = jnp.dot(etgt, msg.astype(cd), preferred_element_type=f32)  # (N, H)

        gi = jnp.dot(m.astype(cd), w_ih, preferred_element_type=f32)   # (N, 3H)
        gh = jnp.dot(h.astype(cd), w_hh, preferred_element_type=f32)   # (N, 3H)
        rz = jax.nn.sigmoid(gi[:, : 2 * H] + gh[:, : 2 * H] + b_rz)
        r = rz[:, :H]
        z = rz[:, H:]
        n = jnp.tanh(gi[:, 2 * H:] + b_ni + r * (gh[:, 2 * H:] + b_nh))
        return (1.0 - z) * n + z * h

    x = jax.lax.fori_loop(0, mp_steps, mp_step, x, unroll=True)

    # ---- per-graph sum readout, THEN output linear (algebraically identical
    #      to Linear_out followed by scatter_add; counts carries the bias sum) --
    xg = jnp.dot(gmat, x.astype(cd), preferred_element_type=f32)      # (B, H)
    out_ref[...] = (jnp.dot(xg.astype(cd), w_out_ref[...],
                            preferred_element_type=f32)
                    + counts * b_out_ref[...])                        # (B, Fo)


# ---------------------------------------------------------------------------
# Wrapper: parameter plumbing + single pallas_call
# ---------------------------------------------------------------------------
def mpnn_enn_sum_forward(params, node_features, edge_features, src, tgt, batch,
                         *, num_graphs, mp_steps=3):
    # num_graphs must be static (PyTorch uses batch.max().item() + 1 at runtime).
    p = params
    cd = jnp.bfloat16
    N = node_features.shape[0]
    E = edge_features.shape[0]
    H = p["w_in"].shape[1]
    Fo = p["w_out"].shape[1]

    src2 = src.astype(jnp.int32).reshape(E, 1)     # broadcast along lanes
    tgt2 = tgt.astype(jnp.int32).reshape(1, E)     # broadcast along sublanes
    bat2 = batch.astype(jnp.int32).reshape(1, N)   # broadcast along sublanes

    # GRUCell params (PyTorch layout: weight_* (3H, in), bias_* (3H,), order r,z,n)
    w_ih_t = p["gru_w_ih"].T.astype(cd)                                  # (H, 3H)
    w_hh_t = p["gru_w_hh"].T.astype(cd)                                  # (H, 3H)
    b_rz = (p["gru_b_ih"] + p["gru_b_hh"])[: 2 * H].reshape(1, 2 * H)
    b_ni = p["gru_b_ih"][2 * H:].reshape(1, H)
    b_nh = p["gru_b_hh"][2 * H:].reshape(1, H)

    args = (node_features, edge_features, src2, tgt2, bat2,
            p["w_in"].astype(cd), p["b_in"],
            p["we1"].astype(cd), p["be1"], p["we2"].astype(cd), p["be2"],
            w_ih_t, w_hh_t, b_rz, b_ni, b_nh,
            p["w_out"].astype(cd), p["b_out"])

    vmem = pl.BlockSpec(memory_space=pltpu.MemorySpace.VMEM)
    kernel = functools.partial(_mpnn_fused_kernel, n_nodes=N, n_edges=E,
                               n_graphs=num_graphs, hidden=H, mp_steps=mp_steps)
    return pl.pallas_call(
        kernel,
        out_shape=jax.ShapeDtypeStruct((num_graphs, Fo), jnp.float32),
        in_specs=[vmem] * len(args),
        out_specs=vmem,
        compiler_params=pltpu.CompilerParams(vmem_limit_bytes=48 * 1024 * 1024),
    )(*args)


# ---------------------------------------------------------------------------
# Deterministic parameter construction (PyTorch-style uniform init)
# ---------------------------------------------------------------------------
def init_params(key, node_f, edge_f, hidden_f, out_f):
    ks = iter(jax.random.split(key, 16))

    def linear(fi, fo):
        s = 1.0 / jnp.sqrt(fi)
        w = jax.random.uniform(next(ks), (fi, fo), jnp.float32, -s, s)
        b = jax.random.uniform(next(ks), (1, fo), jnp.float32, -s, s)
        return w, b

    w_in, b_in = linear(node_f, hidden_f)
    we1, be1 = linear(edge_f, hidden_f)
    we2, be2 = linear(hidden_f, hidden_f)
    w_out, b_out = linear(hidden_f, out_f)

    s = 1.0 / jnp.sqrt(hidden_f)
    gru_w_ih = jax.random.uniform(next(ks), (3 * hidden_f, hidden_f), jnp.float32, -s, s)
    gru_w_hh = jax.random.uniform(next(ks), (3 * hidden_f, hidden_f), jnp.float32, -s, s)
    gru_b_ih = jax.random.uniform(next(ks), (3 * hidden_f,), jnp.float32, -s, s)
    gru_b_hh = jax.random.uniform(next(ks), (3 * hidden_f,), jnp.float32, -s, s)

    return dict(w_in=w_in, b_in=b_in,
                we1=we1, be1=be1, we2=we2, be2=be2,
                gru_w_ih=gru_w_ih, gru_w_hh=gru_w_hh,
                gru_b_ih=gru_b_ih, gru_b_hh=gru_b_hh,
                w_out=w_out, b_out=b_out)


if __name__ == "__main__":
    # small, tile/lane-friendly synthetic problem (hidden = 128 -> lane-dense)
    N, E, B = 64, 128, 4                    # nodes, edges, graphs
    NODE_F, EDGE_F, HID_F, OUT_F = 16, 16, 128, 32
    MP_STEPS = 3

    key = jax.random.PRNGKey(0)
    k_nf, k_ef, k_src, k_tgt, k_par = jax.random.split(key, 5)

    node_features = jax.random.normal(k_nf, (N, NODE_F), jnp.float32)
    edge_features = jax.random.normal(k_ef, (E, EDGE_F), jnp.float32)
    src = jax.random.randint(k_src, (E,), 0, N, dtype=jnp.int32)   # source node of edge
    tgt = jax.random.randint(k_tgt, (E,), 0, N, dtype=jnp.int32)   # target node of edge
    batch = ((jnp.arange(N) * B) // N).astype(jnp.int32)           # sorted graph ids

    params = init_params(k_par, NODE_F, EDGE_F, HID_F, OUT_F)

    fwd = jax.jit(functools.partial(mpnn_enn_sum_forward,
                                    num_graphs=B, mp_steps=MP_STEPS))
    out = fwd(params, node_features, edge_features, src, tgt, batch)
    out = jax.block_until_ready(out)

    assert out.shape == (B, OUT_F), out.shape
    assert bool(jnp.all(jnp.isfinite(out)))
    print("KERNEL_OK")
</pallas_src>

<mosaic_0001>
module attributes {stable_mosaic.version = 11 : i64} {
  func.func @_mpnn_fused_kernel(%arg0: memref<64x16xf32, #tpu.memory_space<vmem>>, %arg1: memref<128x16xf32, #tpu.memory_space<vmem>>, %arg2: memref<128x1xi32, #tpu.memory_space<vmem>>, %arg3: memref<1x128xi32, #tpu.memory_space<vmem>>, %arg4: memref<1x64xi32, #tpu.memory_space<vmem>>, %arg5: memref<16x128xbf16, #tpu.memory_space<vmem>>, %arg6: memref<1x128xf32, #tpu.memory_space<vmem>>, %arg7: memref<16x128xbf16, #tpu.memory_space<vmem>>, %arg8: memref<1x128xf32, #tpu.memory_space<vmem>>, %arg9: memref<128x128xbf16, #tpu.memory_space<vmem>>, %arg10: memref<1x128xf32, #tpu.memory_space<vmem>>, %arg11: memref<128x384xbf16, #tpu.memory_space<vmem>>, %arg12: memref<128x384xbf16, #tpu.memory_space<vmem>>, %arg13: memref<1x256xf32, #tpu.memory_space<vmem>>, %arg14: memref<1x128xf32, #tpu.memory_space<vmem>>, %arg15: memref<1x128xf32, #tpu.memory_space<vmem>>, %arg16: memref<128x32xbf16, #tpu.memory_space<vmem>>, %arg17: memref<1x32xf32, #tpu.memory_space<vmem>>, %arg18: memref<4x32xf32, #tpu.memory_space<vmem>>) attributes {dimension_semantics = [], scalar_prefetch = 0 : i64, scratch_operands = 0 : i64, tpu.core_type = #tpu.core_type<tc>} {
    %0 = tpu.iota {dimensions = array<i32: 1>} : vector<128x64xi32>
    %c0 = arith.constant 0 : index
    %c0_0 = arith.constant 0 : index
    %1 = vector.load %arg2[%c0, %c0_0] : memref<128x1xi32, #tpu.memory_space<vmem>>, vector<128x1xi32>
    %2 = vector.broadcast %1 : vector<128x1xi32> to vector<128x64xi32>
    %3 = arith.cmpi eq, %0, %2 : vector<128x64xi32>
    %4 = arith.extui %3 : vector<128x64xi1> to vector<128x64xi32>
    %5 = arith.sitofp %4 : vector<128x64xi32> to vector<128x64xf32>
    %6 = arith.truncf %5 : vector<128x64xf32> to vector<128x64xbf16>
    %7 = tpu.iota {dimensions = array<i32: 0>} : vector<64x128xi32>
    %c0_1 = arith.constant 0 : index
    %c0_2 = arith.constant 0 : index
    %8 = vector.load %arg3[%c0_1, %c0_2] : memref<1x128xi32, #tpu.memory_space<vmem>>, vector<1x128xi32>
    %9 = vector.broadcast %8 : vector<1x128xi32> to vector<64x128xi32>
    %10 = arith.cmpi eq, %7, %9 : vector<64x128xi32>
    %11 = arith.extui %10 : vector<64x128xi1> to vector<64x128xi32>
    %12 = arith.sitofp %11 : vector<64x128xi32> to vector<64x128xf32>
    %13 = arith.truncf %12 : vector<64x128xf32> to vector<64x128xbf16>
    %14 = tpu.iota {dimensions = array<i32: 0>} : vector<4x64xi32>
    %c0_3 = arith.constant 0 : index
    %c0_4 = arith.constant 0 : index
    %15 = vector.load %arg4[%c0_3, %c0_4] : memref<1x64xi32, #tpu.memory_space<vmem>>, vector<1x64xi32>
    %16 = vector.broadcast %15 : vector<1x64xi32> to vector<4x64xi32>
    %17 = arith.cmpi eq, %14, %16 : vector<4x64xi32>
    %18 = arith.extui %17 : vector<4x64xi1> to vector<4x64xi32>
    %19 = arith.sitofp %18 : vector<4x64xi32> to vector<4x64xf32>
    %20 = arith.truncf %19 : vector<4x64xf32> to vector<4x64xbf16>
    %21 = arith.extui %17 : vector<4x64xi1> to vector<4x64xi32>
    %22 = arith.sitofp %21 : vector<4x64xi32> to vector<4x64xf32>
    %cst = arith.constant dense<0.000000e+00> : vector<4xf32>
    %23 = vector.multi_reduction <add>, %22, %cst [1] : vector<4x64xf32> to vector<4xf32>
    %24 = vector.shape_cast %23 : vector<4xf32> to vector<4x1xf32>
    %c0_5 = arith.constant 0 : index
    %c0_6 = arith.constant 0 : index
    %25 = vector.load %arg1[%c0_5, %c0_6] : memref<128x16xf32, #tpu.memory_space<vmem>>, vector<128x16xf32>
    %26 = arith.truncf %25 : vector<128x16xf32> to vector<128x16xbf16>
    %c0_7 = arith.constant 0 : index
    %c0_8 = arith.constant 0 : index
    %27 = vector.load %arg7[%c0_7, %c0_8] : memref<16x128xbf16, #tpu.memory_space<vmem>>, vector<16x128xbf16>
    %cst_9 = arith.constant dense<0.000000e+00> : vector<128x128xf32>
    %28 = tpu.matmul %26, %27, %cst_9 {dimension_numbers = #tpu.dot_dimension_numbers<[1], [0], [0], [1], [0, 0, 1, 1], [], []>} : vector<128x16xbf16>, vector<16x128xbf16>, vector<128x128xf32> -> vector<128x128xf32>
    %c0_10 = arith.constant 0 : index
    %c0_11 = arith.constant 0 : index
    %29 = vector.load %arg8[%c0_10, %c0_11] : memref<1x128xf32, #tpu.memory_space<vmem>>, vector<1x128xf32>
    %30 = vector.broadcast %29 : vector<1x128xf32> to vector<128x128xf32>
    %31 = arith.addf %28, %30 : vector<128x128xf32>
    %cst_12 = arith.constant 0.000000e+00 : f32
    %32 = vector.broadcast %cst_12 : f32 to vector<128x128xf32>
    %33 = arith.maximumf %31, %32 : vector<128x128xf32>
    %34 = arith.truncf %33 : vector<128x128xf32> to vector<128x128xbf16>
    %c0_13 = arith.constant 0 : index
    %c0_14 = arith.constant 0 : index
    %35 = vector.load %arg9[%c0_13, %c0_14] : memref<128x128xbf16, #tpu.memory_space<vmem>>, vector<128x128xbf16>
    %cst_15 = arith.constant dense<0.000000e+00> : vector<128x128xf32>
    %36 = tpu.matmul %34, %35, %cst_15 {dimension_numbers = #tpu.dot_dimension_numbers<[1], [0], [0], [1], [0, 0, 1, 1], [], []>} : vector<128x128xbf16>, vector<128x128xbf16>, vector<128x128xf32> -> vector<128x128xf32>
    %c0_16 = arith.constant 0 : index
    %c0_17 = arith.constant 0 : index
    %37 = vector.load %arg10[%c0_16, %c0_17] : memref<1x128xf32, #tpu.memory_space<vmem>>, vector<1x128xf32>
    %38 = vector.broadcast %37 : vector<1x128xf32> to vector<128x128xf32>
    %39 = arith.addf %36, %38 : vector<128x128xf32>
    %c0_18 = arith.constant 0 : index
    %c0_19 = arith.constant 0 : index
    %40 = vector.load %arg0[%c0_18, %c0_19] : memref<64x16xf32, #tpu.memory_space<vmem>>, vector<64x16xf32>
    %41 = arith.truncf %40 : vector<64x16xf32> to vector<64x16xbf16>
    %c0_20 = arith.constant 0 : index
    %c0_21 = arith.constant 0 : index
    %42 = vector.load %arg5[%c0_20, %c0_21] : memref<16x128xbf16, #tpu.memory_space<vmem>>, vector<16x128xbf16>
    %cst_22 = arith.constant dense<0.000000e+00> : vector<64x128xf32>
    %43 = tpu.matmul %41, %42, %cst_22 {dimension_numbers = #tpu.dot_dimension_numbers<[1], [0], [0], [1], [0, 0, 1, 1], [], []>} : vector<64x16xbf16>, vector<16x128xbf16>, vector<64x128xf32> -> vector<64x128xf32>
    %c0_23 = arith.constant 0 : index
    %c0_24 = arith.constant 0 : index
    %44 = vector.load %arg6[%c0_23, %c0_24] : memref<1x128xf32, #tpu.memory_space<vmem>>, vector<1x128xf32>
    %45 = vector.broadcast %44 : vector<1x128xf32> to vector<64x128xf32>
    %46 = arith.addf %43, %45 : vector<64x128xf32>
    %c0_25 = arith.constant 0 : index
    %c0_26 = arith.constant 0 : index
    %47 = vector.load %arg11[%c0_25, %c0_26] : memref<128x384xbf16, #tpu.memory_space<vmem>>, vector<128x384xbf16>
    %c0_27 = arith.constant 0 : index
    %c0_28 = arith.constant 0 : index
    %48 = vector.load %arg12[%c0_27, %c0_28] : memref<128x384xbf16, #tpu.memory_space<vmem>>, vector<128x384xbf16>
    %c0_29 = arith.constant 0 : index
    %c0_30 = arith.constant 0 : index
    %49 = vector.load %arg13[%c0_29, %c0_30] : memref<1x256xf32, #tpu.memory_space<vmem>>, vector<1x256xf32>
    %50 = vector.shape_cast %49 : vector<1x256xf32> to vector<1x256xf32>
    %51 = vector.broadcast %50 : vector<1x256xf32> to vector<64x256xf32>
    %c0_31 = arith.constant 0 : index
    %c0_32 = arith.constant 0 : index
    %52 = vector.load %arg14[%c0_31, %c0_32] : memref<1x128xf32, #tpu.memory_space<vmem>>, vector<1x128xf32>
    %53 = vector.shape_cast %52 : vector<1x128xf32> to vector<1x128xf32>
    %54 = vector.broadcast %53 : vector<1x128xf32> to vector<64x128xf32>
    %c0_33 = arith.constant 0 : index
    %c0_34 = arith.constant 0 : index
    %55 = vector.load %arg15[%c0_33, %c0_34] : memref<1x128xf32, #tpu.memory_space<vmem>>, vector<1x128xf32>
    %56 = vector.shape_cast %55 : vector<1x128xf32> to vector<1x128xf32>
    %57 = vector.broadcast %56 : vector<1x128xf32> to vector<64x128xf32>
    %c0_i32 = arith.constant 0 : i32
    %58 = arith.truncf %46 : vector<64x128xf32> to vector<64x128xbf16>
    %cst_35 = arith.constant dense<0.000000e+00> : vector<128x128xf32>
    %59 = tpu.matmul %6, %58, %cst_35 {dimension_numbers = #tpu.dot_dimension_numbers<[1], [0], [0], [1], [0, 0, 1, 1], [], []>} : vector<128x64xbf16>, vector<64x128xbf16>, vector<128x128xf32> -> vector<128x128xf32>
    %60 = arith.mulf %39, %59 : vector<128x128xf32>
    %61 = arith.truncf %60 : vector<128x128xf32> to vector<128x128xbf16>
    %cst_36 = arith.constant dense<0.000000e+00> : vector<64x128xf32>
    %62 = tpu.matmul %13, %61, %cst_36 {dimension_numbers = #tpu.dot_dimension_numbers<[1], [0], [0], [1], [0, 0, 1, 1], [], []>} : vector<64x128xbf16>, vector<128x128xbf16>, vector<64x128xf32> -> vector<64x128xf32>
    %63 = arith.truncf %62 : vector<64x128xf32> to vector<64x128xbf16>
    %cst_37 = arith.constant dense<0.000000e+00> : vector<64x384xf32>
    %64 = tpu.matmul %63, %47, %cst_37 {dimension_numbers = #tpu.dot_dimension_numbers<[1], [0], [0], [1], [0, 0, 1, 1], [], []>} : vector<64x128xbf16>, vector<128x384xbf16>, vector<64x384xf32> -> vector<64x384xf32>
    %65 = arith.truncf %46 : vector<64x128xf32> to vector<64x128xbf16>
    %cst_38 = arith.constant dense<0.000000e+00> : vector<64x384xf32>
    %66 = tpu.matmul %65, %48, %cst_38 {dimension_numbers = #tpu.dot_dimension_numbers<[1], [0], [0], [1], [0, 0, 1, 1], [], []>} : vector<64x128xbf16>, vector<128x384xbf16>, vector<64x384xf32> -> vector<64x384xf32>
    %67 = vector.extract_strided_slice %64 {offsets = [0, 0], sizes = [64, 256], strides = [1, 1]} : vector<64x384xf32> to vector<64x256xf32>
    %68 = vector.extract_strided_slice %66 {offsets = [0, 0], sizes = [64, 256], strides = [1, 1]} : vector<64x384xf32> to vector<64x256xf32>
    %69 = arith.addf %67, %68 : vector<64x256xf32>
    %70 = arith.addf %69, %51 : vector<64x256xf32>
    %71 = arith.negf %70 : vector<64x256xf32>
    %72 = math.exp %71 : vector<64x256xf32>
    %cst_39 = arith.constant 1.000000e+00 : f32
    %73 = vector.broadcast %cst_39 : f32 to vector<64x256xf32>
    %74 = arith.addf %73, %72 : vector<64x256xf32>
    %75 = arith.divf %73, %74 : vector<64x256xf32>
    %76 = vector.extract_strided_slice %75 {offsets = [0, 0], sizes = [64, 128], strides = [1, 1]} : vector<64x256xf32> to vector<64x128xf32>
    %77 = vector.extract_strided_slice %75 {offsets = [0, 128], sizes = [64, 128], strides = [1, 1]} : vector<64x256xf32> to vector<64x128xf32>
    %78 = vector.extract_strided_slice %64 {offsets = [0, 256], sizes = [64, 128], strides = [1, 1]} : vector<64x384xf32> to vector<64x128xf32>
    %79 = arith.addf %78, %54 : vector<64x128xf32>
    %80 = vector.extract_strided_slice %66 {offsets = [0, 256], sizes = [64, 128], strides = [1, 1]} : vector<64x384xf32> to vector<64x128xf32>
    %81 = arith.addf %80, %57 : vector<64x128xf32>
    %82 = arith.mulf %76, %81 : vector<64x128xf32>
    %83 = arith.addf %79, %82 : vector<64x128xf32>
    %84 = math.tanh %83 : vector<64x128xf32>
    %cst_40 = arith.constant 1.000000e+00 : f32
    %85 = vector.broadcast %cst_40 : f32 to vector<64x128xf32>
    %86 = arith.subf %85, %77 : vector<64x128xf32>
    %87 = arith.mulf %86, %84 : vector<64x128xf32>
    %88 = arith.mulf %77, %46 : vector<64x128xf32>
    %89 = arith.addf %87, %88 : vector<64x128xf32>
    %c1_i32 = arith.constant 1 : i32
    %90 = arith.truncf %89 : vector<64x128xf32> to vector<64x128xbf16>
    %cst_41 = arith.constant dense<0.000000e+00> : vector<128x128xf32>
    %91 = tpu.matmul %6, %90, %cst_41 {dimension_numbers = #tpu.dot_dimension_numbers<[1], [0], [0], [1], [0, 0, 1, 1], [], []>} : vector<128x64xbf16>, vector<64x128xbf16>, vector<128x128xf32> -> vector<128x128xf32>
    %92 = arith.mulf %39, %91 : vector<128x128xf32>
    %93 = arith.truncf %92 : vector<128x128xf32> to vector<128x128xbf16>
    %cst_42 = arith.constant dense<0.000000e+00> : vector<64x128xf32>
    %94 = tpu.matmul %13, %93, %cst_42 {dimension_numbers = #tpu.dot_dimension_numbers<[1], [0], [0], [1], [0, 0, 1, 1], [], []>} : vector<64x128xbf16>, vector<128x128xbf16>, vector<64x128xf32> -> vector<64x128xf32>
    %95 = arith.truncf %94 : vector<64x128xf32> to vector<64x128xbf16>
    %cst_43 = arith.constant dense<0.000000e+00> : vector<64x384xf32>
    %96 = tpu.matmul %95, %47, %cst_43 {dimension_numbers = #tpu.dot_dimension_numbers<[1], [0], [0], [1], [0, 0, 1, 1], [], []>} : vector<64x128xbf16>, vector<128x384xbf16>, vector<64x384xf32> -> vector<64x384xf32>
    %97 = arith.truncf %89 : vector<64x128xf32> to vector<64x128xbf16>
    %cst_44 = arith.constant dense<0.000000e+00> : vector<64x384xf32>
    %98 = tpu.matmul %97, %48, %cst_44 {dimension_numbers = #tpu.dot_dimension_numbers<[1], [0], [0], [1], [0, 0, 1, 1], [], []>} : vector<64x128xbf16>, vector<128x384xbf16>, vector<64x384xf32> -> vector<64x384xf32>
    %99 = vector.extract_strided_slice %96 {offsets = [0, 0], sizes = [64, 256], strides = [1, 1]} : vector<64x384xf32> to vector<64x256xf32>
    %100 = vector.extract_strided_slice %98 {offsets = [0, 0], sizes = [64, 256], strides = [1, 1]} : vector<64x384xf32> to vector<64x256xf32>
    %101 = arith.addf %99, %100 : vector<64x256xf32>
    %102 = arith.addf %101, %51 : vector<64x256xf32>
    %103 = arith.negf %102 : vector<64x256xf32>
    %104 = math.exp %103 : vector<64x256xf32>
    %cst_45 = arith.constant 1.000000e+00 : f32
    %105 = vector.broadcast %cst_45 : f32 to vector<64x256xf32>
    %106 = arith.addf %105, %104 : vector<64x256xf32>
    %107 = arith.divf %105, %106 : vector<64x256xf32>
    %108 = vector.extract_strided_slice %107 {offsets = [0, 0], sizes = [64, 128], strides = [1, 1]} : vector<64x256xf32> to vector<64x128xf32>
    %109 = vector.extract_strided_slice %107 {offsets = [0, 128], sizes = [64, 128], strides = [1, 1]} : vector<64x256xf32> to vector<64x128xf32>
    %110 = vector.extract_strided_slice %96 {offsets = [0, 256], sizes = [64, 128], strides = [1, 1]} : vector<64x384xf32> to vector<64x128xf32>
    %111 = arith.addf %110, %54 : vector<64x128xf32>
    %112 = vector.extract_strided_slice %98 {offsets = [0, 256], sizes = [64, 128], strides = [1, 1]} : vector<64x384xf32> to vector<64x128xf32>
    %113 = arith.addf %112, %57 : vector<64x128xf32>
    %114 = arith.mulf %108, %113 : vector<64x128xf32>
    %115 = arith.addf %111, %114 : vector<64x128xf32>
    %116 = math.tanh %115 : vector<64x128xf32>
    %cst_46 = arith.constant 1.000000e+00 : f32
    %117 = vector.broadcast %cst_46 : f32 to vector<64x128xf32>
    %118 = arith.subf %117, %109 : vector<64x128xf32>
    %119 = arith.mulf %118, %116 : vector<64x128xf32>
    %120 = arith.mulf %109, %89 : vector<64x128xf32>
    %121 = arith.addf %119, %120 : vector<64x128xf32>
    %c2_i32 = arith.constant 2 : i32
    %122 = arith.truncf %121 : vector<64x128xf32> to vector<64x128xbf16>
    %cst_47 = arith.constant dense<0.000000e+00> : vector<128x128xf32>
    %123 = tpu.matmul %6, %122, %cst_47 {dimension_numbers = #tpu.dot_dimension_numbers<[1], [0], [0], [1], [0, 0, 1, 1], [], []>} : vector<128x64xbf16>, vector<64x128xbf16>, vector<128x128xf32> -> vector<128x128xf32>
    %124 = arith.mulf %39, %123 : vector<128x128xf32>
    %125 = arith.truncf %124 : vector<128x128xf32> to vector<128x128xbf16>
    %cst_48 = arith.constant dense<0.000000e+00> : vector<64x128xf32>
    %126 = tpu.matmul %13, %125, %cst_48 {dimension_numbers = #tpu.dot_dimension_numbers<[1], [0], [0], [1], [0, 0, 1, 1], [], []>} : vector<64x128xbf16>, vector<128x128xbf16>, vector<64x128xf32> -> vector<64x128xf32>
    %127 = arith.truncf %126 : vector<64x128xf32> to vector<64x128xbf16>
    %cst_49 = arith.constant dense<0.000000e+00> : vector<64x384xf32>
    %128 = tpu.matmul %127, %47, %cst_49 {dimension_numbers = #tpu.dot_dimension_numbers<[1], [0], [0], [1], [0, 0, 1, 1], [], []>} : vector<64x128xbf16>, vector<128x384xbf16>, vector<64x384xf32> -> vector<64x384xf32>
    %129 = arith.truncf %121 : vector<64x128xf32> to vector<64x128xbf16>
    %cst_50 = arith.constant dense<0.000000e+00> : vector<64x384xf32>
    %130 = tpu.matmul %129, %48, %cst_50 {dimension_numbers = #tpu.dot_dimension_numbers<[1], [0], [0], [1], [0, 0, 1, 1], [], []>} : vector<64x128xbf16>, vector<128x384xbf16>, vector<64x384xf32> -> vector<64x384xf32>
    %131 = vector.extract_strided_slice %128 {offsets = [0, 0], sizes = [64, 256], strides = [1, 1]} : vector<64x384xf32> to vector<64x256xf32>
    %132 = vector.extract_strided_slice %130 {offsets = [0, 0], sizes = [64, 256], strides = [1, 1]} : vector<64x384xf32> to vector<64x256xf32>
    %133 = arith.addf %131, %132 : vector<64x256xf32>
    %134 = arith.addf %133, %51 : vector<64x256xf32>
    %135 = arith.negf %134 : vector<64x256xf32>
    %136 = math.exp %135 : vector<64x256xf32>
    %cst_51 = arith.constant 1.000000e+00 : f32
    %137 = vector.broadcast %cst_51 : f32 to vector<64x256xf32>
    %138 = arith.addf %137, %136 : vector<64x256xf32>
    %139 = arith.divf %137, %138 : vector<64x256xf32>
    %140 = vector.extract_strided_slice %139 {offsets = [0, 0], sizes = [64, 128], strides = [1, 1]} : vector<64x256xf32> to vector<64x128xf32>
    %141 = vector.extract_strided_slice %139 {offsets = [0, 128], sizes = [64, 128], strides = [1, 1]} : vector<64x256xf32> to vector<64x128xf32>
    %142 = vector.extract_strided_slice %128 {offsets = [0, 256], sizes = [64, 128], strides = [1, 1]} : vector<64x384xf32> to vector<64x128xf32>
    %143 = arith.addf %142, %54 : vector<64x128xf32>
    %144 = vector.extract_strided_slice %130 {offsets = [0, 256], sizes = [64, 128], strides = [1, 1]} : vector<64x384xf32> to vector<64x128xf32>
    %145 = arith.addf %144, %57 : vector<64x128xf32>
    %146 = arith.mulf %140, %145 : vector<64x128xf32>
    %147 = arith.addf %143, %146 : vector<64x128xf32>
    %148 = math.tanh %147 : vector<64x128xf32>
    %cst_52 = arith.constant 1.000000e+00 : f32
    %149 = vector.broadcast %cst_52 : f32 to vector<64x128xf32>
    %150 = arith.subf %149, %141 : vector<64x128xf32>
    %151 = arith.mulf %150, %148 : vector<64x128xf32>
    %152 = arith.mulf %141, %121 : vector<64x128xf32>
    %153 = arith.addf %151, %152 : vector<64x128xf32>
    %154 = arith.truncf %153 : vector<64x128xf32> to vector<64x128xbf16>
    %cst_53 = arith.constant dense<0.000000e+00> : vector<4x128xf32>
    %155 = tpu.matmul %20, %154, %cst_53 {dimension_numbers = #tpu.dot_dimension_numbers<[1], [0], [0], [1], [0, 0, 1, 1], [], []>} : vector<4x64xbf16>, vector<64x128xbf16>, vector<4x128xf32> -> vector<4x128xf32>
    %156 = arith.truncf %155 : vector<4x128xf32> to vector<4x128xbf16>
    %c0_54 = arith.constant 0 : index
    %c0_55 = arith.constant 0 : index
    %157 = vector.load %arg16[%c0_54, %c0_55] : memref<128x32xbf16, #tpu.memory_space<vmem>>, vector<128x32xbf16>
    %cst_56 = arith.constant dense<0.000000e+00> : vector<4x32xf32>
    %158 = tpu.matmul %156, %157, %cst_56 {dimension_numbers = #tpu.dot_dimension_numbers<[1], [0], [0], [1], [0, 0, 1, 1], [], []>} : vector<4x128xbf16>, vector<128x32xbf16>, vector<4x32xf32> -> vector<4x32xf32>
    %c0_57 = arith.constant 0 : index
    %c0_58 = arith.constant 0 : index
    %159 = vector.load %arg17[%c0_57, %c0_58] : memref<1x32xf32, #tpu.memory_space<vmem>>, vector<1x32xf32>
    %160 = vector.broadcast %24 : vector<4x1xf32> to vector<4x32xf32>
    %161 = vector.broadcast %159 : vector<1x32xf32> to vector<4x32xf32>
    %162 = arith.mulf %160, %161 : vector<4x32xf32>
    %163 = arith.addf %158, %162 : vector<4x32xf32>
    %c0_59 = arith.constant 0 : index
    %c0_60 = arith.constant 0 : index
    %164 = vector.load %arg18[%c0_59, %c0_60] : memref<4x32xf32, #tpu.memory_space<vmem>>, vector<4x32xf32>
    tpu.vector_store %arg18[%c0_59, %c0_60], %163 {strides = array<i32>} : memref<4x32xf32, #tpu.memory_space<vmem>>, vector<4x32xf32>,
    return
  }
}

</mosaic_0001>

<bundles_post_ra>
// kernel: mpnn_enn_sum_forward.1
= control target key start
LH: loop header
LB: loop body
LE: loop exit
PB: predicated region body
PF: predicated region fallthrough
CT: control target
= control target key end

     0   :  { %s6039_s0 = inlined_call_operand.vmem [shape: f32[64,16], index: 0, kind: input, shape index: {}]   ;;  %s6040_s1 = inlined_call_operand.vmem [shape: f32[128,16], index: 1, kind: input, shape index: {}]   ;;  %s6041_s2 = inlined_call_operand.vmem [shape: s32[128,1], index: 2, kind: input, shape index: {}]   ;;  %s6042_s3 = inlined_call_operand.vmem [shape: s32[1,128], index: 3, kind: input, shape index: {}]   ;;  %s6043_s4 = inlined_call_operand.vmem [shape: s32[1,64], index: 4, kind: input, shape index: {}]   ;;  %s6044_s5 = inlined_call_operand.vmem [shape: bf16[16,128], index: 5, kind: input, shape index: {}]   ;;  %s6045_s6 = inlined_call_operand.vmem [shape: f32[1,128], index: 6, kind: input, shape index: {}]   ;;  %s6046_s7 = inlined_call_operand.vmem [shape: bf16[16,128], index: 7, kind: input, shape index: {}]   ;;  %s6047_s8 = inlined_call_operand.vmem [shape: f32[1,128], index: 8, kind: input, shape index: {}]   ;;  %s6048_s9 = inlined_call_operand.vmem [shape: bf16[128,128], index: 9, kind: input, shape index: {}]   ;;  %s6049_s10 = inlined_call_operand.vmem [shape: f32[1,128], index: 10, kind: input, shape index: {}]   ;;  %s6050_s11 = inlined_call_operand.vmem [shape: bf16[128,384], index: 11, kind: input, shape index: {}]   ;;  %s6051_s12 = inlined_call_operand.vmem [shape: bf16[128,384], index: 12, kind: input, shape index: {}]   ;;  %s6052_s13 = inlined_call_operand.vmem [shape: f32[1,256], index: 13, kind: input, shape index: {}]   ;;  %s6053_s14 = inlined_call_operand.vmem [shape: f32[1,128], index: 14, kind: input, shape index: {}]   ;;  %s6054_s15 = inlined_call_operand.vmem [shape: f32[1,128], index: 15, kind: input, shape index: {}]   ;;  %s6055_s16 = inlined_call_operand.vmem [shape: bf16[128,32], index: 16, kind: input, shape index: {}]   ;;  %s6056_s17 = inlined_call_operand.vmem [shape: f32[1,32], index: 17, kind: input, shape index: {}]   ;;  %s6057_s18 = inlined_call_operand.hbm [shape: f32[4,32], index: 18, kind: output, shape index: {}]  }
   0x1   :  { %6168 = sst [smem:[#allocation67_spill]] %s6039_s0 }
   0x2   :  { %6169 = sst [smem:[#allocation68_spill]] %s6040_s1 }
   0x3   :  { %6170 = sst [smem:[#allocation69_spill]] %s6041_s2 }
   0x4   :  { %v4083_v0 = vld [vmem:[%s6046_s7] sm:$0xff]   ;;  %s6171_s0 = sld [smem:[#allocation68_spill]]  ;;  %vm277_vm0 = vcmask 130048   ;;  %v6063_v6 = vmov 0   ;;  %s6172_s7 = sld [smem:[#allocation69_spill]]  ;;  %v4086_v29 = vld [vmem:[%s6048_s9 + $0x8] sm:$0xff]  }
   0x5   :  { %3648 = vmatprep.subr.bf16.mxu0 %v4083_v0  ;;  %4082 = vset.pattern.permute.xlu1 %v6063_v6  ;;  %v4084_v8 = vld [vmem:[%s6044_s5] sm:$0xff]   ;;  %v4087_v36 = vld [vmem:[%s6048_s9 + $0x10] sm:$0xff]   ;;  %s6173_s27 = sld [smem:[#allocation67_spill]]  ;;  %v4088_v41 = vld [vmem:[%s6048_s9 + $0x18] sm:$0xff]  }
   0x6   :  { %3649 = vmatpush3.bf16.msra.mxu0 %v4083_v0  ;;  %4081 = vset.pattern.permute.xlu0 %v6063_v6  ;;  %v4085_v28 = vld [vmem:[%s6048_s9] sm:$0xff]   ;;  %v4090_v53 = vld [vmem:[%s6048_s9 + $0x28] sm:$0xff]  }
   0x7   :  { %3698 = vmatprep.subr.bf16.mxu0 %v4084_v8  ;;  %3666 = vmatprep.subr.bf16.mxu1 %v4085_v28  ;;  %v4089_v46 = vld [vmem:[%s6048_s9 + $0x20] sm:$0xff]  }
   0x8   :  { %3667 = vmatpush3.bf16.msra.mxu1 %v4085_v28 }
   0x9   :  { %3668 = vmatprep.subr.bf16.mxu1 %v4086_v29 }
   0xa   :  { %v238_v1 = vld [vmem:[%s6171_s0] sm:$0xff]  ;;  %v239_v2 = vld [vmem:[%s6171_s0 + $0x8] sm:$0xff]  ;;  %v240_v3 = vld [vmem:[%s6171_s0 + $0x10] sm:$0xff] }
   0xb   :  { %v254_v4 = vpack.c.bf16 %v239_v2, %v238_v1  ;;  %v241_v5 = vld [vmem:[%s6171_s0 + $0x18] sm:$0xff]  ;;  %v242_v9 = vld [vmem:[%s6171_s0 + $0x20] sm:$0xff]  ;;  %v243_v10 = vld [vmem:[%s6171_s0 + $0x28] sm:$0xff] }
   0xc   :  { %v255_v7 = vpack.c.bf16 %v241_v5, %v240_v3  ;;  %v256_v11 = vpack.c.bf16 %v243_v10, %v242_v9  ;;  %v244_v12 = vld [vmem:[%s6171_s0 + $0x30] sm:$0xff]  ;;  %v245_v13 = vld [vmem:[%s6171_s0 + $0x38] sm:$0xff]  ;;  %v246_v14 = vld [vmem:[%s6171_s0 + $0x40] sm:$0xff]  ;;  %3669 = vmatpush3.bf16.msra.mxu1 %v4086_v29 }
   0xd   :  { %3650 = vmatprep.mubr.msk.bf16.mxu0 %vm277_vm0, %v254_v4  ;;  %v247_v15 = vld [vmem:[%s6171_s0 + $0x48] sm:$0xff]  ;;  %v257_v16 = vpack.c.bf16 %v245_v13, %v244_v12  ;;  %v65_v17 = vld [vmem:[%s6172_s7 + $0x10] sm:$0xff]  ;;  %v63_v18 = vld [vmem:[%s6172_s7] sm:$0xff]  ;;  %3670 = vmatprep.subr.bf16.mxu1 %v4087_v36 }
   0xe   :  { %3651 = vmatmul.mubr.msk.bf16.vlgmr.msra.gmra.mrb[0].mxu0 %vm277_vm0, %v255_v7  ;;  %v258_v19 = vpack.c.bf16 %v247_v15, %v246_v14  ;;  %86 = vperm.xlu1 %4082, %v65_v17   ;;  %v66_v20 = vld [vmem:[%s6172_s7 + $0x18] sm:$0xff]  ;;  %v248_v21 = vld [vmem:[%s6171_s0 + $0x50] sm:$0xff]  ;;  %v64_v23 = vld [vmem:[%s6172_s7 + $0x8] sm:$0xff] }
   0xf   :  { %3699 = vmatpush3.bf16.msra.mxu0 %v4084_v8  ;;  %3654 = vmatprep.mubr.msk.bf16.mxu0 %vm277_vm0, %v256_v11  ;;  %v249_v22 = vld [vmem:[%s6171_s0 + $0x58] sm:$0xff]  ;;  %v250_v24 = vld [vmem:[%s6171_s0 + $0x60] sm:$0xff]  ;;  %v251_v25 = vld [vmem:[%s6171_s0 + $0x68] sm:$0xff] }
  0x10   :  { %80 = vperm.xlu0 %4081, %v63_v18   ;;  %v68_v26 = vld [vmem:[%s6172_s7 + $0x28] sm:$0xff]  ;;  %v67_v27 = vld [vmem:[%s6172_s7 + $0x20] sm:$0xff]  ;;  %v259_v30 = vpack.c.bf16 %v249_v22, %v248_v21  ;;  %v260_v31 = vpack.c.bf16 %v251_v25, %v250_v24  ;;  %v70_v32 = vld [vmem:[%s6172_s7 + $0x38] sm:$0xff]  ;;  %3671 = vmatpush3.bf16.msra.mxu1 %v4087_v36 }
  0x11   :  { %v69_v33 = vld [vmem:[%s6172_s7 + $0x30] sm:$0xff]  ;;  %v253_v35 = vld [vmem:[%s6171_s0 + $0x78] sm:$0xff]  ;;  %v591_v37 = vld [vmem:[%s6173_s27] sm:$0xff]  ;;  %3672 = vmatprep.subr.bf16.mxu1 %v4088_v41 }
  0x12   :  { %89 = vperm.xlu1 %4082, %v66_v20   ;;  %v252_v34 = vld [vmem:[%s6171_s0 + $0x70] sm:$0xff]  ;;  %v592_v38 = vld [vmem:[%s6173_s27 + $0x8] sm:$0xff]  ;;  %v71_v40 = vld [vmem:[%s6172_s7 + $0x40] sm:$0xff] }
  0x13   :  { %v72_v39 = vld [vmem:[%s6172_s7 + $0x48] sm:$0xff]  ;;  %v261_v42 = vpack.c.bf16 %v253_v35, %v252_v34  ;;  %v74_v43 = vld [vmem:[%s6172_s7 + $0x58] sm:$0xff]  ;;  %v599_v44 = vpack.c.bf16 %v592_v38, %v591_v37  ;;  %v73_v45 = vld [vmem:[%s6172_s7 + $0x50] sm:$0xff] }
  0x14   :  { %83 = vperm.xlu0 %4081, %v64_v23   ;;  %v593_v47 = vld [vmem:[%s6173_s27 + $0x10] sm:$0xff]  ;;  %v594_v48 = vld [vmem:[%s6173_s27 + $0x18] sm:$0xff]  ;;  %v595_v49 = vld [vmem:[%s6173_s27 + $0x20] sm:$0xff]  ;;  %3673 = vmatpush3.bf16.msra.mxu1 %v4088_v41 }
  0x15   :  { %v596_v50 = vld [vmem:[%s6173_s27 + $0x28] sm:$0xff]  ;;  %v75_v52 = vld [vmem:[%s6172_s7 + $0x60] sm:$0xff]  ;;  %3674 = vmatprep.subr.bf16.mxu1 %v4089_v46  ;;  %v600_v54 = vpack.c.bf16 %v594_v48, %v593_v47  ;;  %v78_v55 = vld [vmem:[%s6172_s7 + $0x78] sm:$0xff] }
  0x16   :  { %3655 = vmatmul.mubr.msk.bf16.gmra.mrb[4].mxu0 %vm277_vm0, %v257_v16  ;;  %95 = vperm.xlu1 %4082, %v68_v26   ;;  %v76_v51 = vld [vmem:[%s6172_s7 + $0x68] sm:$0xff]  ;;  %v601_v56 = vpack.c.bf16 %v596_v50, %v595_v49  ;;  %v77_v57 = vld [vmem:[%s6172_s7 + $0x70] sm:$0xff]  ;;  %v598_v59 = vld [vmem:[%s6173_s27 + $0x38] sm:$0xff] }
  0x17   :  { %3658 = vmatprep.mubr.msk.bf16.mxu0 %vm277_vm0, %v258_v19  ;;  %v597_v58 = vld [vmem:[%s6173_s27 + $0x30] sm:$0xff] }
  0x18   :  { %92 = vperm.xlu0 %4081, %v67_v27   ;;  %3675 = vmatpush3.bf16.msra.mxu1 %v4089_v46  ;;  %v602_v60 = vpack.c.bf16 %v598_v59, %v597_v58 }
  0x19   :  { %3676 = vmatprep.subr.bf16.mxu1 %v4090_v53 }
  0x1a   :  { %101 = vperm.xlu1 %4082, %v70_v32  }
  0x1c   :  { %98 = vperm.xlu0 %4081, %v69_v33   ;;  %3677 = vmatpush3.bf16.msra.mxu1 %v4090_v53 }
  0x1e   :  { %3659 = vmatmul.mubr.msk.bf16.gmra.mrb[8].mxu0 %vm277_vm0, %v259_v30  ;;  %107 = vperm.xlu1 %4082, %v72_v39  }
  0x1f   :  { %3662 = vmatprep.mubr.msk.bf16.mxu0 %vm277_vm0, %v260_v31 }
  0x20   :  { %104 = vperm.xlu0 %4081, %v71_v40  }
  0x22   :  { %113 = vperm.xlu1 %4082, %v74_v43  }
  0x24   :  { %110 = vperm.xlu0 %4081, %v73_v45  }
  0x26   :  { %3663 = vmatmul.mubr.msk.bf16.gmra.mrb[12].mxu0 %vm277_vm0, %v261_v42  ;;  %119 = vperm.xlu1 %4082, %v76_v51  }
  0x27   :  { %3700 = vmatprep.mubr.msk.bf16.mxu0 %vm277_vm0, %v599_v44 }
  0x28   :  { %116 = vperm.xlu0 %4081, %v75_v52  }
  0x2a   :  { %125 = vperm.xlu1 %4082, %v78_v55  }
  0x2c   :  { %122 = vperm.xlu0 %4081, %v77_v57  }
  0x2e   :  { %3701 = vmatmul.mubr.msk.bf16.vlgmr.msra.gmra.mrb[16].mxu0 %vm277_vm0, %v600_v54 }
  0x2f   :  { %3704 = vmatprep.mubr.msk.bf16.mxu0 %vm277_vm0, %v601_v56 }
  0x36   :  { %3705 = vmatmul.mubr.msk.bf16.gmra.mrb[20].mxu0 %vm277_vm0, %v602_v60 }
  0x37   :  { %23 = vsyncpa [#allocation3], 0  ;;  %v4091_v61 = vld [vmem:[%s6048_s9 + $0x30] sm:$0xff]   ;;  %v4092_v62 = vld [vmem:[%s6048_s9 + $0x38] sm:$0xff]   ;;  %v61_v63 = vlaneseq  ;;  %v6061_v2 = vmov 0.0   ;;  %vm789_vm3 = vcmask 523264  }
  0x38   :  { %3678 = vmatprep.subr.bf16.mxu1 %v4091_v61  ;;  %v3279_v8 = vld [vmem:[%s6047_s8] ss:$0 sm:$0xff]  ;;  %s4483_s29 = smov [#allocation2]  }
  0x39   :  { %3679 = vmatpush3.bf16.msra.mxu1 %v4091_v61  ;;  %v4744_v0 = vand.u32 127, %v61_v63  ;;  %s3244_s30 = sshll.u32 %s4483_s29, 4  ;;  %s3245_s30 = int_to_ptr.vmem [resolvable:$true] %s3244_s30 }
  0x3a   :  { %3680 = vmatprep.subr.bf16.mxu1 %v4092_v62  ;;  %p4460_p1 = scmp.lt.s32.totalorder %s3245_s30, %s3245_s30 }
  0x3d   :  { %3681 = vmatpush3.bf16.msra.mxu1 %v4092_v62 }
  0x8d   :  { %v87_v56 = vpop.permute.xlu1 %86 }
  0x8e   :  { %vm129_vm4 = vcmp.eq.s32.totalorder %v4744_v0, %v87_v56 }
  0x8f   :  { %v81_v1 = vpop.permute.xlu0 %80 }
  0x90   :  { %vm127_vm1 = vcmp.eq.s32.totalorder %v4744_v0, %v81_v1 }
  0x91   :  { %v3252_v3 = vsel %vm127_vm1, 1.0, %v6061_v2 }
  0x93   :  { %v84_v4 = vpop.permute.xlu0 %83 }
  0x94   :  { %vm128_vm2 = vcmp.eq.s32.totalorder %v4744_v0, %v84_v4 }
  0x95   :  { %v3253_v5 = vsel %vm128_vm2, 1.0, %v6061_v2 }
  0x96   :  { %v4750_v7 = vpack.c.bf16 %v3253_v5, %v3252_v3 }
  0x98   :  { %6174 = vst [vmem:[#allocation5_spill] sm:$0xff] %v4750_v7  ;;  %3716 = vmatprep.mubr.msk.bf16.mxu0 %vm789_vm3, %v4750_v7 }
  0xe1   :  { %v3652_v9 = vpop.f32.mrb[0].mxu0 }
  0xe2   :  { %v345_v10 = vadd.f32 %v3652_v9, %v3279_v8  ;;  %v336_v11 = vpop.f32.mrb[1].mxu0  ;;  %v90_v9 = vpop.permute.xlu1 %89 }
  0xe3   :  { %v337_v12 = vadd.f32 %v3279_v8, %v336_v11  ;;  %v3653_v13 = vpop.f32.mrb[2].mxu0  ;;  %vm130_vm5 = vcmp.eq.s32.totalorder %v4744_v0, %v90_v9  ;;  %v4889_v9 = vld [vmem:[%s6050_s11 + $0x1c] ss:$12 sps:$4 sm:$0xff]  }
  0xe4   :  { %v348_v14 = vadd.f32 %v3653_v13, %v3279_v8  ;;  %v339_v15 = vpop.f32.mrb[3].mxu0  ;;  %v401_v17 = vmax.f32 %v345_v10, 0.0  ;;  %v3298_v10 = vld [vmem:[%s6045_s6] ss:$0 sm:$0xff] }
  0xe5   :  { %v340_v16 = vadd.f32 %v3279_v8, %v339_v15  ;;  %v399_v19 = vmax.f32 %v337_v12, 0.0 }
  0xe6   :  { %v402_v18 = vmax.f32 %v348_v14, 0.0 }
  0xe7   :  { %v400_v20 = vmax.f32 %v340_v16, 0.0 }
  0xe8   :  { %v416_v21 = vpack.c.bf16 %v402_v18, %v401_v17  ;;  %v96_v18 = vpop.permute.xlu1 %95 }
  0xe9   :  { %v3656_v22 = vpop.f32.mrb[4].mxu0  ;;  %v415_v23 = vpack.c.bf16 %v400_v20, %v399_v19  ;;  %v93_v19 = vpop.permute.xlu0 %92  ;;  %vm132_vm6 = vcmp.eq.s32.totalorder %v4744_v0, %v96_v18  ;;  %v4920_v18 = vld [vmem:[%s6050_s11 + $0x48] ss:$12 sps:$4 sm:$0xff]  }
  0xea   :  { %v361_v24 = vadd.f32 %v3656_v22, %v3279_v8  ;;  %v352_v25 = vpop.f32.mrb[5].mxu0  ;;  %vm131_vm7 = vcmp.eq.s32.totalorder %v4744_v0, %v93_v19  ;;  %v4926_v19 = vld [vmem:[%s6050_s11 + $0x64] ss:$12 sps:$4 sm:$0xff]  }
  0xeb   :  { %v353_v26 = vadd.f32 %v3279_v8, %v352_v25  ;;  %v3657_v27 = vpop.f32.mrb[6].mxu0  ;;  %3682 = vmatprep.mubr.bf16.mxu1 %v415_v23 }
  0xec   :  { %v364_v28 = vadd.f32 %v3657_v27, %v3279_v8  ;;  %v355_v29 = vpop.f32.mrb[7].mxu0  ;;  %3683 = vmatmul.mubr.bf16.vlgmr.msra.gmra.mrb[0].mxu1 %v416_v21  ;;  %v405_v31 = vmax.f32 %v361_v24, 0.0 }
  0xed   :  { %v356_v30 = vadd.f32 %v3279_v8, %v355_v29  ;;  %v403_v33 = vmax.f32 %v353_v26, 0.0  ;;  %v99_v29 = vpop.permute.xlu0 %98 }
  0xee   :  { %v406_v32 = vmax.f32 %v364_v28, 0.0  ;;  %v102_v28 = vpop.permute.xlu1 %101  ;;  %vm133_vm9 = vcmp.eq.s32.totalorder %v4744_v0, %v99_v29 }
  0xef   :  { %v404_v34 = vmax.f32 %v356_v30, 0.0  ;;  %vm134_vm8 = vcmp.eq.s32.totalorder %v4744_v0, %v102_v28  ;;  %v4956_v28 = vld [vmem:[%s6050_s11 + $0x90] ss:$12 sps:$4 sm:$0xff]  }
  0xf0   :  { %v418_v35 = vpack.c.bf16 %v406_v32, %v405_v31  ;;  %6183 = vst [vmem:[#allocation12_spill] sm:$0xff] %v4956_v28 }
  0xf1   :  { %v417_v36 = vpack.c.bf16 %v404_v34, %v403_v33  ;;  %v3660_v37 = vpop.f32.mrb[8].mxu0  ;;  %v3254_v33 = vsel %vm129_vm4, 1.0, %v6061_v2  ;;  %v3255_v34 = vsel %vm130_vm5, 1.0, %v6061_v2 }
  0xf2   :  { %v377_v38 = vadd.f32 %v3660_v37, %v3279_v8  ;;  %v368_v39 = vpop.f32.mrb[9].mxu0  ;;  %v3257_v37 = vsel %vm132_vm6, 1.0, %v6061_v2 }
  0xf3   :  { %v369_v40 = vadd.f32 %v3279_v8, %v368_v39  ;;  %v3661_v41 = vpop.f32.mrb[10].mxu0  ;;  %3686 = vmatprep.mubr.bf16.mxu1 %v417_v36  ;;  %v105_v36 = vpop.permute.xlu0 %104  ;;  %v4808_v39 = vpack.c.bf16 %v3255_v34, %v3254_v33 }
  0xf4   :  { %v380_v42 = vadd.f32 %v3661_v41, %v3279_v8  ;;  %v371_v43 = vpop.f32.mrb[11].mxu0  ;;  %3687 = vmatmul.mubr.bf16.gmra.mrb[4].mxu1 %v418_v35  ;;  %v409_v45 = vmax.f32 %v377_v38, 0.0  ;;  %v108_v35 = vpop.permute.xlu1 %107  ;;  %v3256_v38 = vsel %vm131_vm7, 1.0, %v6061_v2  ;;  %vm135_vm11 = vcmp.eq.s32.totalorder %v4744_v0, %v105_v36 }
  0xf5   :  { %v372_v44 = vadd.f32 %v3279_v8, %v371_v43  ;;  %v407_v47 = vmax.f32 %v369_v40, 0.0  ;;  %v4810_v40 = vpack.c.bf16 %v3257_v37, %v3256_v38  ;;  %vm136_vm10 = vcmp.eq.s32.totalorder %v4744_v0, %v108_v35 }
  0xf6   :  { %v410_v46 = vmax.f32 %v380_v42, 0.0  ;;  %v3259_v43 = vsel %vm134_vm8, 1.0, %v6061_v2 }
  0xf7   :  { %v408_v48 = vmax.f32 %v372_v44, 0.0  ;;  %v111_v42 = vpop.permute.xlu0 %110  ;;  %v3258_v44 = vsel %vm133_vm9, 1.0, %v6061_v2 }
  0xf8   :  { %v420_v49 = vpack.c.bf16 %v410_v46, %v409_v45  ;;  %v114_v41 = vpop.permute.xlu1 %113  ;;  %v3261_v45 = vsel %vm136_vm10, 1.0, %v6061_v2  ;;  %v3260_v46 = vsel %vm135_vm11, 1.0, %v6061_v2  ;;  %vm137_vm13 = vcmp.eq.s32.totalorder %v4744_v0, %v111_v42 }
  0xf9   :  { %v419_v50 = vpack.c.bf16 %v408_v48, %v407_v47  ;;  %v3664_v51 = vpop.f32.mrb[12].mxu0  ;;  %v4824_v47 = vpack.c.bf16 %v3259_v43, %v3258_v44  ;;  %v4826_v48 = vpack.c.bf16 %v3261_v45, %v3260_v46  ;;  %vm138_vm12 = vcmp.eq.s32.totalorder %v4744_v0, %v114_v41 }
  0xfa   :  { %v393_v52 = vadd.f32 %v3664_v51, %v3279_v8  ;;  %v384_v53 = vpop.f32.mrb[13].mxu0  ;;  %v3263_v51 = vsel %vm138_vm12, 1.0, %v6061_v2 }
  0xfb   :  { %v385_v54 = vadd.f32 %v3279_v8, %v384_v53  ;;  %v3665_v55 = vpop.f32.mrb[14].mxu0  ;;  %3690 = vmatprep.mubr.bf16.mxu1 %v419_v50  ;;  %v117_v50 = vpop.permute.xlu0 %116 }
  0xfc   :  { %v396_v57 = vadd.f32 %v3665_v55, %v3279_v8  ;;  %v387_v58 = vpop.f32.mrb[15].mxu0  ;;  %3691 = vmatmul.mubr.bf16.gmra.mrb[8].mxu1 %v420_v49  ;;  %v413_v60 = vmax.f32 %v393_v52, 0.0  ;;  %v120_v49 = vpop.permute.xlu1 %119  ;;  %vm139_vm15 = vcmp.eq.s32.totalorder %v4744_v0, %v117_v50  ;;  %v3262_v52 = vsel %vm137_vm13, 1.0, %v6061_v2 }
  0xfd   :  { %v388_v59 = vadd.f32 %v3279_v8, %v387_v58  ;;  %v411_v62 = vmax.f32 %v385_v54, 0.0  ;;  %vm140_vm14 = vcmp.eq.s32.totalorder %v4744_v0, %v120_v49  ;;  %v3264_v54 = vsel %vm139_vm15, 1.0, %v6061_v2 }
  0xfe   :  { %v414_v61 = vmax.f32 %v396_v57, 0.0  ;;  %v3265_v53 = vsel %vm140_vm14, 1.0, %v6061_v2  ;;  %v4840_v57 = vpack.c.bf16 %v3263_v51, %v3262_v52  ;;  %v3289_v52 = vld [vmem:[%s6049_s10] ss:$0 sm:$0xff]  ;;  %vm4482_vm15 = vmmov 0  }
  0xff   :  { %v412_v1 = vmax.f32 %v388_v59, 0.0  ;;  %v123_v56 = vpop.permute.xlu0 %122  ;;  %v4842_v58 = vpack.c.bf16 %v3265_v53, %v3264_v54 }
 0x100   :  { %v422_v3 = vpack.c.bf16 %v414_v61, %v413_v60  ;;  %v126_v55 = vpop.permute.xlu1 %125  ;;  %vm141_vm1 = vcmp.eq.s32.totalorder %v4744_v0, %v123_v56 }
 0x101   :  { %v421_v4 = vpack.c.bf16 %v412_v1, %v411_v62  ;;  %v3702_v5 = vpop.f32.mrb[16].mxu0  ;;  %vm142_vm0 = vcmp.eq.s32.totalorder %v4744_v0, %v126_v55  ;;  %v3266_v60 = vsel %vm141_vm1, 1.0, %v6061_v2  ;;  %v4858_v62 = vshrl.u32 %v61_v63, 7  ;;  %v4864_v1 = vld [vmem:[%s6042_s3] ss:$0 sm:$0xff] }
 0x102   :  { %v664_v11 = vpop.f32.mrb[17].mxu0  ;;  %v4766_v16 = vadd.f32 %v3702_v5, %v3298_v10  ;;  %v3267_v59 = vsel %vm142_vm0, 1.0, %v6061_v2  ;;  %v4879_v63 = vld [vmem:[%s6050_s11] ss:$12 sps:$4 sm:$0xff]   ;;  %v4884_v5 = vld [vmem:[%s6050_s11 + $0x4] ss:$12 sps:$4 sm:$0xff]  }
 0x103   :  { %3694 = vmatprep.mubr.bf16.mxu1 %v421_v4  ;;  %v3703_v12 = vpop.f32.mrb[18].mxu0  ;;  %v4760_v14 = vadd.f32 %v3298_v10, %v664_v11  ;;  %v4852_v61 = vpack.c.bf16 %v3267_v59, %v3266_v60  ;;  %6176 = vst [vmem:[#allocation7_spill] sm:$0xff] %v4858_v62  ;;  %v185_v0 = vadd.s32 8, %v4858_v62  ;;  %vm197_vm2 = vcmp.eq.s32.totalorder %v4858_v62, %v4864_v1  ;;  %v4902_v11 = vld [vmem:[%s6050_s11 + $0x34] ss:$12 sps:$4 sm:$0xff]  }
 0x104   :  { %3695 = vmatmul.mubr.bf16.gmra.mrb[12].mxu1 %v422_v3  ;;  %v667_v13 = vpop.f32.mrb[19].mxu0  ;;  %v4762_v8 = vadd.f32 %v3703_v12, %v3298_v10  ;;  %v6177_v3 = vmov 0  ;;  %v6065_v4 = vmov 1.0|1.0   ;;  %v4908_v12 = vld [vmem:[%s6050_s11 + $0x30] ss:$12 sps:$4 sm:$0xff]  }
 0x105   :  { %v4764_v15 = vadd.f32 %v3298_v10, %v667_v13  ;;  %6175 = vst [vmem:[#allocation6_spill] sm:$0xff] %v4852_v61  ;;  %vm198_vm4 = vcmp.eq.s32.totalorder %v185_v0, %v4864_v1  ;;  %v4914_v13 = vld [vmem:[%s6050_s11 + $0x4c] ss:$12 sps:$4 sm:$0xff]   ;;  %vm234_vm1 = vcmask 519168  }
 0x106   :  { %v4774_v20 = vpack.c.bf16 %v4762_v8, %v4766_v16  ;;  %vm4869_vm5 = vmpackc.low %vm198_vm4, %vm197_vm2 }
 0x107   :  { %v4770_v17 = vpack.c.bf16 %v4764_v15, %v4760_v14  ;;  %v6178_v3 = vsel %vm4869_vm5, 4294967295, %v6177_v3  ;;  %3748 = vmatprep.mubr.msk.bf16.mxu1 %vm4869_vm5, %v6065_v4 }
 0x108   :  { %6179 = vst [vmem:[#allocation8_spill] sm:$0xff] %v6178_v3  ;;  %v759_v3 = vld [vmem:[%s6052_s13] sm:$0x3] }
 0x109   :  { %v3706_v21 = vpop.f32.mrb[20].mxu0  ;;  %3708 = vmatprep.subr.bf16.mxu0 %v4770_v17 }
 0x10a   :  { %v680_v22 = vpop.f32.mrb[21].mxu0  ;;  %3709 = vmatpush3.bf16.msra.mxu0 %v4770_v17  ;;  %v4786_v30 = vadd.f32 %v3706_v21, %v3298_v10  ;;  %v4932_v21 = vld [vmem:[%s6050_s11 + $0x60] ss:$12 sps:$4 sm:$0xff]  }
 0x10b   :  { %v3707_v23 = vpop.f32.mrb[22].mxu0  ;;  %3710 = vmatprep.subr.bf16.mxu0 %v4774_v20  ;;  %v4779_v25 = vadd.f32 %v3298_v10, %v680_v22  ;;  %v4938_v22 = vld [vmem:[%s6050_s11 + $0x7c] ss:$12 sps:$4 sm:$0xff]  }
 0x10c   :  { %v683_v24 = vpop.f32.mrb[23].mxu0  ;;  %v4781_v26 = vadd.f32 %v3707_v23, %v3298_v10  ;;  %6180 = vst [vmem:[#allocation9_spill] sm:$0xff] %v4938_v22  ;;  %v4944_v23 = vld [vmem:[%s6050_s11 + $0x78] ss:$12 sps:$4 sm:$0xff]  }
 0x10d   :  { %v4783_v27 = vadd.f32 %v3298_v10, %v683_v24  ;;  %v4896_v10 = vld [vmem:[%s6050_s11 + $0x18] ss:$12 sps:$4 sm:$0xff]   ;;  %6181 = vst [vmem:[#allocation10_spill] sm:$0xff] %v4944_v23  ;;  %v4950_v24 = vld [vmem:[%s6050_s11 + $0x94] ss:$12 sps:$4 sm:$0xff]  }
 0x10e   :  { %3711 = vmatpush3.bf16.msra.mxu0 %v4774_v20  ;;  %v4796_v32 = vpack.c.bf16 %v4781_v26, %v4786_v30  ;;  %6182 = vst [vmem:[#allocation11_spill] sm:$0xff] %v4950_v24 }
 0x10f   :  { %v4790_v31 = vpack.c.bf16 %v4783_v27, %v4779_v25 }
 0x111   :  { %3712 = vmatprep.subr.bf16.mxu0 %v4790_v31 }
 0x112   :  { %3713 = vmatpush3.bf16.msra.mxu0 %v4790_v31 }
 0x113   :  { %3714 = vmatprep.subr.bf16.mxu0 %v4796_v32 }
 0x116   :  { %3715 = vmatpush3.bf16.msra.mxu0 %v4796_v32 }
 0x117   :  { %1132 = vmatprep.subr.bf16.mxu0 %v4884_v5 }
 0x119   :  { %3717 = vmatmul.mubr.msk.bf16.vlgmr.msra.gmra.mrb[24].mxu0 %vm789_vm3, %v4808_v39 }
 0x11a   :  { %3720 = vmatprep.mubr.msk.bf16.mxu0 %vm789_vm3, %v4810_v40  ;;  %1133 = vmatpush1.bf16.msra.mxu0 %v4879_v63 }
 0x11b   :  { %1134 = vmatprep.subr.bf16.mxu0 %v4889_v9 }
 0x11e   :  { %1135 = vmatpush1.bf16.msra.mxu0 %v4896_v10 }
 0x11f   :  { %1136 = vmatprep.subr.bf16.mxu0 %v4902_v11 }
 0x121   :  { %3721 = vmatmul.mubr.msk.bf16.gmra.mrb[28].mxu0 %vm789_vm3, %v4824_v47 }
 0x122   :  { %3724 = vmatprep.mubr.msk.bf16.mxu0 %vm789_vm3, %v4826_v48  ;;  %1137 = vmatpush1.bf16.msra.mxu0 %v4908_v12 }
 0x123   :  { %1138 = vmatprep.subr.bf16.mxu0 %v4914_v13 }
 0x126   :  { %1139 = vmatpush1.bf16.msra.mxu0 %v4920_v18 }
 0x127   :  { %1140 = vmatprep.subr.bf16.mxu0 %v4926_v19 }
 0x129   :  { %3725 = vmatmul.mubr.msk.bf16.gmra.mrb[32].mxu0 %vm789_vm3, %v4840_v57 }
 0x12a   :  { %3728 = vmatprep.mubr.msk.bf16.mxu0 %vm789_vm3, %v4842_v58  ;;  %1141 = vmatpush1.bf16.msra.mxu0 %v4932_v21 }
 0x12b   :  { %1142 = vmatprep.subr.bf16.mxu0 %v4938_v22 }
 0x12e   :  { %1143 = vmatpush1.bf16.msra.mxu0 %v4944_v23 }
 0x12f   :  { %1144 = vmatprep.subr.bf16.mxu0 %v4950_v24 }
 0x131   :  { %3729 = vmatmul.mubr.msk.bf16.gmra.mrb[36].mxu0 %vm789_vm3, %v4852_v61 }
 0x132   :  { %1164 = vmatprep.mubr.bf16.mxu0 %v6063_v6  ;;  %1145 = vmatpush1.bf16.msra.mxu0 %v4956_v28 }
 0x1bf   :  { %v3684_v29 = vpop.f32.mrb[0].mxu1 }
 0x1c0   :  { %v528_v33 = vpop.f32.mrb[1].mxu1  ;;  %v4963_v54 = vadd.f32 %v3684_v29, %v3289_v52 }
 0x1c1   :  { %v3685_v34 = vpop.f32.mrb[2].mxu1  ;;  %v4967_v59 = vadd.f32 %v3289_v52, %v528_v33 }
 0x1c2   :  { %v531_v35 = vpop.f32.mrb[3].mxu1  ;;  %6184 = vst [vmem:[#allocation13_spill] sm:$0xff] %v4963_v54  ;;  %v4965_v55 = vadd.f32 %v3685_v34, %v3289_v52 }
 0x1c3   :  { %6186 = vst [vmem:[#allocation15_spill] sm:$0xff] %v4967_v59  ;;  %v4969_v60 = vadd.f32 %v3289_v52, %v531_v35 }
 0x1c4   :  { %6185 = vst [vmem:[#allocation14_spill] sm:$0xff] %v4965_v55 }
 0x1c5   :  { %6187 = vst [vmem:[#allocation16_spill] sm:$0xff] %v4969_v60 }
 0x1c7   :  { %v3688_v36 = vpop.f32.mrb[4].mxu1 }
 0x1c8   :  { %v544_v37 = vpop.f32.mrb[5].mxu1  ;;  %v4975_v34 = vadd.f32 %v3688_v36, %v3289_v52 }
 0x1c9   :  { %v3689_v38 = vpop.f32.mrb[6].mxu1  ;;  %v4979_v22 = vadd.f32 %v3289_v52, %v544_v37 }
 0x1ca   :  { %v547_v41 = vpop.f32.mrb[7].mxu1  ;;  %6188 = vst [vmem:[#allocation17_spill] sm:$0xff] %v4975_v34  ;;  %v4977_v33 = vadd.f32 %v3689_v38, %v3289_v52 }
 0x1cb   :  { %6190 = vst [vmem:[#allocation19_spill] sm:$0xff] %v4979_v22 }
 0x1cc   :  { %6189 = vst [vmem:[#allocation18_spill] sm:$0xff] %v4977_v33 }
 0x1cf   :  { %v3692_v42 = vpop.f32.mrb[8].mxu1 }
 0x1d0   :  { %v560_v43 = vpop.f32.mrb[9].mxu1  ;;  %v4987_v37 = vadd.f32 %v3692_v42, %v3289_v52 }
 0x1d1   :  { %v3693_v44 = vpop.f32.mrb[10].mxu1 }
 0x1d2   :  { %v563_v45 = vpop.f32.mrb[11].mxu1  ;;  %6192 = vst [vmem:[#allocation21_spill] sm:$0xff] %v4987_v37 }
 0x1d7   :  { %v3696_v46 = vpop.f32.mrb[12].mxu1 }
 0x1d8   :  { %v576_v49 = vpop.f32.mrb[13].mxu1 }
 0x1d9   :  { %v3697_v50 = vpop.f32.mrb[14].mxu1 }
 0x1da   :  { %v579_v51 = vpop.f32.mrb[15].mxu1 }
 0x1ec   :  { %v3718_v53 = vpop.f32.mrb[24].mxu0 }
 0x1ed   :  { %v848_v56 = vpop.f32.mrb[25].mxu0  ;;  %v913_v2 = vmul.f32 %v3718_v53, %v4963_v54  ;;  %v4981_v53 = vadd.f32 %v3289_v52, %v547_v41  ;;  %v4989_v41 = vadd.f32 %v3693_v44, %v3289_v52 }
 0x1ee   :  { %v3719_v0 = vpop.f32.mrb[26].mxu0  ;;  %v911_v28 = vmul.f32 %v848_v56, %v4967_v59 }
 0x1ef   :  { %v914_v6 = vmul.f32 %v3719_v0, %v4965_v55  ;;  %v851_v4 = vpop.f32.mrb[27].mxu0  ;;  %6191 = vst [vmem:[#allocation20_spill] sm:$0xff] %v4981_v53  ;;  %6193 = vst [vmem:[#allocation22_spill] sm:$0xff] %v4989_v41 }
 0x1f0   :  { %v912_v61 = vmul.f32 %v851_v4, %v4969_v60  ;;  %v4991_v60 = vadd.f32 %v3289_v52, %v560_v43  ;;  %v4999_v43 = vadd.f32 %v3696_v46, %v3289_v52 }
 0x1f1   :  { %v928_v24 = vpack.c.bf16 %v914_v6, %v913_v2 }
 0x1f2   :  { %v927_v29 = vpack.c.bf16 %v912_v61, %v911_v28  ;;  %6194 = vst [vmem:[#allocation23_spill] sm:$0xff] %v4991_v60  ;;  %6196 = vst [vmem:[#allocation25_spill] sm:$0xff] %v4999_v43 }
 0x1f4   :  { %v3722_v23 = vpop.f32.mrb[28].mxu0  ;;  %3732 = vmatprep.subr.bf16.mxu1 %v927_v29 }
 0x1f5   :  { %v864_v35 = vpop.f32.mrb[29].mxu0  ;;  %3733 = vmatpush3.bf16.msra.mxu1 %v927_v29  ;;  %v917_v56 = vmul.f32 %v3722_v23, %v4975_v34  ;;  %v4993_v23 = vadd.f32 %v3289_v52, %v563_v45  ;;  %v5001_v45 = vadd.f32 %v3697_v50, %v3289_v52 }
 0x1f6   :  { %v3723_v0 = vpop.f32.mrb[30].mxu0  ;;  %3734 = vmatprep.subr.bf16.mxu1 %v928_v24  ;;  %v915_v2 = vmul.f32 %v864_v35, %v4979_v22 }
 0x1f7   :  { %v918_v4 = vmul.f32 %v3723_v0, %v4977_v33  ;;  %v867_v6 = vpop.f32.mrb[31].mxu0  ;;  %6195 = vst [vmem:[#allocation24_spill] sm:$0xff] %v4993_v23  ;;  %6197 = vst [vmem:[#allocation26_spill] sm:$0xff] %v5001_v45 }
 0x1f8   :  { %v916_v61 = vmul.f32 %v867_v6, %v4981_v53 }
 0x1f9   :  { %v930_v28 = vpack.c.bf16 %v918_v4, %v917_v56  ;;  %3735 = vmatpush3.bf16.msra.mxu1 %v928_v24 }
 0x1fa   :  { %v929_v36 = vpack.c.bf16 %v916_v61, %v915_v2 }
 0x1fc   :  { %v3726_v38 = vpop.f32.mrb[32].mxu0  ;;  %3736 = vmatprep.subr.bf16.mxu1 %v929_v36 }
 0x1fd   :  { %v880_v29 = vpop.f32.mrb[33].mxu0  ;;  %3737 = vmatpush3.bf16.msra.mxu1 %v929_v36  ;;  %v921_v35 = vmul.f32 %v3726_v38, %v4987_v37  ;;  %v5003_v36 = vadd.f32 %v3289_v52, %v576_v49  ;;  %v5005_v38 = vadd.f32 %v3289_v52, %v579_v51  ;;  %v187_v49 = vadd.s32 24, %v4858_v62 }
 0x1fe   :  { %v3727_v0 = vpop.f32.mrb[34].mxu0  ;;  %3738 = vmatprep.subr.bf16.mxu1 %v930_v28  ;;  %v919_v4 = vmul.f32 %v880_v29, %v4991_v60  ;;  %v188_v51 = vadd.s32 32, %v4858_v62  ;;  %v189_v52 = vadd.s32 40, %v4858_v62 }
 0x1ff   :  { %v922_v56 = vmul.f32 %v3727_v0, %v4989_v41  ;;  %v883_v24 = vpop.f32.mrb[35].mxu0  ;;  %6198 = vst [vmem:[#allocation27_spill] sm:$0xff] %v5003_v36  ;;  %6199 = vst [vmem:[#allocation28_spill] sm:$0xff] %v5005_v38  ;;  %vm200_vm7 = vcmp.eq.s32.totalorder %v187_v49, %v4864_v1  ;;  %v5106_v49 = vld [vmem:[%s6050_s11 + $0xa8] ss:$12 sps:$4 sm:$0xff]  }
 0x200   :  { %v920_v42 = vmul.f32 %v883_v24, %v4993_v23  ;;  %vm201_vm8 = vcmp.eq.s32.totalorder %v188_v51, %v4864_v1  ;;  %vm202_vm9 = vcmp.eq.s32.totalorder %v189_v52, %v4864_v1  ;;  %6219 = vst [vmem:[#allocation41_spill] sm:$0xff] %v5106_v49  ;;  %v5115_v51 = vld [vmem:[%s6051_s12 + $0x4] ss:$12 sps:$4 sm:$0xff]   ;;  %v5120_v52 = vld [vmem:[%s6051_s12 + $0x8] ss:$12 sps:$4 sm:$0xff]  }
 0x201   :  { %v932_v6 = vpack.c.bf16 %v922_v56, %v921_v35  ;;  %3739 = vmatpush3.bf16.msra.mxu1 %v930_v28  ;;  %vm5028_vm11 = vmpackc.low %vm202_vm9, %vm201_vm8  ;;  %6220 = vst [vmem:[#allocation42_spill] sm:$0xff] %v5115_v51 }
 0x202   :  { %v931_v44 = vpack.c.bf16 %v920_v42, %v919_v4  ;;  %v186_v4 = vadd.s32 16, %v4858_v62  ;;  %v5020_v42 = vld [vmem:[%s6050_s11 + $0x8] ss:$12 sps:$4 sm:$0xff]   ;;  %6221 = vst [vmem:[#allocation43_spill] sm:$0xff] %v5120_v52 }
 0x203   :  { %6200 = vst [vmem:[#allocation29_spill] sm:$0xff] %v5020_v42 }
 0x204   :  { %v3730_v2 = vpop.f32.mrb[36].mxu0  ;;  %3740 = vmatprep.subr.bf16.mxu1 %v931_v44  ;;  %vm199_vm6 = vcmp.eq.s32.totalorder %v186_v4, %v4864_v1  ;;  %v5101_v4 = vld [vmem:[%s6050_s11 + $0xb0] ss:$12 sps:$4 sm:$0xff]  }
 0x205   :  { %v896_v61 = vpop.f32.mrb[37].mxu0  ;;  %3741 = vmatpush3.bf16.msra.mxu1 %v931_v44  ;;  %v925_v29 = vmul.f32 %v3730_v2, %v4999_v43  ;;  %vm5024_vm10 = vmpackc.low %vm200_vm7, %vm199_vm6  ;;  %v6204_v44 = vmov 0  ;;  %v190_v2 = vadd.s32 48, %v4858_v62  ;;  %6218 = vst [vmem:[#allocation40_spill] sm:$0xff] %v5101_v4 }
 0x206   :  { %v3731_v0 = vpop.f32.mrb[38].mxu0  ;;  %3742 = vmatprep.subr.bf16.mxu1 %v932_v6  ;;  %v923_v56 = vmul.f32 %v896_v61, %v5003_v36  ;;  %v6205_v44 = vsel %vm5028_vm11, 4294967295, %v6204_v44  ;;  %v191_v61 = vadd.s32 56, %v4858_v62 }
 0x207   :  { %v926_v35 = vmul.f32 %v3731_v0, %v5001_v45  ;;  %v899_v28 = vpop.f32.mrb[39].mxu0  ;;  %6206 = vst [vmem:[#allocation31_spill] sm:$0xff] %v6205_v44  ;;  %v5038_v0 = vld [vmem:[%s6050_s11 + $0x20] ss:$12 sps:$4 sm:$0xff]   ;;  %vm203_vm12 = vcmp.eq.s32.totalorder %v190_v2, %v4864_v1 }
 0x208   :  { %v924_v46 = vmul.f32 %v899_v28, %v5005_v38  ;;  %6207 = vst [vmem:[#allocation32_spill] sm:$0xff] %v5038_v0  ;;  %vm204_vm13 = vcmp.eq.s32.totalorder %v191_v61, %v4864_v1  ;;  %v6210_v28 = vmov 0  ;;  %v5074_v1 = vld [vmem:[%s6050_s11 + $0x68] ss:$12 sps:$4 sm:$0xff]  }
 0x209   :  { %v934_v24 = vpack.c.bf16 %v926_v35, %v925_v29  ;;  %3743 = vmatpush3.bf16.msra.mxu1 %v932_v6  ;;  %v6201_v6 = vmov 0  ;;  %v6208_v29 = vmov 1.0|1.0   ;;  %v5053_v35 = vld [vmem:[%s6050_s11 + $0x38] ss:$12 sps:$4 sm:$0xff]   ;;  %vm5055_vm14 = vmpackc.low %vm204_vm13, %vm203_vm12  ;;  %6214 = vst [vmem:[#allocation36_spill] sm:$0xff] %v5074_v1 }
 0x20a   :  { %v933_v50 = vpack.c.bf16 %v924_v46, %v923_v56  ;;  %v6202_v6 = vsel %vm5024_vm10, 4294967295, %v6201_v6  ;;  %6209 = vst [vmem:[#allocation33_spill] sm:$0xff] %v5053_v35  ;;  %v6211_v28 = vsel %vm5055_vm14, 4294967295, %v6210_v28  ;;  %v5064_v56 = vld [vmem:[%s6050_s11 + $0x50] ss:$12 sps:$4 sm:$0xff]  }
 0x20b   :  { %6203 = vst [vmem:[#allocation30_spill] sm:$0xff] %v6202_v6  ;;  %6212 = vst [vmem:[#allocation34_spill] sm:$0xff] %v6211_v28  ;;  %v5081_v46 = vld [vmem:[%s6050_s11 + $0x80] ss:$12 sps:$4 sm:$0xff]   ;;  %v5132_v28 = vld [vmem:[%s6051_s12 + $0x1c] ss:$12 sps:$4 sm:$0xff]  }
 0x20c   :  { %3744 = vmatprep.subr.bf16.mxu1 %v933_v50  ;;  %6213 = vst [vmem:[#allocation35_spill] sm:$0xff] %v5064_v56  ;;  %6215 = vst [vmem:[#allocation37_spill] sm:$0xff] %v5081_v46 }
 0x20d   :  { %3745 = vmatpush3.bf16.msra.mxu1 %v933_v50  ;;  %v5096_v50 = vld [vmem:[%s6050_s11 + $0xac] ss:$12 sps:$4 sm:$0xff]   ;;  %6223 = vst [vmem:[#allocation45_spill] sm:$0xff] %v5132_v28 }
 0x20e   :  { %3746 = vmatprep.subr.bf16.mxu1 %v934_v24  ;;  %6217 = vst [vmem:[#allocation39_spill] sm:$0xff] %v5096_v50  ;;  %1146 = vmatprep.subr.bf16.mxu0 %v5096_v50 }
 0x20f   :  { %1147 = vmatpush1.bf16.msra.mxu0 %v5106_v49 }
 0x210   :  { %1398 = vmatprep.subr.bf16.mxu0 %v5115_v51 }
 0x211   :  { %3747 = vmatpush3.bf16.msra.mxu1 %v934_v24  ;;  %v5088_v24 = vld [vmem:[%s6050_s11 + $0x98] ss:$12 sps:$4 sm:$0xff]  }
 0x212   :  { %3756 = vmatprep.subr.bf16.mxu1 %v5020_v42  ;;  %6216 = vst [vmem:[#allocation38_spill] sm:$0xff] %v5088_v24 }
 0x214   :  { %3749 = vmatmul.mubr.msk.bf16.vlgmr.msra.gmra.mrb[16].mxu1 %vm5024_vm10, %v6208_v29 }
 0x215   :  { %3752 = vmatprep.mubr.msk.bf16.mxu1 %vm5028_vm11, %v6208_v29  ;;  %3757 = vmatpush3.bf16.msra.mxu1 %v5020_v42  ;;  %v5171_v42 = vld [vmem:[%s6051_s12 + $0x4c] ss:$12 sps:$4 sm:$0xff]  }
 0x216   :  { %3758 = vmatprep.subr.bf16.mxu1 %v5038_v0  ;;  %6230 = vst [vmem:[#allocation51_spill] sm:$0xff] %v5171_v42 }
 0x219   :  { %3759 = vmatpush3.bf16.msra.mxu1 %v5038_v0 }
 0x21a   :  { %3760 = vmatprep.subr.bf16.mxu1 %v5053_v35 }
 0x21c   :  { %3753 = vmatmul.mubr.msk.bf16.gmra.mrb[20].mxu1 %vm5055_vm14, %v6208_v29 }
 0x21d   :  { %3761 = vmatpush3.bf16.msra.mxu1 %v5053_v35  ;;  %v5137_v35 = vld [vmem:[%s6051_s12 + $0x20] ss:$12 sps:$4 sm:$0xff]  }
 0x21e   :  { %3762 = vmatprep.subr.bf16.mxu1 %v5064_v56  ;;  %6224 = vst [vmem:[#allocation46_spill] sm:$0xff] %v5137_v35 }
 0x221   :  { %3763 = vmatpush3.bf16.msra.mxu1 %v5064_v56 }
 0x222   :  { %3764 = vmatprep.subr.bf16.mxu1 %v5074_v1 }
 0x225   :  { %3765 = vmatpush3.bf16.msra.mxu1 %v5074_v1 }
 0x226   :  { %3766 = vmatprep.subr.bf16.mxu1 %v5081_v46 }
 0x229   :  { %3767 = vmatpush3.bf16.msra.mxu1 %v5081_v46 }
 0x22a   :  { %3768 = vmatprep.subr.bf16.mxu1 %v5088_v24 }
 0x22d   :  { %3769 = vmatpush3.bf16.msra.mxu1 %v5088_v24 }
 0x22e   :  { %3770 = vmatprep.subr.bf16.mxu1 %v5101_v4 }
 0x231   :  { %3771 = vmatpush3.bf16.msra.mxu1 %v5101_v4  ;;  %v5127_v4 = vld [vmem:[%s6051_s12] ss:$12 sps:$4 sm:$0xff]  }
 0x232   :  { %3780 = vmatprep.subr.bf16.mxu1 %v5120_v52  ;;  %6222 = vst [vmem:[#allocation44_spill] sm:$0xff] %v5127_v4 }
 0x2e7   :  { %v3750_v2 = vpop.f32.mrb[16].mxu1 }
 0x2e8   :  { %v969_v61 = vpop.f32.mrb[17].mxu1 }
 0x2e9   :  { %v3751_v24 = vpop.f32.mrb[18].mxu1 }
 0x2ea   :  { %v1001_v46 = vpack.c.bf16 %v3751_v24, %v3750_v2  ;;  %v972_v1 = vpop.f32.mrb[19].mxu1  ;;  %v5143_v24 = vld [vmem:[%s6051_s12 + $0x18] ss:$12 sps:$4 sm:$0xff]   ;;  %v5150_v2 = vld [vmem:[%s6051_s12 + $0x34] ss:$12 sps:$4 sm:$0xff]  }
 0x2eb   :  { %v1000_v56 = vpack.c.bf16 %v972_v1, %v969_v61  ;;  %6225 = vst [vmem:[#allocation47_spill] sm:$0xff] %v5143_v24  ;;  %6226 = vst [vmem:[#allocation48_spill] sm:$0xff] %v5150_v2 }
 0x2ed   :  { %1165 = vmatmul.mubr.bf16.vlgmr.msra.gmra.mrb[40].mxu0 %v1000_v56  ;;  %3772 = vmatprep.mubr.bf16.mxu1 %v1000_v56  ;;  %v6227_v56 = vmov 0  }
 0x2ee   :  { %3773 = vmatmul.mubr.bf16.vlgmr.msra.gmra.mrb[24].mxu1 %v1001_v46  ;;  %1399 = vmatpush1.bf16.msra.mxu0 %v5127_v4  ;;  %v5157_v4 = vld [vmem:[%s6051_s12 + $0x38] ss:$12 sps:$4 sm:$0xff]  }
 0x2ef   :  { %3781 = vmatpush3.bf16.msra.mxu1 %v5120_v52  ;;  %v3754_v1 = vpop.f32.mrb[20].mxu1  ;;  %1400 = vmatprep.subr.bf16.mxu0 %v5132_v28  ;;  %6228 = vst [vmem:[#allocation49_spill] sm:$0xff] %v5157_v4  ;;  %v5163_v28 = vld [vmem:[%s6051_s12 + $0x30] ss:$12 sps:$4 sm:$0xff]  }
 0x2f0   :  { %v985_v61 = vpop.f32.mrb[21].mxu1  ;;  %3782 = vmatprep.subr.bf16.mxu1 %v5137_v35  ;;  %1174 = vmatprep.mubr.bf16.mxu0 %v6227_v56  ;;  %6229 = vst [vmem:[#allocation50_spill] sm:$0xff] %v5163_v28 }
 0x2f1   :  { %v3755_v0 = vpop.f32.mrb[22].mxu1 }
 0x2f2   :  { %v1003_v52 = vpack.c.bf16 %v3755_v0, %v3754_v1  ;;  %v988_v44 = vpop.f32.mrb[23].mxu1  ;;  %1401 = vmatpush1.bf16.msra.mxu0 %v5143_v24  ;;  %v5176_v0 = vld [vmem:[%s6051_s12 + $0x50] ss:$12 sps:$4 sm:$0xff]  }
 0x2f3   :  { %v1002_v6 = vpack.c.bf16 %v988_v44, %v985_v61  ;;  %3783 = vmatpush3.bf16.msra.mxu1 %v5137_v35  ;;  %1402 = vmatprep.subr.bf16.mxu0 %v5150_v2  ;;  %6231 = vst [vmem:[#allocation52_spill] sm:$0xff] %v5176_v0  ;;  %v5182_v44 = vld [vmem:[%s6051_s12 + $0x48] ss:$12 sps:$4 sm:$0xff]   ;;  %v5189_v1 = vld [vmem:[%s6051_s12 + $0x64] ss:$12 sps:$4 sm:$0xff]  }
 0x2f4   :  { %3784 = vmatprep.subr.bf16.mxu1 %v5157_v4  ;;  %6232 = vst [vmem:[#allocation53_spill] sm:$0xff] %v5182_v44  ;;  %6233 = vst [vmem:[#allocation54_spill] sm:$0xff] %v5189_v1  ;;  %v5203_v61 = vld [vmem:[%s6051_s12 + $0x60] ss:$12 sps:$4 sm:$0xff]  }
 0x2f5   :  { %1175 = vmatmul.mubr.bf16.gmra.mrb[44].mxu0 %v1001_v46  ;;  %3776 = vmatprep.mubr.bf16.mxu1 %v1002_v6  ;;  %v5196_v46 = vld [vmem:[%s6051_s12 + $0x68] ss:$12 sps:$4 sm:$0xff]   ;;  %6235 = vst [vmem:[#allocation56_spill] sm:$0xff] %v5203_v61 }
 0x2f6   :  { %3777 = vmatmul.mubr.bf16.gmra.mrb[28].mxu1 %v1003_v52  ;;  %1403 = vmatpush1.bf16.msra.mxu0 %v5163_v28  ;;  %6234 = vst [vmem:[#allocation55_spill] sm:$0xff] %v5196_v46 }
 0x2f7   :  { %3785 = vmatpush3.bf16.msra.mxu1 %v5157_v4  ;;  %3796 = vmatprep.mubr.bf16.mxu1 %v4770_v17 }
 0x2f8   :  { %1404 = vmatprep.subr.bf16.mxu0 %v5171_v42  ;;  %3786 = vmatprep.subr.bf16.mxu1 %v5176_v0  ;;  %v5210_v42 = vld [vmem:[%s6051_s12 + $0x7c] ss:$12 sps:$4 sm:$0xff]  }
 0x2f9   :  { %1184 = vmatprep.mubr.bf16.mxu0 %v6227_v56  ;;  %6236 = vst [vmem:[#allocation57_spill] sm:$0xff] %v5210_v42 }
 0x2fa   :  { %1405 = vmatpush1.bf16.msra.mxu0 %v5182_v44  ;;  %v5216_v44 = vld [vmem:[%s6051_s12 + $0x80] ss:$12 sps:$4 sm:$0xff]  }
 0x2fb   :  { %3787 = vmatpush3.bf16.msra.mxu1 %v5176_v0  ;;  %1406 = vmatprep.subr.bf16.mxu0 %v5189_v1  ;;  %6237 = vst [vmem:[#allocation58_spill] sm:$0xff] %v5216_v44  ;;  %v5222_v0 = vld [vmem:[%s6051_s12 + $0x78] ss:$12 sps:$4 sm:$0xff]   ;;  %v5230_v1 = vld [vmem:[%s6051_s12 + $0x94] ss:$12 sps:$4 sm:$0xff]  }
 0x2fc   :  { %3788 = vmatprep.subr.bf16.mxu1 %v5196_v46  ;;  %6238 = vst [vmem:[#allocation59_spill] sm:$0xff] %v5222_v0  ;;  %6239 = vst [vmem:[#allocation60_spill] sm:$0xff] %v5230_v1 }
 0x2fd   :  { %1185 = vmatmul.mubr.bf16.gmra.mrb[48].mxu0 %v1002_v6  ;;  %v5236_v6 = vld [vmem:[%s6051_s12 + $0x98] ss:$12 sps:$4 sm:$0xff]  }
 0x2fe   :  { %1407 = vmatpush1.bf16.msra.mxu0 %v5203_v61  ;;  %1194 = vmatprep.mubr.bf16.mxu0 %v6227_v56  ;;  %6240 = vst [vmem:[#allocation61_spill] sm:$0xff] %v5236_v6  ;;  %v5242_v61 = vld [vmem:[%s6051_s12 + $0x90] ss:$12 sps:$4 sm:$0xff]  }
 0x2ff   :  { %3789 = vmatpush3.bf16.msra.mxu1 %v5196_v46  ;;  %1408 = vmatprep.subr.bf16.mxu0 %v5210_v42  ;;  %6241 = vst [vmem:[#allocation62_spill] sm:$0xff] %v5242_v61  ;;  %v5249_v42 = vld [vmem:[%s6051_s12 + $0xac] ss:$12 sps:$4 sm:$0xff]  }
 0x300   :  { %3790 = vmatprep.subr.bf16.mxu1 %v5216_v44  ;;  %6242 = vst [vmem:[#allocation63_spill] sm:$0xff] %v5249_v42 }
 0x302   :  { %1409 = vmatpush1.bf16.msra.mxu0 %v5222_v0  ;;  %v5255_v0 = vld [vmem:[%s6051_s12 + $0xb0] ss:$12 sps:$4 sm:$0xff]  }
 0x303   :  { %3791 = vmatpush3.bf16.msra.mxu1 %v5216_v44  ;;  %1410 = vmatprep.subr.bf16.mxu0 %v5230_v1  ;;  %6243 = vst [vmem:[#allocation64_spill] sm:$0xff] %v5255_v0  ;;  %v5261_v44 = vld [vmem:[%s6051_s12 + $0xa8] ss:$12 sps:$4 sm:$0xff]  }
 0x304   :  { %3792 = vmatprep.subr.bf16.mxu1 %v5236_v6  ;;  %6244 = vst [vmem:[#allocation65_spill] sm:$0xff] %v5261_v44 }
 0x305   :  { %1195 = vmatmul.mubr.bf16.gmra.mrb[52].mxu0 %v1003_v52 }
 0x306   :  { %1411 = vmatpush1.bf16.msra.mxu0 %v5242_v61  ;;  %1430 = vmatprep.mubr.bf16.mxu0 %v6227_v56  ;;  %v767_v61 = vsub.s32 1, %v4858_v62 }
 0x307   :  { %3793 = vmatpush3.bf16.msra.mxu1 %v5236_v6  ;;  %1412 = vmatprep.subr.bf16.mxu0 %v5249_v42 }
 0x308   :  { %3794 = vmatprep.subr.bf16.mxu1 %v5255_v0  ;;  %v5307_v1 = vrot.slane %v759_v3, %v767_v61 }
 0x30a   :  { %1413 = vmatpush1.bf16.msra.mxu0 %v5261_v44 }
 0x30b   :  { %3795 = vmatpush3.bf16.msra.mxu1 %v5255_v0 }
 0x30d   :  { %1431 = vmatmul.mubr.bf16.vlgmr.msra.gmra.mrb[40].mxu0 %v4770_v17 }
 0x30e   :  { %3797 = vmatmul.mubr.bf16.vlgmr.msra.gmra.mrb[32].mxu1 %v4774_v20  ;;  %1440 = vmatprep.mubr.bf16.mxu0 %v6227_v56 }
 0x30f   :  { %3800 = vmatprep.mubr.bf16.mxu1 %v4790_v31 }
 0x315   :  { %1441 = vmatmul.mubr.bf16.gmra.mrb[44].mxu0 %v4774_v20 }
 0x316   :  { %3801 = vmatmul.mubr.bf16.gmra.mrb[36].mxu1 %v4796_v32  ;;  %1450 = vmatprep.mubr.bf16.mxu0 %v6227_v56 }
 0x317   :  { %3812 = vmatprep.mubr.msk.bf16.mxu1 %vm789_vm3, %v4750_v7 }
 0x31d   :  { %1451 = vmatmul.mubr.bf16.gmra.mrb[48].mxu0 %v4790_v31 }
 0x31e   :  { %1460 = vmatprep.mubr.bf16.mxu0 %v6227_v56 }
 0x325   :  { %1461 = vmatmul.mubr.bf16.gmra.mrb[52].mxu0 %v4796_v32  ;;  %v763_v32 = vsub.s32 0, %v4858_v62 }
 0x326   :  { %3844 = vmatprep.mubr.msk.bf16.mxu0 %vm4869_vm5, %v6208_v29 }
 0x327   :  { %v5305_v6 = vrot.slane %v759_v3, %v763_v32 }
 0x329   :  { %6245 = vst [vmem:[#allocation66_spill] sm:$0xff] %v5305_v6 }
 0x3c1   :  { %v5284_v17 = vpop.f32.mrb[24].mxu1 }
 0x3c2   :  { %v5286_v20 = vpop.f32.mrb[25].mxu1 }
 0x3c3   :  { %v5288_v52 = vpop.f32.mrb[26].mxu1 }
 0x3c4   :  { %v5290_v44 = vpop.f32.mrb[27].mxu1 }
 0x3c9   :  { %v5292_v0 = vpop.f32.mrb[28].mxu1 }
 0x3ca   :  { %v5294_v7 = vpop.f32.mrb[29].mxu1 }
 0x3cb   :  { %v5296_v31 = vpop.f32.mrb[30].mxu1 }
 0x3cc   :  { %v5298_v42 = vpop.f32.mrb[31].mxu1 }
 0x3e0   :  { %v1432_v46 = vpop.f32.mrb[40].mxu0 }
 0x3e1   :  { %v1552_v28 = vadd.f32 %v1432_v46, %v5305_v6  ;;  %v5310_v4 = vpop.f32.mrb[32].mxu1  ;;  %v1434_v2 = vpop.f32.mrb[41].mxu0 }
 0x3e2   :  { %v1553_v24 = vadd.f32 %v1434_v2, %v5307_v1  ;;  %v5313_v35 = vpop.f32.mrb[33].mxu1  ;;  %v1436_v29 = vpop.f32.mrb[42].mxu0 }
 0x3e3   :  { %v3370_v38 = vmul.f32 -1.442695, %v1552_v28  ;;  %v1554_v36 = vadd.f32 %v1436_v29, %v5305_v6  ;;  %v5316_v45 = vpop.f32.mrb[34].mxu1  ;;  %v1438_v32 = vpop.f32.mrb[43].mxu0 }
 0x3e4   :  { %v3371_v62 = vmul.f32 -1.442695, %v1553_v24  ;;  %v1555_v3 = vadd.f32 %v1438_v32, %v5307_v1  ;;  %v5319_v61 = vpop.f32.mrb[35].mxu1 }
 0x3e5   :  { %4165 = vpow2.f32 %v3370_v38  ;;  %v3372_v46 = vmul.f32 -1.442695, %v1554_v36 }
 0x3e6   :  { %v3373_v43 = vmul.f32 -1.442695, %v1555_v3 }
 0x3e7   :  { %4167 = vpow2.f32 %v3372_v46 }
 0x3e8   :  { %4169 = vpow2.f32 %v3371_v62  ;;  %v1442_v2 = vpop.f32.mrb[44].mxu0 }
 0x3e9   :  { %v1556_v23 = vadd.f32 %v1442_v2, %v5305_v6  ;;  %v5322_v60 = vpop.f32.mrb[36].mxu1  ;;  %v1444_v28 = vpop.f32.mrb[45].mxu0  ;;  %4171 = vpow2.f32 %v3373_v43 }
 0x3ea   :  { %v1557_v29 = vadd.f32 %v1444_v28, %v5307_v1  ;;  %v5325_v41 = vpop.f32.mrb[37].mxu1  ;;  %v1446_v24 = vpop.f32.mrb[46].mxu0 }
 0x3eb   :  { %v3374_v32 = vmul.f32 -1.442695, %v1556_v23  ;;  %v1558_v37 = vadd.f32 %v1446_v24, %v5305_v6  ;;  %v5328_v38 = vpop.f32.mrb[38].mxu1  ;;  %v1448_v36 = vpop.f32.mrb[47].mxu0 }
 0x3ec   :  { %v5330_v3 = vpop.f32.mrb[39].mxu1  ;;  %v3375_v62 = vmul.f32 -1.442695, %v1557_v29  ;;  %v1559_v2 = vadd.f32 %v1448_v36, %v5307_v1 }
 0x3ed   :  { %4173 = vpow2.f32 %v3374_v32  ;;  %v3376_v46 = vmul.f32 -1.442695, %v1558_v37 }
 0x3ee   :  { %v3377_v33 = vmul.f32 -1.442695, %v1559_v2  ;;  %v5339_v2 = vld [vmem:[%s6054_s15] ss:$0 sm:$0xff] }
 0x3ef   :  { %v4166_v53 = vpop.eup %4165  ;;  %4175 = vpow2.f32 %v3376_v46 }
 0x3f0   :  { %v1616_v43 = vadd.f32 1.0, %v4166_v53  ;;  %v1452_v28 = vpop.f32.mrb[48].mxu0  ;;  %4177 = vpow2.f32 %v3375_v62 }
 0x3f1   :  { %v4168_v22 = vpop.eup %4167  ;;  %v1560_v23 = vadd.f32 %v1452_v28, %v5305_v6  ;;  %v1454_v24 = vpop.f32.mrb[49].mxu0 }
 0x3f2   :  { %v4170_v34 = vpop.eup %4169  ;;  %4179 = vrcp.f32 %v1616_v43  ;;  %v1618_v59 = vadd.f32 1.0, %v4168_v22  ;;  %v1456_v55 = vpop.f32.mrb[50].mxu0  ;;  %v1561_v53 = vadd.f32 %v1454_v24, %v5307_v1  ;;  %v1672_v24 = vadd.f32 %v5339_v2, %v5313_v35 }
 0x3f3   :  { %v3378_v54 = vmul.f32 -1.442695, %v1560_v23  ;;  %v1562_v29 = vadd.f32 %v1456_v55, %v5305_v6  ;;  %v1458_v37 = vpop.f32.mrb[51].mxu0  ;;  %v4172_v32 = vpop.eup %4171  ;;  %v1617_v36 = vadd.f32 1.0, %v4170_v34 }
 0x3f4   :  { %4181 = vrcp.f32 %v1618_v59  ;;  %v1619_v22 = vadd.f32 1.0, %v4172_v32  ;;  %v1563_v43 = vadd.f32 %v1458_v37, %v5307_v1  ;;  %v5345_v59 = vld [vmem:[%s6053_s14] ss:$0 sm:$0xff] }
 0x3f5   :  { %4183 = vpow2.f32 %v3377_v33  ;;  %v3380_v46 = vmul.f32 -1.442695, %v1562_v29 }
 0x3f6   :  { %4185 = vpow2.f32 %v3378_v54  ;;  %v3379_v54 = vmul.f32 -1.442695, %v1561_v53  ;;  %v1673_v53 = vadd.f32 %v5339_v2, %v5319_v61 }
 0x3f7   :  { %v4174_v62 = vpop.eup %4173  ;;  %4187 = vpow2.f32 %v3380_v46  ;;  %v3381_v46 = vmul.f32 -1.442695, %v1563_v43 }
 0x3f8   :  { %v1620_v28 = vadd.f32 1.0, %v4174_v62  ;;  %v1462_v55 = vpop.f32.mrb[52].mxu0  ;;  %4189 = vrcp.f32 %v1617_v36  ;;  %v1664_v36 = vadd.f32 %v5345_v59, %v5286_v20 }
 0x3f9   :  { %v4176_v23 = vpop.eup %4175  ;;  %v1564_v34 = vadd.f32 %v1462_v55, %v5305_v6  ;;  %v1464_v33 = vpop.f32.mrb[53].mxu0 }
 0x3fa   :  { %4191 = vrcp.f32 %v1620_v28  ;;  %v1622_v29 = vadd.f32 1.0, %v4176_v23  ;;  %v1466_v37 = vpop.f32.mrb[54].mxu0  ;;  %v4178_v32 = vpop.eup %4177  ;;  %v1565_v35 = vadd.f32 %v1464_v33, %v5307_v1 }
 0x3fb   :  { %4193 = vrcp.f32 %v1619_v22  ;;  %v3382_v62 = vmul.f32 -1.442695, %v1564_v34  ;;  %v1566_v51 = vadd.f32 %v1466_v37, %v5305_v6  ;;  %v1468_v49 = vpop.f32.mrb[55].mxu0  ;;  %v1621_v22 = vadd.f32 1.0, %v4178_v32 }
 0x3fc   :  { %v4180_v50 = vpop.eup %4179  ;;  %4195 = vrcp.f32 %v1622_v29  ;;  %v1665_v34 = vadd.f32 %v5345_v59, %v5290_v44  ;;  %v1567_v61 = vadd.f32 %v1468_v49, %v5307_v1  ;;  %v1674_v29 = vadd.f32 %v5310_v4, %v5339_v2 }
 0x3fd   :  { %v1680_v55 = vmul.f32 %v4180_v50, %v1672_v24  ;;  %4197 = vpow2.f32 %v3379_v54  ;;  %v3384_v28 = vmul.f32 -1.442695, %v1566_v51  ;;  %v3383_v24 = vmul.f32 -1.442695, %v1565_v35 }
 0x3fe   :  { %v4182_v23 = vpop.eup %4181  ;;  %4199 = vpow2.f32 %v3382_v62  ;;  %v1666_v49 = vadd.f32 %v5284_v17, %v5345_v59  ;;  %v1667_v4 = vadd.f32 %v5288_v52, %v5345_v59 }
 0x3ff   :  { %v4184_v43 = vpop.eup %4183  ;;  %v1688_v37 = vadd.f32 %v1680_v55, %v1664_v36  ;;  %v1681_v6 = vmul.f32 %v4182_v23, %v1673_v53  ;;  %4201 = vpow2.f32 %v3381_v46  ;;  %v3385_v46 = vmul.f32 -1.442695, %v1567_v61 }
 0x400   :  { %v4186_v20 = vpop.eup %4185  ;;  %4203 = vpow2.f32 %v3384_v28  ;;  %v1623_v32 = vadd.f32 1.0, %v4184_v43 }
 0x401   :  { %4205 = vtanh.f32 %v1688_v37  ;;  %v1689_v50 = vadd.f32 %v1681_v6, %v1665_v34  ;;  %v1624_v54 = vadd.f32 1.0, %v4186_v20  ;;  %v4188_v33 = vpop.eup %4187  ;;  %v1675_v6 = vadd.f32 %v5316_v45, %v5339_v2 }
 0x402   :  { %4207 = vrcp.f32 %v1621_v22  ;;  %v4190_v51 = vpop.eup %4189  ;;  %v1626_v44 = vadd.f32 1.0, %v4188_v33 }
 0x403   :  { %4209 = vtanh.f32 %v1689_v50  ;;  %v1704_v20 = vsub.f32 1.0, %v4190_v51  ;;  %v1720_v52 = vmul.f32 %v4190_v51, %v4760_v14 }
 0x404   :  { %v4192_v62 = vpop.eup %4191  ;;  %4211 = vrcp.f32 %v1624_v54 }
 0x405   :  { %v4194_v36 = vpop.eup %4193  ;;  %v1682_v53 = vmul.f32 %v4192_v62, %v1674_v29  ;;  %4213 = vpow2.f32 %v3383_v24 }
 0x406   :  { %v4196_v55 = vpop.eup %4195  ;;  %4215 = vrcp.f32 %v1626_v44  ;;  %v1705_v24 = vsub.f32 1.0, %v4194_v36 }
 0x407   :  { %v4198_v35 = vpop.eup %4197  ;;  %v1690_v28 = vadd.f32 %v1682_v53, %v1666_v49  ;;  %v1683_v23 = vmul.f32 %v4196_v55, %v1675_v6  ;;  %4217 = vrcp.f32 %v1623_v32  ;;  %v1676_v32 = vadd.f32 %v5339_v2, %v5325_v41 }
 0x408   :  { %v4200_v22 = vpop.eup %4199  ;;  %4219 = vpow2.f32 %v3385_v46  ;;  %v1625_v61 = vadd.f32 1.0, %v4198_v35  ;;  %v1721_v49 = vmul.f32 %v4194_v36, %v4764_v15  ;;  %v1668_v55 = vadd.f32 %v5345_v59, %v5294_v7 }
 0x409   :  { %v4202_v43 = vpop.eup %4201  ;;  %4221 = vtanh.f32 %v1690_v28  ;;  %v1691_v34 = vadd.f32 %v1683_v23, %v1667_v4  ;;  %v1628_v17 = vadd.f32 1.0, %v4200_v22  ;;  %v1677_v35 = vadd.f32 %v5339_v2, %v5330_v3 }
 0x40a   :  { %v4204_v37 = vpop.eup %4203  ;;  %v1627_v44 = vadd.f32 1.0, %v4202_v43  ;;  %v1669_v28 = vadd.f32 %v5345_v59, %v5298_v42 }
 0x40b   :  { %v4206_v45 = vpop.eup %4205  ;;  %4223 = vtanh.f32 %v1691_v34  ;;  %v1630_v50 = vadd.f32 1.0, %v4204_v37 }
 0x40c   :  { %v4208_v54 = vpop.eup %4207  ;;  %4225 = vrcp.f32 %v1628_v17  ;;  %v1712_v33 = vmul.f32 %v4206_v45, %v1704_v20  ;;  %v1678_v45 = vadd.f32 %v5322_v60, %v5339_v2 }
 0x40d   :  { %v4210_v29 = vpop.eup %4209  ;;  %4227 = vrcp.f32 %v1630_v50  ;;  %v1706_v7 = vsub.f32 1.0, %v4208_v54  ;;  %v1722_v20 = vmul.f32 %v4208_v54, %v4766_v16  ;;  %v1679_v16 = vadd.f32 %v5328_v38, %v5339_v2 }
 0x40e   :  { %v4212_v62 = vpop.eup %4211  ;;  %v1713_v46 = vmul.f32 %v4210_v29, %v1705_v24  ;;  %v5371_v6 = vadd.f32 %v1720_v52, %v1712_v33  ;;  %4229 = vrcp.f32 %v1625_v61  ;;  %v1670_v29 = vadd.f32 %v5292_v0, %v5345_v59 }
 0x40f   :  { %v4214_v53 = vpop.eup %4213  ;;  %v1684_v14 = vmul.f32 %v4212_v62, %v1676_v32  ;;  %4231 = vrcp.f32 %v1627_v44  ;;  %v1671_v62 = vadd.f32 %v5296_v31, %v5345_v59 }
 0x410   :  { %v4216_v51 = vpop.eup %4215  ;;  %v5377_v4 = vadd.f32 %v1721_v49, %v1713_v46  ;;  %v1629_v34 = vadd.f32 1.0, %v4214_v53 }
 0x411   :  { %v4218_v41 = vpop.eup %4217  ;;  %v1692_v23 = vadd.f32 %v1684_v14, %v1668_v55  ;;  %v1685_v15 = vmul.f32 %v4216_v51, %v1677_v35 }
 0x412   :  { %v4220_v36 = vpop.eup %4219  ;;  %v5383_v22 = vpack.c.bf16 %v5377_v4, %v5371_v6  ;;  %v1707_v17 = vsub.f32 1.0, %v4218_v41  ;;  %v1723_v33 = vmul.f32 %v4218_v41, %v4762_v8 }
 0x413   :  { %v4222_v43 = vpop.eup %4221  ;;  %4233 = vtanh.f32 %v1692_v23  ;;  %v1693_v3 = vadd.f32 %v1685_v15, %v1669_v28  ;;  %v1631_v61 = vadd.f32 1.0, %v4220_v36 }
 0x414   :  { %3804 = vmatprep.subr.bf16.mxu1 %v5383_v22  ;;  %v1714_v37 = vmul.f32 %v4222_v43, %v1706_v7 }
 0x415   :  { %v4224_v42 = vpop.eup %4223  ;;  %4235 = vtanh.f32 %v1693_v3  ;;  %3805 = vmatpush3.bf16.msra.mxu1 %v5383_v22 }
 0x416   :  { %v4226_v50 = vpop.eup %4225  ;;  %v1715_v24 = vmul.f32 %v4224_v42, %v1707_v17  ;;  %v5391_v52 = vadd.f32 %v1722_v20, %v1714_v37  ;;  %4237 = vrcp.f32 %v1629_v34 }
 0x417   :  { %v1686_v54 = vmul.f32 %v4226_v50, %v1678_v45  ;;  %v4228_v32 = vpop.eup %4227  ;;  %4239 = vrcp.f32 %v1631_v61 }
 0x418   :  { %v5397_v60 = vadd.f32 %v1723_v33, %v1715_v24  ;;  %v4230_v44 = vpop.eup %4229  ;;  %v1687_v49 = vmul.f32 %v4228_v32, %v1679_v16  ;;  %v6255_v33 = vld [vmem:[#allocation14_spill] sm:$0xff] }
 0x419   :  { %v1694_v46 = vadd.f32 %v1686_v54, %v1670_v29  ;;  %v4232_v0 = vpop.eup %4231  ;;  %v1708_v38 = vsub.f32 1.0, %v4230_v44  ;;  %v1724_v31 = vmul.f32 %v4230_v44, %v4779_v25  ;;  %v6256_v54 = vld [vmem:[#allocation15_spill] sm:$0xff]  ;;  %v6257_v44 = vld [vmem:[#allocation16_spill] sm:$0xff] }
 0x41a   :  { %v5403_v8 = vpack.c.bf16 %v5397_v60, %v5391_v52  ;;  %v1695_v53 = vadd.f32 %v1687_v49, %v1671_v62  ;;  %v1709_v35 = vsub.f32 1.0, %v4232_v0  ;;  %v1725_v28 = vmul.f32 %v4232_v0, %v4783_v27 }
 0x41b   :  { %4241 = vtanh.f32 %v1694_v46 }
 0x41c   :  { %3806 = vmatprep.subr.bf16.mxu1 %v5403_v8  ;;  %4243 = vtanh.f32 %v1695_v53 }
 0x41d   :  { %v4234_v55 = vpop.eup %4233  ;;  %3807 = vmatpush3.bf16.msra.mxu1 %v5403_v8 }
 0x41e   :  { %v1716_v14 = vmul.f32 %v4234_v55, %v1708_v38  ;;  %v6258_v55 = vld [vmem:[#allocation17_spill] sm:$0xff] }
 0x41f   :  { %v4236_v51 = vpop.eup %4235 }
 0x420   :  { %v1717_v41 = vmul.f32 %v4236_v51, %v1709_v35  ;;  %v5409_v23 = vadd.f32 %v1724_v31, %v1716_v14  ;;  %v4238_v15 = vpop.eup %4237  ;;  %v6259_v14 = vld [vmem:[#allocation18_spill] sm:$0xff] }
 0x421   :  { %v4240_v7 = vpop.eup %4239  ;;  %v1710_v3 = vsub.f32 1.0, %v4238_v15  ;;  %v1726_v37 = vmul.f32 %v4238_v15, %v4786_v30  ;;  %v6247_v30 = vld [vmem:[#allocation10_spill] sm:$0xff]  ;;  %v6261_v15 = vld [vmem:[#allocation20_spill] sm:$0xff] }
 0x422   :  { %v5411_v36 = vadd.f32 %v1725_v28, %v1717_v41  ;;  %v1711_v17 = vsub.f32 1.0, %v4240_v7  ;;  %v1727_v42 = vmul.f32 %v4240_v7, %v4781_v26  ;;  %v6246_v26 = vld [vmem:[#allocation9_spill] sm:$0xff]  ;;  %v6260_v41 = vld [vmem:[#allocation19_spill] sm:$0xff] }
 0x424   :  { %v5415_v43 = vpack.c.bf16 %v5411_v36, %v5409_v23 }
 0x425   :  { %v4242_v34 = vpop.eup %4241 }
 0x426   :  { %3808 = vmatprep.subr.bf16.mxu1 %v5415_v43  ;;  %v1718_v25 = vmul.f32 %v4242_v34, %v1710_v3  ;;  %v4244_v20 = vpop.eup %4243 }
 0x427   :  { %3809 = vmatpush3.bf16.msra.mxu1 %v5415_v43  ;;  %v1719_v27 = vmul.f32 %v4244_v20, %v1711_v17  ;;  %v6262_v20 = vld [vmem:[#allocation21_spill] sm:$0xff] }
 0x428   :  { %v5421_v45 = vadd.f32 %v1726_v37, %v1718_v25 }
 0x429   :  { %v5423_v61 = vadd.f32 %v1727_v42, %v1719_v27  ;;  %v6263_v42 = vld [vmem:[#allocation22_spill] sm:$0xff] }
 0x42b   :  { %v5427_v50 = vpack.c.bf16 %v5423_v61, %v5421_v45 }
 0x42d   :  { %3810 = vmatprep.subr.bf16.mxu1 %v5427_v50 }
 0x42e   :  { %3811 = vmatpush3.bf16.msra.mxu1 %v5427_v50 }
 0x42f   :  { %1930 = vmatprep.subr.bf16.mxu1 %v4884_v5  ;;  %v6249_v5 = vld [vmem:[#allocation6_spill] sm:$0xff] }
 0x431   :  { %3813 = vmatmul.mubr.msk.bf16.vlgmr.msra.gmra.mrb[40].mxu1 %vm789_vm3, %v4808_v39 }
 0x432   :  { %3816 = vmatprep.mubr.msk.bf16.mxu1 %vm789_vm3, %v4810_v40  ;;  %1931 = vmatpush1.bf16.msra.mxu1 %v4879_v63  ;;  %v6248_v63 = vld [vmem:[#allocation11_spill] sm:$0xff] }
 0x433   :  { %1932 = vmatprep.subr.bf16.mxu1 %v4889_v9  ;;  %v6250_v9 = vld [vmem:[#allocation12_spill] sm:$0xff] }
 0x436   :  { %1933 = vmatpush1.bf16.msra.mxu1 %v4896_v10  ;;  %v6251_v10 = vld [vmem:[#allocation39_spill] sm:$0xff] }
 0x437   :  { %1934 = vmatprep.subr.bf16.mxu1 %v4902_v11  ;;  %v6252_v11 = vld [vmem:[#allocation41_spill] sm:$0xff] }
 0x439   :  { %3817 = vmatmul.mubr.msk.bf16.gmra.mrb[44].mxu1 %vm789_vm3, %v4824_v47 }
 0x43a   :  { %3820 = vmatprep.mubr.msk.bf16.mxu1 %vm789_vm3, %v4826_v48  ;;  %1935 = vmatpush1.bf16.msra.mxu1 %v4908_v12  ;;  %v6253_v12 = vld [vmem:[#allocation42_spill] sm:$0xff] }
 0x43b   :  { %1936 = vmatprep.subr.bf16.mxu1 %v4914_v13 }
 0x43e   :  { %1937 = vmatpush1.bf16.msra.mxu1 %v4920_v18 }
 0x43f   :  { %1938 = vmatprep.subr.bf16.mxu1 %v4926_v19 }
 0x441   :  { %3821 = vmatmul.mubr.msk.bf16.gmra.mrb[48].mxu1 %vm789_vm3, %v4840_v57 }
 0x442   :  { %3824 = vmatprep.mubr.msk.bf16.mxu1 %vm789_vm3, %v4842_v58  ;;  %1939 = vmatpush1.bf16.msra.mxu1 %v4932_v21  ;;  %v6254_v21 = vld [vmem:[#allocation13_spill] sm:$0xff] }
 0x443   :  { %1940 = vmatprep.subr.bf16.mxu1 %v6246_v26 }
 0x446   :  { %1941 = vmatpush1.bf16.msra.mxu1 %v6247_v30 }
 0x447   :  { %1942 = vmatprep.subr.bf16.mxu1 %v6248_v63  ;;  %v6264_v63 = vld [vmem:[#allocation23_spill] sm:$0xff] }
 0x449   :  { %3825 = vmatmul.mubr.msk.bf16.gmra.mrb[52].mxu1 %vm789_vm3, %v6249_v5 }
 0x44a   :  { %1943 = vmatpush1.bf16.msra.mxu1 %v6250_v9  ;;  %1962 = vmatprep.mubr.bf16.mxu1 %v6227_v56 }
 0x44b   :  { %1944 = vmatprep.subr.bf16.mxu1 %v6251_v10  ;;  %v6265_v10 = vld [vmem:[#allocation24_spill] sm:$0xff] }
 0x44e   :  { %1945 = vmatpush1.bf16.msra.mxu1 %v6252_v11 }
 0x44f   :  { %2068 = vmatprep.subr.bf16.mxu1 %v6253_v12 }
 0x504   :  { %v3814_v13 = vpop.f32.mrb[40].mxu1 }
 0x505   :  { %v1774_v18 = vpop.f32.mrb[41].mxu1  ;;  %v1839_v24 = vmul.f32 %v3814_v13, %v6254_v21 }
 0x506   :  { %v3815_v19 = vpop.f32.mrb[42].mxu1  ;;  %v1837_v32 = vmul.f32 %v1774_v18, %v6256_v54 }
 0x507   :  { %v1840_v29 = vmul.f32 %v3815_v19, %v6255_v33  ;;  %v1777_v16 = vpop.f32.mrb[43].mxu1 }
 0x508   :  { %v1838_v62 = vmul.f32 %v1777_v16, %v6257_v44 }
 0x509   :  { %v1854_v46 = vpack.c.bf16 %v1840_v29, %v1839_v24  ;;  %v6266_v29 = vld [vmem:[#allocation25_spill] sm:$0xff] }
 0x50a   :  { %v1853_v49 = vpack.c.bf16 %v1838_v62, %v1837_v32  ;;  %v6267_v32 = vld [vmem:[#allocation26_spill] sm:$0xff] }
 0x50c   :  { %v3818_v0 = vpop.f32.mrb[44].mxu1  ;;  %3828 = vmatprep.subr.bf16.mxu0 %v1853_v49 }
 0x50d   :  { %v1790_v53 = vpop.f32.mrb[45].mxu1  ;;  %3829 = vmatpush3.bf16.msra.mxu0 %v1853_v49  ;;  %v1843_v35 = vmul.f32 %v3818_v0, %v6258_v55  ;;  %v6268_v49 = vld [vmem:[#allocation27_spill] sm:$0xff] }
 0x50e   :  { %v3819_v38 = vpop.f32.mrb[46].mxu1  ;;  %3830 = vmatprep.subr.bf16.mxu0 %v1854_v46  ;;  %v1841_v28 = vmul.f32 %v1790_v53, %v6260_v41  ;;  %v6269_v53 = vld [vmem:[#allocation28_spill] sm:$0xff] }
 0x50f   :  { %v1844_v31 = vmul.f32 %v3819_v38, %v6259_v14  ;;  %v1793_v51 = vpop.f32.mrb[47].mxu1 }
 0x510   :  { %v1842_v7 = vmul.f32 %v1793_v51, %v6261_v15  ;;  %v6270_v51 = vld [vmem:[#allocation29_spill] sm:$0xff] }
 0x511   :  { %v1856_v3 = vpack.c.bf16 %v1844_v31, %v1843_v35  ;;  %3831 = vmatpush3.bf16.msra.mxu0 %v1854_v46 }
 0x512   :  { %v1855_v34 = vpack.c.bf16 %v1842_v7, %v1841_v28  ;;  %v6271_v28 = vmov 1.0|1.0  }
 0x514   :  { %v3822_v17 = vpop.f32.mrb[48].mxu1  ;;  %3832 = vmatprep.subr.bf16.mxu0 %v1855_v34 }
 0x515   :  { %v1806_v25 = vpop.f32.mrb[49].mxu1  ;;  %3833 = vmatpush3.bf16.msra.mxu0 %v1855_v34  ;;  %v1847_v27 = vmul.f32 %v3822_v17, %v6262_v20  ;;  %v6274_v34 = vld [vmem:[#allocation32_spill] sm:$0xff]  ;;  %v6275_v17 = vld [vmem:[#allocation33_spill] sm:$0xff] }
 0x516   :  { %v3823_v37 = vpop.f32.mrb[50].mxu1  ;;  %3834 = vmatprep.subr.bf16.mxu0 %v1856_v3  ;;  %v1845_v9 = vmul.f32 %v1806_v25, %v6264_v63 }
 0x517   :  { %v1848_v26 = vmul.f32 %v3823_v37, %v6263_v42  ;;  %v1809_v30 = vpop.f32.mrb[51].mxu1  ;;  %v6277_v37 = vld [vmem:[#allocation35_spill] sm:$0xff] }
 0x518   :  { %v1846_v11 = vmul.f32 %v1809_v30, %v6265_v10  ;;  %v6280_v30 = vld [vmem:[#allocation38_spill] sm:$0xff] }
 0x519   :  { %v1858_v12 = vpack.c.bf16 %v1848_v26, %v1847_v27  ;;  %3835 = vmatpush3.bf16.msra.mxu0 %v1856_v3  ;;  %v6278_v27 = vld [vmem:[#allocation36_spill] sm:$0xff]  ;;  %v6279_v26 = vld [vmem:[#allocation37_spill] sm:$0xff] }
 0x51a   :  { %v1857_v13 = vpack.c.bf16 %v1846_v11, %v1845_v9  ;;  %v6281_v9 = vld [vmem:[#allocation40_spill] sm:$0xff]  ;;  %v6282_v11 = vld [vmem:[#allocation43_spill] sm:$0xff] }
 0x51c   :  { %v3826_v18 = vpop.f32.mrb[52].mxu1  ;;  %3836 = vmatprep.subr.bf16.mxu0 %v1857_v13 }
 0x51d   :  { %v1822_v19 = vpop.f32.mrb[53].mxu1  ;;  %3837 = vmatpush3.bf16.msra.mxu0 %v1857_v13  ;;  %v1851_v16 = vmul.f32 %v3826_v18, %v6266_v29 }
 0x51e   :  { %v3827_v24 = vpop.f32.mrb[54].mxu1  ;;  %3838 = vmatprep.subr.bf16.mxu0 %v1858_v12  ;;  %v1849_v0 = vmul.f32 %v1822_v19, %v6268_v49 }
 0x51f   :  { %v1852_v62 = vmul.f32 %v3827_v24, %v6267_v32  ;;  %v1825_v46 = vpop.f32.mrb[55].mxu1 }
 0x520   :  { %v1850_v38 = vmul.f32 %v1825_v46, %v6269_v53 }
 0x521   :  { %v1860_v35 = vpack.c.bf16 %v1852_v62, %v1851_v16  ;;  %3839 = vmatpush3.bf16.msra.mxu0 %v1858_v12  ;;  %v6283_v62 = vld [vmem:[#allocation44_spill] sm:$0xff] }
 0x522   :  { %v1859_v31 = vpack.c.bf16 %v1850_v38, %v1849_v0  ;;  %v6284_v0 = vld [vmem:[#allocation45_spill] sm:$0xff] }
 0x524   :  { %3840 = vmatprep.subr.bf16.mxu0 %v1859_v31 }
 0x525   :  { %3841 = vmatpush3.bf16.msra.mxu0 %v1859_v31 }
 0x526   :  { %3842 = vmatprep.subr.bf16.mxu0 %v1860_v35 }
 0x529   :  { %3843 = vmatpush3.bf16.msra.mxu0 %v1860_v35  ;;  %v6285_v35 = vld [vmem:[#allocation46_spill] sm:$0xff] }
 0x52a   :  { %3852 = vmatprep.subr.bf16.mxu0 %v6270_v51 }
 0x52c   :  { %3845 = vmatmul.mubr.msk.bf16.vlgmr.msra.gmra.mrb[56].mxu0 %vm5024_vm10, %v6271_v28 }
 0x52d   :  { %3848 = vmatprep.mubr.msk.bf16.mxu0 %vm5028_vm11, %v6271_v28  ;;  %3853 = vmatpush3.bf16.msra.mxu0 %v6270_v51 }
 0x52e   :  { %3854 = vmatprep.subr.bf16.mxu0 %v6274_v34 }
 0x531   :  { %3855 = vmatpush3.bf16.msra.mxu0 %v6274_v34 }
 0x532   :  { %3856 = vmatprep.subr.bf16.mxu0 %v6275_v17 }
 0x534   :  { %3849 = vmatmul.mubr.msk.bf16.gmra.mrb[60].mxu0 %vm5055_vm14, %v6271_v28 }
 0x535   :  { %3857 = vmatpush3.bf16.msra.mxu0 %v6275_v17  ;;  %v6286_v17 = vld [vmem:[#allocation47_spill] sm:$0xff] }
 0x536   :  { %3858 = vmatprep.subr.bf16.mxu0 %v6277_v37 }
 0x539   :  { %3859 = vmatpush3.bf16.msra.mxu0 %v6277_v37 }
 0x53a   :  { %3860 = vmatprep.subr.bf16.mxu0 %v6278_v27 }
 0x53d   :  { %3861 = vmatpush3.bf16.msra.mxu0 %v6278_v27  ;;  %v6287_v27 = vld [vmem:[#allocation48_spill] sm:$0xff] }
 0x53e   :  { %3862 = vmatprep.subr.bf16.mxu0 %v6279_v26 }
 0x541   :  { %3863 = vmatpush3.bf16.msra.mxu0 %v6279_v26  ;;  %v6288_v26 = vld [vmem:[#allocation49_spill] sm:$0xff] }
 0x542   :  { %3864 = vmatprep.subr.bf16.mxu0 %v6280_v30 }
 0x545   :  { %3865 = vmatpush3.bf16.msra.mxu0 %v6280_v30  ;;  %v6289_v30 = vld [vmem:[#allocation50_spill] sm:$0xff] }
 0x546   :  { %3866 = vmatprep.subr.bf16.mxu0 %v6281_v9 }
 0x549   :  { %3867 = vmatpush3.bf16.msra.mxu0 %v6281_v9  ;;  %v6290_v9 = vld [vmem:[#allocation51_spill] sm:$0xff] }
 0x54a   :  { %3876 = vmatprep.subr.bf16.mxu0 %v6282_v11 }
 0x5ff   :  { %v3846_v12 = vpop.f32.mrb[56].mxu0 }
 0x600   :  { %v1895_v13 = vpop.f32.mrb[57].mxu0 }
 0x601   :  { %v3847_v18 = vpop.f32.mrb[58].mxu0 }
 0x602   :  { %v1927_v19 = vpack.c.bf16 %v3847_v18, %v3846_v12  ;;  %v1898_v24 = vpop.f32.mrb[59].mxu0  ;;  %v6292_v12 = vld [vmem:[#allocation53_spill] sm:$0xff]  ;;  %v6294_v18 = vld [vmem:[#allocation55_spill] sm:$0xff] }
 0x603   :  { %v1926_v16 = vpack.c.bf16 %v1898_v24, %v1895_v13  ;;  %v6293_v13 = vld [vmem:[#allocation54_spill] sm:$0xff]  ;;  %v6296_v24 = vld [vmem:[#allocation57_spill] sm:$0xff] }
 0x605   :  { %1963 = vmatmul.mubr.bf16.vlgmr.msra.gmra.mrb[56].mxu1 %v1926_v16  ;;  %3868 = vmatprep.mubr.bf16.mxu0 %v1926_v16  ;;  %v6297_v16 = vld [vmem:[#allocation58_spill] sm:$0xff] }
 0x606   :  { %3869 = vmatmul.mubr.bf16.vlgmr.msra.gmra.mrb[64].mxu0 %v1927_v19  ;;  %2069 = vmatpush1.bf16.msra.mxu1 %v6283_v62  ;;  %v6298_v62 = vld [vmem:[#allocation59_spill] sm:$0xff] }
 0x607   :  { %3877 = vmatpush3.bf16.msra.mxu0 %v6282_v11  ;;  %v3850_v46 = vpop.f32.mrb[60].mxu0  ;;  %2070 = vmatprep.subr.bf16.mxu1 %v6284_v0  ;;  %v6291_v11 = vld [vmem:[#allocation52_spill] sm:$0xff]  ;;  %v6300_v0 = vld [vmem:[#allocation61_spill] sm:$0xff] }
 0x608   :  { %v1911_v38 = vpop.f32.mrb[61].mxu0  ;;  %3878 = vmatprep.subr.bf16.mxu0 %v6285_v35  ;;  %1972 = vmatprep.mubr.bf16.mxu1 %v6227_v56 }
 0x609   :  { %v3851_v31 = vpop.f32.mrb[62].mxu0 }
 0x60a   :  { %v1929_v51 = vpack.c.bf16 %v3851_v31, %v3850_v46  ;;  %v1914_v34 = vpop.f32.mrb[63].mxu0  ;;  %2071 = vmatpush1.bf16.msra.mxu1 %v6286_v17  ;;  %v6299_v46 = vld [vmem:[#allocation60_spill] sm:$0xff] }
 0x60b   :  { %v1928_v37 = vpack.c.bf16 %v1914_v34, %v1911_v38  ;;  %3879 = vmatpush3.bf16.msra.mxu0 %v6285_v35  ;;  %2072 = vmatprep.subr.bf16.mxu1 %v6287_v27  ;;  %v6301_v38 = vld [vmem:[#allocation62_spill] sm:$0xff]  ;;  %v6302_v35 = vld [vmem:[#allocation63_spill] sm:$0xff]  ;;  %v6303_v31 = vld [vmem:[#allocation64_spill] sm:$0xff] }
 0x60c   :  { %3880 = vmatprep.subr.bf16.mxu0 %v6288_v26  ;;  %v6304_v34 = vld [vmem:[#allocation65_spill] sm:$0xff] }
 0x60d   :  { %1973 = vmatmul.mubr.bf16.gmra.mrb[60].mxu1 %v1927_v19  ;;  %3872 = vmatprep.mubr.bf16.mxu0 %v1928_v37  ;;  %v6295_v19 = vld [vmem:[#allocation56_spill] sm:$0xff] }
 0x60e   :  { %3873 = vmatmul.mubr.bf16.gmra.mrb[68].mxu0 %v1929_v51  ;;  %2073 = vmatpush1.bf16.msra.mxu1 %v6289_v30 }
 0x60f   :  { %3881 = vmatpush3.bf16.msra.mxu0 %v6288_v26  ;;  %3892 = vmatprep.mubr.bf16.mxu0 %v5383_v22 }
 0x610   :  { %2074 = vmatprep.subr.bf16.mxu1 %v6290_v9  ;;  %3882 = vmatprep.subr.bf16.mxu0 %v6291_v11 }
 0x611   :  { %1982 = vmatprep.mubr.bf16.mxu1 %v6227_v56 }
 0x612   :  { %2075 = vmatpush1.bf16.msra.mxu1 %v6292_v12 }
 0x613   :  { %3883 = vmatpush3.bf16.msra.mxu0 %v6291_v11  ;;  %2076 = vmatprep.subr.bf16.mxu1 %v6293_v13  ;;  %v6307_v11 = vld [vmem:[#allocation66_spill] sm:$0xff] }
 0x614   :  { %3884 = vmatprep.subr.bf16.mxu0 %v6294_v18 }
 0x615   :  { %1983 = vmatmul.mubr.bf16.gmra.mrb[64].mxu1 %v1928_v37 }
 0x616   :  { %2077 = vmatpush1.bf16.msra.mxu1 %v6295_v19  ;;  %1992 = vmatprep.mubr.bf16.mxu1 %v6227_v56 }
 0x617   :  { %3885 = vmatpush3.bf16.msra.mxu0 %v6294_v18  ;;  %2078 = vmatprep.subr.bf16.mxu1 %v6296_v24 }
 0x618   :  { %3886 = vmatprep.subr.bf16.mxu0 %v6297_v16 }
 0x61a   :  { %2079 = vmatpush1.bf16.msra.mxu1 %v6298_v62 }
 0x61b   :  { %3887 = vmatpush3.bf16.msra.mxu0 %v6297_v16  ;;  %2080 = vmatprep.subr.bf16.mxu1 %v6299_v46 }
 0x61c   :  { %3888 = vmatprep.subr.bf16.mxu0 %v6300_v0 }
 0x61d   :  { %1993 = vmatmul.mubr.bf16.gmra.mrb[68].mxu1 %v1929_v51  ;;  %v6305_v51 = vld [vmem:[#allocation5_spill] sm:$0xff] }
 0x61e   :  { %2081 = vmatpush1.bf16.msra.mxu1 %v6301_v38  ;;  %2100 = vmatprep.mubr.bf16.mxu1 %v6227_v56 }
 0x61f   :  { %3889 = vmatpush3.bf16.msra.mxu0 %v6300_v0  ;;  %2082 = vmatprep.subr.bf16.mxu1 %v6302_v35 }
 0x620   :  { %3890 = vmatprep.subr.bf16.mxu0 %v6303_v31 }
 0x622   :  { %2083 = vmatpush1.bf16.msra.mxu1 %v6304_v34 }
 0x623   :  { %3891 = vmatpush3.bf16.msra.mxu0 %v6303_v31 }
 0x625   :  { %2101 = vmatmul.mubr.bf16.vlgmr.msra.gmra.mrb[56].mxu1 %v5383_v22 }
 0x626   :  { %3893 = vmatmul.mubr.bf16.vlgmr.msra.gmra.mrb[72].mxu0 %v5403_v8  ;;  %2110 = vmatprep.mubr.bf16.mxu1 %v6227_v56 }
 0x627   :  { %3896 = vmatprep.mubr.bf16.mxu0 %v5415_v43 }
 0x62d   :  { %2111 = vmatmul.mubr.bf16.gmra.mrb[60].mxu1 %v5403_v8 }
 0x62e   :  { %3897 = vmatmul.mubr.bf16.gmra.mrb[76].mxu0 %v5427_v50  ;;  %2120 = vmatprep.mubr.bf16.mxu1 %v6227_v56 }
 0x62f   :  { %3908 = vmatprep.mubr.msk.bf16.mxu0 %vm789_vm3, %v6305_v51 }
 0x635   :  { %2121 = vmatmul.mubr.bf16.gmra.mrb[64].mxu1 %v5415_v43 }
 0x636   :  { %2130 = vmatprep.mubr.bf16.mxu1 %v6227_v56 }
 0x63d   :  { %2131 = vmatmul.mubr.bf16.gmra.mrb[68].mxu1 %v5427_v50 }
 0x63e   :  { %3940 = vmatprep.mubr.msk.bf16.mxu1 %vm4869_vm5, %v6271_v28 }
 0x6d9   :  { %v5555_v17 = vpop.f32.mrb[64].mxu0 }
 0x6da   :  { %v5557_v8 = vpop.f32.mrb[65].mxu0 }
 0x6db   :  { %v5559_v37 = vpop.f32.mrb[66].mxu0 }
 0x6dc   :  { %v5561_v27 = vpop.f32.mrb[67].mxu0 }
 0x6e1   :  { %v5563_v26 = vpop.f32.mrb[68].mxu0 }
 0x6e2   :  { %v5565_v30 = vpop.f32.mrb[69].mxu0 }
 0x6e3   :  { %v5567_v43 = vpop.f32.mrb[70].mxu0 }
 0x6e4   :  { %v5569_v9 = vpop.f32.mrb[71].mxu0 }
 0x6f8   :  { %v2102_v50 = vpop.f32.mrb[56].mxu1 }
 0x6f9   :  { %v2222_v12 = vadd.f32 %v2102_v50, %v6307_v11  ;;  %v5572_v13 = vpop.f32.mrb[72].mxu0  ;;  %v2104_v18 = vpop.f32.mrb[57].mxu1 }
 0x6fa   :  { %v2223_v19 = vadd.f32 %v2104_v18, %v5307_v1  ;;  %v5575_v24 = vpop.f32.mrb[73].mxu0  ;;  %v2106_v16 = vpop.f32.mrb[58].mxu1 }
 0x6fb   :  { %v3402_v62 = vmul.f32 -1.442695, %v2222_v12  ;;  %v2224_v46 = vadd.f32 %v2106_v16, %v6307_v11  ;;  %v5578_v0 = vpop.f32.mrb[74].mxu0  ;;  %v2108_v38 = vpop.f32.mrb[59].mxu1 }
 0x6fc   :  { %v3403_v35 = vmul.f32 -1.442695, %v2223_v19  ;;  %v2225_v31 = vadd.f32 %v2108_v38, %v5307_v1  ;;  %v5581_v34 = vpop.f32.mrb[75].mxu0 }
 0x6fd   :  { %4245 = vpow2.f32 %v3402_v62  ;;  %v3404_v51 = vmul.f32 -1.442695, %v2224_v46 }
 0x6fe   :  { %v3405_v22 = vmul.f32 -1.442695, %v2225_v31 }
 0x6ff   :  { %4247 = vpow2.f32 %v3404_v51 }
 0x700   :  { %4249 = vpow2.f32 %v3403_v35  ;;  %v2112_v50 = vpop.f32.mrb[60].mxu1 }
 0x701   :  { %v2226_v18 = vadd.f32 %v2112_v50, %v6307_v11  ;;  %v5584_v25 = vpop.f32.mrb[76].mxu0  ;;  %v2114_v12 = vpop.f32.mrb[61].mxu1  ;;  %4251 = vpow2.f32 %v3405_v22 }
 0x702   :  { %v2227_v16 = vadd.f32 %v2114_v12, %v5307_v1  ;;  %v5587_v3 = vpop.f32.mrb[77].mxu0  ;;  %v2116_v19 = vpop.f32.mrb[62].mxu1 }
 0x703   :  { %v3406_v38 = vmul.f32 -1.442695, %v2226_v18  ;;  %v2228_v7 = vadd.f32 %v2116_v19, %v6307_v11  ;;  %v5590_v62 = vpop.f32.mrb[78].mxu0  ;;  %v2118_v46 = vpop.f32.mrb[63].mxu1 }
 0x704   :  { %v5592_v31 = vpop.f32.mrb[79].mxu0  ;;  %v3407_v35 = vmul.f32 -1.442695, %v2227_v16  ;;  %v2229_v50 = vadd.f32 %v2118_v46, %v5307_v1 }
 0x705   :  { %4253 = vpow2.f32 %v3406_v38  ;;  %v3408_v51 = vmul.f32 -1.442695, %v2228_v7 }
 0x706   :  { %v3409_v49 = vmul.f32 -1.442695, %v2229_v50 }
 0x707   :  { %v4246_v28 = vpop.eup %4245  ;;  %4255 = vpow2.f32 %v3408_v51 }
 0x708   :  { %v2286_v22 = vadd.f32 1.0, %v4246_v28  ;;  %v2122_v12 = vpop.f32.mrb[64].mxu1  ;;  %4257 = vpow2.f32 %v3407_v35 }
 0x709   :  { %v4248_v53 = vpop.eup %4247  ;;  %v2230_v18 = vadd.f32 %v2122_v12, %v6307_v11  ;;  %v2124_v19 = vpop.f32.mrb[65].mxu1 }
 0x70a   :  { %v4250_v32 = vpop.eup %4249  ;;  %4259 = vrcp.f32 %v2286_v22  ;;  %v2288_v29 = vadd.f32 1.0, %v4248_v53  ;;  %v2126_v10 = vpop.f32.mrb[66].mxu1  ;;  %v2231_v28 = vadd.f32 %v2124_v19, %v5307_v1 }
 0x70b   :  { %v3410_v63 = vmul.f32 -1.442695, %v2230_v18  ;;  %v2232_v16 = vadd.f32 %v2126_v10, %v6307_v11  ;;  %v2128_v7 = vpop.f32.mrb[67].mxu1  ;;  %v4252_v38 = vpop.eup %4251  ;;  %v2287_v46 = vadd.f32 1.0, %v4250_v32 }
 0x70c   :  { %4261 = vrcp.f32 %v2288_v29  ;;  %v2289_v50 = vadd.f32 1.0, %v4252_v38  ;;  %v2233_v12 = vadd.f32 %v2128_v7, %v5307_v1  ;;  %v3411_v18 = vmul.f32 -1.442695, %v2231_v28 }
 0x70d   :  { %4263 = vpow2.f32 %v3409_v49  ;;  %v3412_v51 = vmul.f32 -1.442695, %v2232_v16  ;;  %v2342_v29 = vadd.f32 %v5339_v2, %v5575_v24  ;;  %v2343_v28 = vadd.f32 %v5339_v2, %v5581_v34 }
 0x70e   :  { %4265 = vpow2.f32 %v3410_v63  ;;  %v3413_v19 = vmul.f32 -1.442695, %v2233_v12 }
 0x70f   :  { %v4254_v35 = vpop.eup %4253  ;;  %4267 = vpow2.f32 %v3412_v51 }
 0x710   :  { %v2290_v42 = vadd.f32 1.0, %v4254_v35  ;;  %v2132_v53 = vpop.f32.mrb[68].mxu1  ;;  %4269 = vrcp.f32 %v2287_v46  ;;  %v2334_v46 = vadd.f32 %v5345_v59, %v5557_v8 }
 0x711   :  { %v4256_v22 = vpop.eup %4255  ;;  %v2234_v10 = vadd.f32 %v2132_v53, %v6307_v11  ;;  %v2134_v20 = vpop.f32.mrb[69].mxu1 }
 0x712   :  { %4271 = vrcp.f32 %v2290_v42  ;;  %v2292_v32 = vadd.f32 1.0, %v4256_v22  ;;  %v2136_v49 = vpop.f32.mrb[70].mxu1  ;;  %v4258_v63 = vpop.eup %4257  ;;  %v2235_v42 = vadd.f32 %v2134_v20, %v5307_v1  ;;  %v2335_v22 = vadd.f32 %v5345_v59, %v5561_v27 }
 0x713   :  { %4273 = vrcp.f32 %v2289_v50  ;;  %v3414_v16 = vmul.f32 -1.442695, %v2234_v10  ;;  %v2236_v7 = vadd.f32 %v2136_v49, %v6307_v11  ;;  %v2138_v38 = vpop.f32.mrb[71].mxu1  ;;  %v2291_v50 = vadd.f32 1.0, %v4258_v63 }
 0x714   :  { %v4260_v51 = vpop.eup %4259  ;;  %4275 = vrcp.f32 %v2292_v32  ;;  %v2237_v34 = vadd.f32 %v2138_v38, %v5307_v1  ;;  %v3415_v32 = vmul.f32 -1.442695, %v2235_v42  ;;  %v2344_v63 = vadd.f32 %v5572_v13, %v5339_v2 }
 0x715   :  { %v2350_v35 = vmul.f32 %v4260_v51, %v2342_v29  ;;  %4277 = vpow2.f32 %v3411_v18  ;;  %v3416_v24 = vmul.f32 -1.442695, %v2236_v7  ;;  %v2336_v38 = vadd.f32 %v5555_v17, %v5345_v59 }
 0x716   :  { %v4262_v53 = vpop.eup %4261  ;;  %4279 = vpow2.f32 %v3414_v16  ;;  %v2337_v13 = vadd.f32 %v5559_v37, %v5345_v59 }
 0x717   :  { %v4264_v12 = vpop.eup %4263  ;;  %v2358_v10 = vadd.f32 %v2350_v35, %v2334_v46  ;;  %v2351_v49 = vmul.f32 %v4262_v53, %v2343_v28  ;;  %4281 = vpow2.f32 %v3413_v19  ;;  %v3417_v19 = vmul.f32 -1.442695, %v2237_v34 }
 0x718   :  { %v4266_v8 = vpop.eup %4265  ;;  %4283 = vpow2.f32 %v3416_v24  ;;  %v2293_v16 = vadd.f32 1.0, %v4264_v12  ;;  %v2345_v28 = vadd.f32 %v5578_v0, %v5339_v2 }
 0x719   :  { %4285 = vtanh.f32 %v2358_v10  ;;  %v2359_v29 = vadd.f32 %v2351_v49, %v2335_v22  ;;  %v2294_v18 = vadd.f32 1.0, %v4266_v8  ;;  %v4268_v20 = vpop.eup %4267 }
 0x71a   :  { %4287 = vrcp.f32 %v2291_v50  ;;  %v4270_v7 = vpop.eup %4269  ;;  %v2296_v27 = vadd.f32 1.0, %v4268_v20 }
 0x71b   :  { %4289 = vtanh.f32 %v2359_v29  ;;  %v2374_v8 = vsub.f32 1.0, %v4270_v7  ;;  %v2390_v37 = vmul.f32 %v4270_v7, %v5371_v6 }
 0x71c   :  { %v4272_v51 = vpop.eup %4271  ;;  %4291 = vrcp.f32 %v2294_v18 }
 0x71d   :  { %v4274_v46 = vpop.eup %4273  ;;  %v2352_v35 = vmul.f32 %v4272_v51, %v2344_v63  ;;  %4293 = vpow2.f32 %v3415_v32 }
 0x71e   :  { %v4276_v42 = vpop.eup %4275  ;;  %4295 = vrcp.f32 %v2296_v27  ;;  %v2375_v32 = vsub.f32 1.0, %v4274_v46 }
 0x71f   :  { %v4278_v24 = vpop.eup %4277  ;;  %v2360_v53 = vadd.f32 %v2352_v35, %v2336_v38  ;;  %v2353_v50 = vmul.f32 %v4276_v42, %v2345_v28  ;;  %4297 = vrcp.f32 %v2293_v16  ;;  %v2346_v16 = vadd.f32 %v5339_v2, %v5587_v3 }
 0x720   :  { %v4280_v12 = vpop.eup %4279  ;;  %4299 = vpow2.f32 %v3417_v19  ;;  %v2295_v34 = vadd.f32 1.0, %v4278_v24  ;;  %v2391_v38 = vmul.f32 %v4274_v46, %v5377_v4  ;;  %v2338_v42 = vadd.f32 %v5345_v59, %v5565_v30 }
 0x721   :  { %v4282_v22 = vpop.eup %4281  ;;  %4301 = vtanh.f32 %v2360_v53  ;;  %v2361_v10 = vadd.f32 %v2353_v50, %v2337_v13  ;;  %v2298_v17 = vadd.f32 1.0, %v4280_v12  ;;  %v2347_v24 = vadd.f32 %v5339_v2, %v5592_v31 }
 0x722   :  { %v4284_v49 = vpop.eup %4283  ;;  %v2297_v27 = vadd.f32 1.0, %v4282_v22  ;;  %v2339_v53 = vadd.f32 %v5345_v59, %v5569_v9  ;;  %v5642_v9 = vld [vmem:[%s6054_s15] ss:$0 sm:$0xff] }
 0x723   :  { %v4286_v0 = vpop.eup %4285  ;;  %4303 = vtanh.f32 %v2361_v10  ;;  %v2300_v29 = vadd.f32 1.0, %v4284_v49 }
 0x724   :  { %v4288_v18 = vpop.eup %4287  ;;  %4305 = vrcp.f32 %v2298_v17  ;;  %v2382_v20 = vmul.f32 %v4286_v0, %v2374_v8  ;;  %v2348_v8 = vadd.f32 %v5642_v9, %v5584_v25  ;;  %v2349_v25 = vadd.f32 %v5642_v9, %v5590_v62 }
 0x725   :  { %v4290_v63 = vpop.eup %4289  ;;  %4307 = vrcp.f32 %v2300_v29  ;;  %v2376_v30 = vsub.f32 1.0, %v4288_v18  ;;  %v2392_v49 = vmul.f32 %v4288_v18, %v5391_v52  ;;  %v5653_v52 = vld [vmem:[%s6053_s14] ss:$0 sm:$0xff] }
 0x726   :  { %v4292_v51 = vpop.eup %4291  ;;  %v2383_v19 = vmul.f32 %v4290_v63, %v2375_v32  ;;  %v5623_v28 = vadd.f32 %v2390_v37, %v2382_v20  ;;  %4309 = vrcp.f32 %v2295_v34  ;;  %v2340_v18 = vadd.f32 %v5653_v52, %v5563_v26 }
 0x727   :  { %v4294_v35 = vpop.eup %4293  ;;  %v2354_v6 = vmul.f32 %v4292_v51, %v2346_v16  ;;  %4311 = vrcp.f32 %v2297_v27 }
 0x728   :  { %v4296_v7 = vpop.eup %4295  ;;  %v5629_v13 = vadd.f32 %v2391_v38, %v2383_v19  ;;  %v2299_v31 = vadd.f32 1.0, %v4294_v35 }
 0x729   :  { %v4298_v3 = vpop.eup %4297  ;;  %v2362_v50 = vadd.f32 %v2354_v6, %v2338_v42  ;;  %v2355_v4 = vmul.f32 %v4296_v7, %v2347_v24 }
 0x72a   :  { %v4300_v46 = vpop.eup %4299  ;;  %v5635_v12 = vpack.c.bf16 %v5629_v13, %v5623_v28  ;;  %v2377_v10 = vsub.f32 1.0, %v4298_v3  ;;  %v2393_v32 = vmul.f32 %v4298_v3, %v5397_v60  ;;  %v2341_v60 = vadd.f32 %v5653_v52, %v5567_v43 }
 0x72b   :  { %v4302_v22 = vpop.eup %4301  ;;  %4313 = vtanh.f32 %v2362_v50  ;;  %v2363_v2 = vadd.f32 %v2355_v4, %v2339_v53  ;;  %v2301_v0 = vadd.f32 1.0, %v4300_v46 }
 0x72c   :  { %3900 = vmatprep.subr.bf16.mxu0 %v5635_v12  ;;  %v2384_v17 = vmul.f32 %v4302_v22, %v2376_v30 }
 0x72d   :  { %v4304_v59 = vpop.eup %4303  ;;  %4315 = vtanh.f32 %v2363_v2  ;;  %3901 = vmatpush3.bf16.msra.mxu0 %v5635_v12 }
 0x72e   :  { %v4306_v34 = vpop.eup %4305  ;;  %v2385_v29 = vmul.f32 %v4304_v59, %v2377_v10  ;;  %v5648_v20 = vadd.f32 %v2392_v49, %v2384_v17  ;;  %4317 = vrcp.f32 %v2299_v31 }
 0x72f   :  { %v2356_v37 = vmul.f32 %v4306_v34, %v2348_v8  ;;  %v4308_v63 = vpop.eup %4307  ;;  %4319 = vrcp.f32 %v2301_v0 }
 0x730   :  { %v5659_v16 = vadd.f32 %v2393_v32, %v2385_v29  ;;  %v4310_v27 = vpop.eup %4309  ;;  %v2357_v19 = vmul.f32 %v4308_v63, %v2349_v25  ;;  %v4409_v29 = vld [vmem:[%s6050_s11 + $0x1c] ss:$12 sps:$4 sm:$0xff]   ;;  %v4410_v32 = vld [vmem:[%s6050_s11 + $0x18] ss:$12 sps:$4 sm:$0xff]  }
 0x731   :  { %v2364_v51 = vadd.f32 %v2356_v37, %v2340_v18  ;;  %v4312_v26 = vpop.eup %4311  ;;  %v2378_v62 = vsub.f32 1.0, %v4310_v27  ;;  %v2394_v43 = vmul.f32 %v4310_v27, %v5409_v23  ;;  %v4413_v18 = vld [vmem:[%s6050_s11 + $0x4c] ss:$12 sps:$4 sm:$0xff]   ;;  %v4414_v25 = vld [vmem:[%s6050_s11 + $0x48] ss:$12 sps:$4 sm:$0xff]  }
 0x732   :  { %v5665_v38 = vpack.c.bf16 %v5659_v16, %v5648_v20  ;;  %v2365_v35 = vadd.f32 %v2357_v19, %v2341_v60  ;;  %v2379_v24 = vsub.f32 1.0, %v4312_v26  ;;  %v2395_v53 = vmul.f32 %v4312_v26, %v5411_v36  ;;  %v4417_v37 = vld [vmem:[%s6050_s11 + $0x7c] ss:$12 sps:$4 sm:$0xff]   ;;  %v4418_v63 = vld [vmem:[%s6050_s11 + $0x78] ss:$12 sps:$4 sm:$0xff]  }
 0x733   :  { %4321 = vtanh.f32 %v2364_v51  ;;  %v4421_v27 = vld [vmem:[%s6050_s11 + $0xac] ss:$12 sps:$4 sm:$0xff]   ;;  %v4422_v60 = vld [vmem:[%s6050_s11 + $0xa8] ss:$12 sps:$4 sm:$0xff]  }
 0x734   :  { %3902 = vmatprep.subr.bf16.mxu0 %v5665_v38  ;;  %4323 = vtanh.f32 %v2365_v35 }
 0x735   :  { %v4314_v42 = vpop.eup %4313  ;;  %3903 = vmatpush3.bf16.msra.mxu0 %v5665_v38 }
 0x736   :  { %v2386_v6 = vmul.f32 %v4314_v42, %v2378_v62 }
 0x737   :  { %v4316_v7 = vpop.eup %4315 }
 0x738   :  { %v2387_v3 = vmul.f32 %v4316_v7, %v2379_v24  ;;  %v5671_v50 = vadd.f32 %v2394_v43, %v2386_v6  ;;  %v4318_v4 = vpop.eup %4317 }
 0x739   :  { %v4320_v30 = vpop.eup %4319  ;;  %v2380_v2 = vsub.f32 1.0, %v4318_v4  ;;  %v2396_v17 = vmul.f32 %v4318_v4, %v5421_v45  ;;  %v4407_v45 = vld [vmem:[%s6050_s11 + $0x4] ss:$12 sps:$4 sm:$0xff]  }
 0x73a   :  { %v5673_v46 = vadd.f32 %v2395_v53, %v2387_v3  ;;  %v2381_v10 = vsub.f32 1.0, %v4320_v30  ;;  %v2397_v59 = vmul.f32 %v4320_v30, %v5423_v61  ;;  %v4408_v61 = vld [vmem:[%s6050_s11] ss:$12 sps:$4 sm:$0xff]  }
 0x73c   :  { %v5677_v22 = vpack.c.bf16 %v5673_v46, %v5671_v50 }
 0x73d   :  { %v4322_v31 = vpop.eup %4321 }
 0x73e   :  { %3904 = vmatprep.subr.bf16.mxu0 %v5677_v22  ;;  %v2388_v23 = vmul.f32 %v4322_v31, %v2380_v2  ;;  %v4324_v49 = vpop.eup %4323 }
 0x73f   :  { %3905 = vmatpush3.bf16.msra.mxu0 %v5677_v22  ;;  %v2389_v36 = vmul.f32 %v4324_v49, %v2381_v10  ;;  %v6308_v49 = vld [vmem:[#allocation21_spill] sm:$0xff] }
 0x740   :  { %v5683_v8 = vadd.f32 %v2396_v17, %v2388_v23 }
 0x741   :  { %v5685_v0 = vadd.f32 %v2397_v59, %v2389_v36  ;;  %v6309_v59 = vld [vmem:[#allocation22_spill] sm:$0xff] }
 0x743   :  { %v5689_v34 = vpack.c.bf16 %v5685_v0, %v5683_v8 }
 0x745   :  { %3906 = vmatprep.subr.bf16.mxu0 %v5689_v34 }
 0x746   :  { %3907 = vmatpush3.bf16.msra.mxu0 %v5689_v34 }
 0x747   :  { %2600 = vmatprep.subr.bf16.mxu0 %v4407_v45 }
 0x749   :  { %3909 = vmatmul.mubr.msk.bf16.vlgmr.msra.gmra.mrb[80].mxu0 %vm789_vm3, %v4808_v39  ;;  %v4411_v39 = vld [vmem:[%s6050_s11 + $0x34] ss:$12 sps:$4 sm:$0xff]  }
 0x74a   :  { %3912 = vmatprep.mubr.msk.bf16.mxu0 %vm789_vm3, %v4810_v40  ;;  %2601 = vmatpush1.bf16.msra.mxu0 %v4408_v61  ;;  %v4412_v40 = vld [vmem:[%s6050_s11 + $0x30] ss:$12 sps:$4 sm:$0xff]  }
 0x74b   :  { %2602 = vmatprep.subr.bf16.mxu0 %v4409_v29  ;;  %v6311_v29 = vld [vmem:[#allocation24_spill] sm:$0xff] }
 0x74e   :  { %2603 = vmatpush1.bf16.msra.mxu0 %v4410_v32 }
 0x74f   :  { %2604 = vmatprep.subr.bf16.mxu0 %v4411_v39 }
 0x751   :  { %3913 = vmatmul.mubr.msk.bf16.gmra.mrb[84].mxu0 %vm789_vm3, %v4824_v47  ;;  %v4415_v47 = vld [vmem:[%s6050_s11 + $0x64] ss:$12 sps:$4 sm:$0xff]  }
 0x752   :  { %3916 = vmatprep.mubr.msk.bf16.mxu0 %vm789_vm3, %v4826_v48  ;;  %2605 = vmatpush1.bf16.msra.mxu0 %v4412_v40  ;;  %v4416_v48 = vld [vmem:[%s6050_s11 + $0x60] ss:$12 sps:$4 sm:$0xff]  }
 0x753   :  { %2606 = vmatprep.subr.bf16.mxu0 %v4413_v18 }
 0x756   :  { %2607 = vmatpush1.bf16.msra.mxu0 %v4414_v25  ;;  %v6312_v25 = vld [vmem:[#allocation25_spill] sm:$0xff] }
 0x757   :  { %2608 = vmatprep.subr.bf16.mxu0 %v4415_v47 }
 0x759   :  { %3917 = vmatmul.mubr.msk.bf16.gmra.mrb[88].mxu0 %vm789_vm3, %v4840_v57  ;;  %v4419_v57 = vld [vmem:[%s6050_s11 + $0x94] ss:$12 sps:$4 sm:$0xff]  }
 0x75a   :  { %3920 = vmatprep.mubr.msk.bf16.mxu0 %vm789_vm3, %v4842_v58  ;;  %2609 = vmatpush1.bf16.msra.mxu0 %v4416_v48  ;;  %v4420_v58 = vld [vmem:[%s6050_s11 + $0x90] ss:$12 sps:$4 sm:$0xff]  }
 0x75b   :  { %2610 = vmatprep.subr.bf16.mxu0 %v4417_v37  ;;  %v6313_v48 = vld [vmem:[#allocation26_spill] sm:$0xff] }
 0x75e   :  { %2611 = vmatpush1.bf16.msra.mxu0 %v4418_v63 }
 0x75f   :  { %2612 = vmatprep.subr.bf16.mxu0 %v4419_v57  ;;  %v6314_v57 = vld [vmem:[#allocation27_spill] sm:$0xff] }
 0x761   :  { %3921 = vmatmul.mubr.msk.bf16.gmra.mrb[92].mxu0 %vm789_vm3, %v6249_v5  ;;  %v4423_v5 = vld [vmem:[%s6051_s12 + $0x4] ss:$12 sps:$4 sm:$0xff]  }
 0x762   :  { %2613 = vmatpush1.bf16.msra.mxu0 %v4420_v58  ;;  %2632 = vmatprep.mubr.bf16.mxu0 %v6227_v56 }
 0x763   :  { %2614 = vmatprep.subr.bf16.mxu0 %v4421_v27  ;;  %v6315_v27 = vld [vmem:[#allocation28_spill] sm:$0xff] }
 0x766   :  { %2615 = vmatpush1.bf16.msra.mxu0 %v4422_v60 }
 0x767   :  { %2738 = vmatprep.subr.bf16.mxu0 %v4423_v5 }
 0x81c   :  { %v3910_v51 = vpop.f32.mrb[80].mxu0 }
 0x81d   :  { %v2444_v19 = vpop.f32.mrb[81].mxu0  ;;  %v2509_v35 = vmul.f32 %v3910_v51, %v6254_v21 }
 0x81e   :  { %v3911_v26 = vpop.f32.mrb[82].mxu0  ;;  %v2507_v24 = vmul.f32 %v2444_v19, %v6256_v54  ;;  %v4424_v19 = vld [vmem:[%s6050_s11 + $0x8] ss:$12 sps:$4 sm:$0xff]  }
 0x81f   :  { %v2510_v62 = vmul.f32 %v3911_v26, %v6255_v33  ;;  %v2447_v42 = vpop.f32.mrb[83].mxu0  ;;  %v6316_v26 = vmov 1.0|1.0  }
 0x820   :  { %v2508_v6 = vmul.f32 %v2447_v42, %v6257_v44  ;;  %v4425_v42 = vld [vmem:[%s6050_s11 + $0x20] ss:$12 sps:$4 sm:$0xff]  }
 0x821   :  { %v2524_v43 = vpack.c.bf16 %v2510_v62, %v2509_v35 }
 0x822   :  { %v2523_v7 = vpack.c.bf16 %v2508_v6, %v2507_v24  ;;  %v4426_v24 = vld [vmem:[%s6050_s11 + $0x38] ss:$12 sps:$4 sm:$0xff]   ;;  %v4163_v6 = vld [vmem:[%s6055_s16 + $0x30] sm:$0xff]  }
 0x824   :  { %v3914_v3 = vpop.f32.mrb[84].mxu0  ;;  %3924 = vmatprep.subr.bf16.mxu1 %v2523_v7 }
 0x825   :  { %v2460_v53 = vpop.f32.mrb[85].mxu0  ;;  %3925 = vmatpush3.bf16.msra.mxu1 %v2523_v7  ;;  %v2513_v30 = vmul.f32 %v3914_v3, %v6258_v55  ;;  %v4428_v7 = vld [vmem:[%s6050_s11 + $0x68] ss:$12 sps:$4 sm:$0xff]   ;;  %v4429_v3 = vld [vmem:[%s6050_s11 + $0x80] ss:$12 sps:$4 sm:$0xff]  }
 0x826   :  { %v3915_v4 = vpop.f32.mrb[86].mxu0  ;;  %3926 = vmatprep.subr.bf16.mxu1 %v2524_v43  ;;  %v2511_v33 = vmul.f32 %v2460_v53, %v6260_v41  ;;  %v4430_v53 = vld [vmem:[%s6050_s11 + $0x98] ss:$12 sps:$4 sm:$0xff]  }
 0x827   :  { %v2514_v2 = vmul.f32 %v3915_v4, %v6259_v14  ;;  %v2463_v21 = vpop.f32.mrb[87].mxu0  ;;  %v6310_v14 = vld [vmem:[#allocation23_spill] sm:$0xff]  ;;  %v4431_v4 = vld [vmem:[%s6050_s11 + $0xb0] ss:$12 sps:$4 sm:$0xff]  }
 0x828   :  { %v2512_v31 = vmul.f32 %v2463_v21, %v6261_v15 }
 0x829   :  { %v2526_v54 = vpack.c.bf16 %v2514_v2, %v2513_v30  ;;  %3927 = vmatpush3.bf16.msra.mxu1 %v2524_v43  ;;  %v4427_v43 = vld [vmem:[%s6050_s11 + $0x50] ss:$12 sps:$4 sm:$0xff]   ;;  %v4432_v30 = vld [vmem:[%s6051_s12 + $0x8] ss:$12 sps:$4 sm:$0xff]  }
 0x82a   :  { %v2525_v44 = vpack.c.bf16 %v2512_v31, %v2511_v33 }
 0x82c   :  { %v3918_v10 = vpop.f32.mrb[88].mxu0  ;;  %3928 = vmatprep.subr.bf16.mxu1 %v2525_v44 }
 0x82d   :  { %v2476_v23 = vpop.f32.mrb[89].mxu0  ;;  %3929 = vmatpush3.bf16.msra.mxu1 %v2525_v44  ;;  %v2517_v36 = vmul.f32 %v3918_v10, %v6308_v49  ;;  %v4433_v10 = vld [vmem:[%s6051_s12] ss:$12 sps:$4 sm:$0xff]  }
 0x82e   :  { %v3919_v17 = vpop.f32.mrb[90].mxu0  ;;  %3930 = vmatprep.subr.bf16.mxu1 %v2526_v54  ;;  %v2515_v61 = vmul.f32 %v2476_v23, %v6310_v14  ;;  %v4436_v14 = vld [vmem:[%s6051_s12 + $0x18] ss:$12 sps:$4 sm:$0xff]  }
 0x82f   :  { %v2518_v55 = vmul.f32 %v3919_v17, %v6309_v59  ;;  %v2479_v45 = vpop.f32.mrb[91].mxu0  ;;  %v4434_v17 = vld [vmem:[%s6051_s12 + $0x1c] ss:$12 sps:$4 sm:$0xff]  }
 0x830   :  { %v2516_v41 = vmul.f32 %v2479_v45, %v6311_v29  ;;  %v4437_v29 = vld [vmem:[%s6051_s12 + $0x34] ss:$12 sps:$4 sm:$0xff]  }
 0x831   :  { %v2528_v32 = vpack.c.bf16 %v2518_v55, %v2517_v36  ;;  %3931 = vmatpush3.bf16.msra.mxu1 %v2526_v54  ;;  %v4435_v36 = vld [vmem:[%s6051_s12 + $0x20] ss:$12 sps:$4 sm:$0xff]  }
 0x832   :  { %v2527_v15 = vpack.c.bf16 %v2516_v41, %v2515_v61  ;;  %v4438_v41 = vld [vmem:[%s6051_s12 + $0x38] ss:$12 sps:$4 sm:$0xff]  }
 0x834   :  { %v3922_v39 = vpop.f32.mrb[92].mxu0  ;;  %3932 = vmatprep.subr.bf16.mxu1 %v2527_v15 }
 0x835   :  { %v2492_v40 = vpop.f32.mrb[93].mxu0  ;;  %3933 = vmatpush3.bf16.msra.mxu1 %v2527_v15  ;;  %v2521_v47 = vmul.f32 %v3922_v39, %v6312_v25  ;;  %v4440_v15 = vld [vmem:[%s6051_s12 + $0x4c] ss:$12 sps:$4 sm:$0xff]   ;;  %v4441_v39 = vld [vmem:[%s6051_s12 + $0x50] ss:$12 sps:$4 sm:$0xff]  }
 0x836   :  { %v3923_v18 = vpop.f32.mrb[94].mxu0  ;;  %3934 = vmatprep.subr.bf16.mxu1 %v2528_v32  ;;  %v2519_v58 = vmul.f32 %v2492_v40, %v6314_v57  ;;  %v4442_v40 = vld [vmem:[%s6051_s12 + $0x48] ss:$12 sps:$4 sm:$0xff]  }
 0x837   :  { %v2522_v37 = vmul.f32 %v3923_v18, %v6313_v48  ;;  %v2495_v63 = vpop.f32.mrb[95].mxu0  ;;  %v4443_v18 = vld [vmem:[%s6051_s12 + $0x64] ss:$12 sps:$4 sm:$0xff]   ;;  %v4444_v25 = vld [vmem:[%s6051_s12 + $0x68] ss:$12 sps:$4 sm:$0xff]  }
 0x838   :  { %v2520_v60 = vmul.f32 %v2495_v63, %v6315_v27  ;;  %v4446_v48 = vld [vmem:[%s6051_s12 + $0x7c] ss:$12 sps:$4 sm:$0xff]   ;;  %v4448_v63 = vld [vmem:[%s6051_s12 + $0x78] ss:$12 sps:$4 sm:$0xff]   ;;  %v4449_v57 = vld [vmem:[%s6051_s12 + $0x94] ss:$12 sps:$4 sm:$0xff]  }
 0x839   :  { %v2530_v5 = vpack.c.bf16 %v2522_v37, %v2521_v47  ;;  %3935 = vmatpush3.bf16.msra.mxu1 %v2528_v32  ;;  %v4439_v32 = vld [vmem:[%s6051_s12 + $0x30] ss:$12 sps:$4 sm:$0xff]   ;;  %v4445_v47 = vld [vmem:[%s6051_s12 + $0x60] ss:$12 sps:$4 sm:$0xff]  }
 0x83a   :  { %v2529_v51 = vpack.c.bf16 %v2520_v60, %v2519_v58  ;;  %v4447_v37 = vld [vmem:[%s6051_s12 + $0x80] ss:$12 sps:$4 sm:$0xff]   ;;  %v4450_v58 = vld [vmem:[%s6051_s12 + $0x98] ss:$12 sps:$4 sm:$0xff]   ;;  %v4451_v27 = vld [vmem:[%s6051_s12 + $0x90] ss:$12 sps:$4 sm:$0xff]  }
 0x83b   :  { %v4452_v60 = vld [vmem:[%s6051_s12 + $0xac] ss:$12 sps:$4 sm:$0xff]  }
 0x83c   :  { %3936 = vmatprep.subr.bf16.mxu1 %v2529_v51 }
 0x83d   :  { %3937 = vmatpush3.bf16.msra.mxu1 %v2529_v51  ;;  %v4454_v51 = vld [vmem:[%s6051_s12 + $0xa8] ss:$12 sps:$4 sm:$0xff]  }
 0x83e   :  { %3938 = vmatprep.subr.bf16.mxu1 %v2530_v5 }
 0x841   :  { %3939 = vmatpush3.bf16.msra.mxu1 %v2530_v5  ;;  %v4453_v5 = vld [vmem:[%s6051_s12 + $0xb0] ss:$12 sps:$4 sm:$0xff]  }
 0x842   :  { %3948 = vmatprep.subr.bf16.mxu1 %v4424_v19 }
 0x844   :  { %3941 = vmatmul.mubr.msk.bf16.vlgmr.msra.gmra.mrb[72].mxu1 %vm5024_vm10, %v6316_v26 }
 0x845   :  { %3944 = vmatprep.mubr.msk.bf16.mxu1 %vm5028_vm11, %v6316_v26  ;;  %3949 = vmatpush3.bf16.msra.mxu1 %v4424_v19  ;;  %v6320_v19 = vmov 0.0  }
 0x846   :  { %3950 = vmatprep.subr.bf16.mxu1 %v4425_v42 }
 0x849   :  { %3951 = vmatpush3.bf16.msra.mxu1 %v4425_v42  ;;  %v4162_v42 = vld [vmem:[%s6055_s16 + $0x28] sm:$0xff]  }
 0x84a   :  { %3952 = vmatprep.subr.bf16.mxu1 %v4426_v24 }
 0x84c   :  { %3945 = vmatmul.mubr.msk.bf16.gmra.mrb[76].mxu1 %vm5055_vm14, %v6316_v26 }
 0x84d   :  { %3953 = vmatpush3.bf16.msra.mxu1 %v4426_v24 }
 0x84e   :  { %3954 = vmatprep.subr.bf16.mxu1 %v4427_v43 }
 0x851   :  { %3955 = vmatpush3.bf16.msra.mxu1 %v4427_v43 }
 0x852   :  { %3956 = vmatprep.subr.bf16.mxu1 %v4428_v7 }
 0x855   :  { %3957 = vmatpush3.bf16.msra.mxu1 %v4428_v7 }
 0x856   :  { %3958 = vmatprep.subr.bf16.mxu1 %v4429_v3 }
 0x859   :  { %3959 = vmatpush3.bf16.msra.mxu1 %v4429_v3 }
 0x85a   :  { %3960 = vmatprep.subr.bf16.mxu1 %v4430_v53 }
 0x85d   :  { %3961 = vmatpush3.bf16.msra.mxu1 %v4430_v53 }
 0x85e   :  { %3962 = vmatprep.subr.bf16.mxu1 %v4431_v4 }
 0x861   :  { %3963 = vmatpush3.bf16.msra.mxu1 %v4431_v4 }
 0x862   :  { %3972 = vmatprep.subr.bf16.mxu1 %v4432_v30 }
 0x917   :  { %v3942_v2 = vpop.f32.mrb[72].mxu1 }
 0x918   :  { %v2565_v21 = vpop.f32.mrb[73].mxu1 }
 0x919   :  { %v3943_v33 = vpop.f32.mrb[74].mxu1 }
 0x91a   :  { %v2597_v31 = vpack.c.bf16 %v3943_v33, %v3942_v2  ;;  %v2568_v54 = vpop.f32.mrb[75].mxu1 }
 0x91b   :  { %v2596_v44 = vpack.c.bf16 %v2568_v54, %v2565_v21 }
 0x91d   :  { %2633 = vmatmul.mubr.bf16.vlgmr.msra.gmra.mrb[96].mxu0 %v2596_v44  ;;  %3964 = vmatprep.mubr.bf16.mxu1 %v2596_v44 }
 0x91e   :  { %3965 = vmatmul.mubr.bf16.vlgmr.msra.gmra.mrb[80].mxu1 %v2597_v31  ;;  %2739 = vmatpush1.bf16.msra.mxu0 %v4433_v10 }
 0x91f   :  { %3973 = vmatpush3.bf16.msra.mxu1 %v4432_v30  ;;  %v3946_v23 = vpop.f32.mrb[76].mxu1  ;;  %2740 = vmatprep.subr.bf16.mxu0 %v4434_v17 }
 0x920   :  { %v2581_v49 = vpop.f32.mrb[77].mxu1  ;;  %3974 = vmatprep.subr.bf16.mxu1 %v4435_v36  ;;  %2642 = vmatprep.mubr.bf16.mxu0 %v6227_v56 }
 0x921   :  { %v3947_v59 = vpop.f32.mrb[78].mxu1 }
 0x922   :  { %v2599_v55 = vpack.c.bf16 %v3947_v59, %v3946_v23  ;;  %v2584_v45 = vpop.f32.mrb[79].mxu1  ;;  %2741 = vmatpush1.bf16.msra.mxu0 %v4436_v14 }
 0x923   :  { %v2598_v61 = vpack.c.bf16 %v2584_v45, %v2581_v49  ;;  %3975 = vmatpush3.bf16.msra.mxu1 %v4435_v36  ;;  %2742 = vmatprep.subr.bf16.mxu0 %v4437_v29 }
 0x924   :  { %3976 = vmatprep.subr.bf16.mxu1 %v4438_v41 }
 0x925   :  { %2643 = vmatmul.mubr.bf16.gmra.mrb[100].mxu0 %v2597_v31  ;;  %3968 = vmatprep.mubr.bf16.mxu1 %v2598_v61 }
 0x926   :  { %3969 = vmatmul.mubr.bf16.gmra.mrb[84].mxu1 %v2599_v55  ;;  %2743 = vmatpush1.bf16.msra.mxu0 %v4439_v32 }
 0x927   :  { %3977 = vmatpush3.bf16.msra.mxu1 %v4438_v41  ;;  %3988 = vmatprep.mubr.bf16.mxu1 %v5635_v12 }
 0x928   :  { %2744 = vmatprep.subr.bf16.mxu0 %v4440_v15  ;;  %3978 = vmatprep.subr.bf16.mxu1 %v4441_v39 }
 0x929   :  { %2652 = vmatprep.mubr.bf16.mxu0 %v6227_v56 }
 0x92a   :  { %2745 = vmatpush1.bf16.msra.mxu0 %v4442_v40 }
 0x92b   :  { %3979 = vmatpush3.bf16.msra.mxu1 %v4441_v39  ;;  %2746 = vmatprep.subr.bf16.mxu0 %v4443_v18 }
 0x92c   :  { %3980 = vmatprep.subr.bf16.mxu1 %v4444_v25 }
 0x92d   :  { %2653 = vmatmul.mubr.bf16.gmra.mrb[104].mxu0 %v2598_v61 }
 0x92e   :  { %2747 = vmatpush1.bf16.msra.mxu0 %v4445_v47  ;;  %2662 = vmatprep.mubr.bf16.mxu0 %v6227_v56 }
 0x92f   :  { %3981 = vmatpush3.bf16.msra.mxu1 %v4444_v25  ;;  %2748 = vmatprep.subr.bf16.mxu0 %v4446_v48 }
 0x930   :  { %3982 = vmatprep.subr.bf16.mxu1 %v4447_v37 }
 0x932   :  { %2749 = vmatpush1.bf16.msra.mxu0 %v4448_v63 }
 0x933   :  { %3983 = vmatpush3.bf16.msra.mxu1 %v4447_v37  ;;  %2750 = vmatprep.subr.bf16.mxu0 %v4449_v57 }
 0x934   :  { %3984 = vmatprep.subr.bf16.mxu1 %v4450_v58 }
 0x935   :  { %2663 = vmatmul.mubr.bf16.gmra.mrb[108].mxu0 %v2599_v55 }
 0x936   :  { %2751 = vmatpush1.bf16.msra.mxu0 %v4451_v27  ;;  %2770 = vmatprep.mubr.bf16.mxu0 %v6227_v56 }
 0x937   :  { %3985 = vmatpush3.bf16.msra.mxu1 %v4450_v58  ;;  %2752 = vmatprep.subr.bf16.mxu0 %v4452_v60 }
 0x938   :  { %3986 = vmatprep.subr.bf16.mxu1 %v4453_v5 }
 0x93a   :  { %2753 = vmatpush1.bf16.msra.mxu0 %v4454_v51 }
 0x93b   :  { %3987 = vmatpush3.bf16.msra.mxu1 %v4453_v5  ;;  %4008 = vmatprep.subr.bf16.mxu0 %v6320_v19 }
 0x93c   :  { %3996 = vmatprep.subr.bf16.mxu1 %v6320_v19 }
 0x93d   :  { %2771 = vmatmul.mubr.bf16.vlgmr.msra.gmra.mrb[96].mxu0 %v5635_v12  ;;  %v4157_v12 = vld [vmem:[%s6055_s16] sm:$0xff]  }
 0x93e   :  { %3989 = vmatmul.mubr.bf16.vlgmr.msra.gmra.mrb[88].mxu1 %v5665_v38  ;;  %2780 = vmatprep.mubr.bf16.mxu0 %v6227_v56 }
 0x93f   :  { %3992 = vmatprep.mubr.bf16.mxu1 %v5677_v22  ;;  %4009 = vmatpush3.bf16.msra.mxu0 %v4157_v12 }
 0x940   :  { %4010 = vmatprep.subr.bf16.mxu0 %v6320_v19 }
 0x945   :  { %2781 = vmatmul.mubr.bf16.gmra.mrb[100].mxu0 %v5665_v38  ;;  %v4158_v38 = vld [vmem:[%s6055_s16 + $0x8] sm:$0xff]  }
 0x946   :  { %3993 = vmatmul.mubr.bf16.gmra.mrb[92].mxu1 %v5689_v34  ;;  %2790 = vmatprep.mubr.bf16.mxu0 %v6227_v56 }
 0x947   :  { %4004 = vmatprep.mubr.msk.bf16.mxu1 %vm4482_vm15, %v6320_v19  ;;  %4011 = vmatpush3.bf16.msra.mxu0 %v4158_v38 }
 0x948   :  { %4012 = vmatprep.subr.bf16.mxu0 %v6320_v19 }
 0x94d   :  { %2791 = vmatmul.mubr.bf16.gmra.mrb[104].mxu0 %v5677_v22  ;;  %v4160_v22 = vld [vmem:[%s6055_s16 + $0x18] sm:$0xff]  }
 0x94e   :  { %2800 = vmatprep.mubr.bf16.mxu0 %v6227_v56  ;;  %v4159_v56 = vld [vmem:[%s6055_s16 + $0x10] sm:$0xff]  }
 0x94f   :  { %4013 = vmatpush3.bf16.msra.mxu0 %v4159_v56 }
 0x950   :  { %4014 = vmatprep.subr.bf16.mxu0 %v6320_v19 }
 0x953   :  { %4015 = vmatpush3.bf16.msra.mxu0 %v4160_v22 }
 0x954   :  { %4016 = vmatprep.subr.bf16.mxu0 %v6320_v19 }
 0x955   :  { %2801 = vmatmul.mubr.bf16.gmra.mrb[108].mxu0 %v5689_v34  ;;  %v4161_v34 = vld [vmem:[%s6055_s16 + $0x20] sm:$0xff]  }
 0x956   :  { %4024 = vmatprep.mubr.msk.bf16.mxu0 %vm4482_vm15, %v6320_v19 }
 0x957   :  { %4017 = vmatpush3.bf16.msra.mxu0 %v4161_v34 }
 0x958   :  { %4018 = vmatprep.subr.bf16.mxu0 %v6320_v19 }
 0x95b   :  { %4019 = vmatpush3.bf16.msra.mxu0 %v4162_v42 }
 0x95c   :  { %4020 = vmatprep.subr.bf16.mxu0 %v6320_v19 }
 0x95f   :  { %4021 = vmatpush3.bf16.msra.mxu0 %v4163_v6 }
 0x960   :  { %4022 = vmatprep.subr.bf16.mxu0 %v6320_v19 }
 0x9f1   :  { %v5915_v26 = vpop.f32.mrb[80].mxu1 }
 0x9f2   :  { %v5917_v35 = vpop.f32.mrb[81].mxu1 }
 0x9f3   :  { %v5919_v62 = vpop.f32.mrb[82].mxu1 }
 0x9f4   :  { %v5924_v24 = vpop.f32.mrb[83].mxu1 }
 0x9f9   :  { %v5931_v43 = vpop.f32.mrb[84].mxu1 }
 0x9fa   :  { %v5933_v7 = vpop.f32.mrb[85].mxu1 }
 0x9fb   :  { %v5935_v3 = vpop.f32.mrb[86].mxu1 }
 0x9fc   :  { %v5937_v53 = vpop.f32.mrb[87].mxu1 }
 0xa10   :  { %v2772_v4 = vpop.f32.mrb[96].mxu0 }
 0xa11   :  { %v2892_v30 = vadd.f32 %v2772_v4, %v6307_v11  ;;  %v5941_v2 = vpop.f32.mrb[88].mxu1  ;;  %v2774_v21 = vpop.f32.mrb[97].mxu0 }
 0xa12   :  { %v2893_v33 = vadd.f32 %v2774_v21, %v5307_v1  ;;  %v5944_v31 = vpop.f32.mrb[89].mxu1  ;;  %v2776_v54 = vpop.f32.mrb[98].mxu0 }
 0xa13   :  { %v3434_v44 = vmul.f32 -1.442695, %v2892_v30  ;;  %v2894_v10 = vadd.f32 %v2776_v54, %v6307_v11  ;;  %v5947_v23 = vpop.f32.mrb[90].mxu1  ;;  %v2778_v17 = vpop.f32.mrb[99].mxu0 }
 0xa14   :  { %v3435_v49 = vmul.f32 -1.442695, %v2893_v33  ;;  %v2895_v36 = vadd.f32 %v2778_v17, %v5307_v1  ;;  %v5950_v59 = vpop.f32.mrb[91].mxu1 }
 0xa15   :  { %4325 = vpow2.f32 %v3434_v44  ;;  %v3436_v55 = vmul.f32 -1.442695, %v2894_v10 }
 0xa16   :  { %v3437_v45 = vmul.f32 -1.442695, %v2895_v36 }
 0xa17   :  { %4327 = vpow2.f32 %v3436_v55 }
 0xa18   :  { %4329 = vpow2.f32 %v3435_v49  ;;  %v2782_v14 = vpop.f32.mrb[100].mxu0 }
 0xa19   :  { %v2896_v61 = vadd.f32 %v2782_v14, %v6307_v11  ;;  %v5953_v29 = vpop.f32.mrb[92].mxu1  ;;  %v2784_v41 = vpop.f32.mrb[101].mxu0  ;;  %4331 = vpow2.f32 %v3437_v45 }
 0xa1a   :  { %v2897_v32 = vadd.f32 %v2784_v41, %v5307_v1  ;;  %v5956_v15 = vpop.f32.mrb[93].mxu1  ;;  %v2786_v39 = vpop.f32.mrb[102].mxu0  ;;  %v3012_v41 = vadd.f32 %v5642_v9, %v5944_v31 }
 0xa1b   :  { %v3438_v40 = vmul.f32 -1.442695, %v2896_v61  ;;  %v2898_v18 = vadd.f32 %v2786_v39, %v6307_v11  ;;  %v5959_v25 = vpop.f32.mrb[94].mxu1  ;;  %v2788_v47 = vpop.f32.mrb[103].mxu0 }
 0xa1c   :  { %v5961_v48 = vpop.f32.mrb[95].mxu1  ;;  %v3439_v37 = vmul.f32 -1.442695, %v2897_v32  ;;  %v2899_v57 = vadd.f32 %v2788_v47, %v5307_v1 }
 0xa1d   :  { %4333 = vpow2.f32 %v3438_v40  ;;  %v3440_v63 = vmul.f32 -1.442695, %v2898_v18 }
 0xa1e   :  { %v3441_v51 = vmul.f32 -1.442695, %v2899_v57 }
 0xa1f   :  { %v4326_v58 = vpop.eup %4325  ;;  %4335 = vpow2.f32 %v3440_v63 }
 0xa20   :  { %v2956_v27 = vadd.f32 1.0, %v4326_v58  ;;  %v2792_v60 = vpop.f32.mrb[104].mxu0  ;;  %4337 = vpow2.f32 %v3439_v37  ;;  %v3004_v58 = vadd.f32 %v5653_v52, %v5917_v35 }
 0xa21   :  { %v4328_v5 = vpop.eup %4327  ;;  %v2900_v12 = vadd.f32 %v2792_v60, %v6307_v11  ;;  %v2794_v38 = vpop.f32.mrb[105].mxu0 }
 0xa22   :  { %v4330_v56 = vpop.eup %4329  ;;  %4339 = vrcp.f32 %v2956_v27  ;;  %v2958_v22 = vadd.f32 1.0, %v4328_v5  ;;  %v2796_v34 = vpop.f32.mrb[106].mxu0  ;;  %v2901_v33 = vadd.f32 %v2794_v38, %v5307_v1  ;;  %v3013_v27 = vadd.f32 %v5642_v9, %v5950_v59 }
 0xa23   :  { %v3442_v42 = vmul.f32 -1.442695, %v2900_v12  ;;  %v2902_v6 = vadd.f32 %v2796_v34, %v6307_v11  ;;  %v2798_v4 = vpop.f32.mrb[107].mxu0  ;;  %v4332_v30 = vpop.eup %4331  ;;  %v2957_v21 = vadd.f32 1.0, %v4330_v56 }
 0xa24   :  { %4341 = vrcp.f32 %v2958_v22  ;;  %v2959_v10 = vadd.f32 1.0, %v4332_v30  ;;  %v2903_v17 = vadd.f32 %v2798_v4, %v5307_v1  ;;  %v3443_v45 = vmul.f32 -1.442695, %v2901_v33 }
 0xa25   :  { %4343 = vpow2.f32 %v3441_v51  ;;  %v3444_v54 = vmul.f32 -1.442695, %v2902_v6 }
 0xa26   :  { %4345 = vpow2.f32 %v3442_v42  ;;  %v3445_v18 = vmul.f32 -1.442695, %v2903_v17  ;;  %v3015_v17 = vadd.f32 %v5642_v9, %v5947_v23 }
 0xa27   :  { %v4334_v44 = vpop.eup %4333  ;;  %4347 = vpow2.f32 %v3444_v54 }
 0xa28   :  { %v2960_v49 = vadd.f32 1.0, %v4334_v44  ;;  %v2802_v36 = vpop.f32.mrb[108].mxu0  ;;  %4349 = vrcp.f32 %v2957_v21  ;;  %v3014_v21 = vadd.f32 %v5642_v9, %v5941_v2  ;;  %v3007_v2 = vadd.f32 %v5653_v52, %v5919_v62 }
 0xa29   :  { %v4336_v55 = vpop.eup %4335  ;;  %v2904_v14 = vadd.f32 %v2802_v36, %v6307_v11  ;;  %v2804_v61 = vpop.f32.mrb[109].mxu0 }
 0xa2a   :  { %4351 = vrcp.f32 %v2960_v49  ;;  %v2962_v32 = vadd.f32 1.0, %v4336_v55  ;;  %v2806_v39 = vpop.f32.mrb[110].mxu0  ;;  %v4338_v40 = vpop.eup %4337  ;;  %v2905_v31 = vadd.f32 %v2804_v61, %v5307_v1 }
 0xa2b   :  { %4353 = vrcp.f32 %v2959_v10  ;;  %v3446_v47 = vmul.f32 -1.442695, %v2904_v14  ;;  %v2906_v37 = vadd.f32 %v2806_v39, %v6307_v11  ;;  %v2808_v63 = vpop.f32.mrb[111].mxu0  ;;  %v2961_v12 = vadd.f32 1.0, %v4338_v40 }
 0xa2c   :  { %v4340_v57 = vpop.eup %4339  ;;  %4355 = vrcp.f32 %v2962_v32  ;;  %v3005_v11 = vadd.f32 %v5653_v52, %v5924_v24  ;;  %v2907_v59 = vadd.f32 %v2808_v63, %v5307_v1  ;;  %v3447_v6 = vmul.f32 -1.442695, %v2905_v31 }
 0xa2d   :  { %v3020_v60 = vmul.f32 %v4340_v57, %v3012_v41  ;;  %4357 = vpow2.f32 %v3443_v45  ;;  %v3448_v5 = vmul.f32 -1.442695, %v2906_v37  ;;  %v3006_v1 = vadd.f32 %v5653_v52, %v5915_v26 }
 0xa2e   :  { %v4342_v51 = vpop.eup %4341  ;;  %4359 = vpow2.f32 %v3446_v47  ;;  %v3449_v44 = vmul.f32 -1.442695, %v2907_v59 }
 0xa2f   :  { %v4344_v38 = vpop.eup %4343  ;;  %v3028_v56 = vadd.f32 %v3020_v60, %v3004_v58  ;;  %v3021_v22 = vmul.f32 %v4342_v51, %v3013_v27  ;;  %4361 = vpow2.f32 %v3445_v18  ;;  %v3016_v27 = vadd.f32 %v5642_v9, %v5956_v15 }
 0xa30   :  { %v4346_v35 = vpop.eup %4345  ;;  %4363 = vpow2.f32 %v3448_v5  ;;  %v2963_v33 = vadd.f32 1.0, %v4344_v38  ;;  %v3009_v15 = vadd.f32 %v5653_v52, %v5937_v53 }
 0xa31   :  { %4365 = vtanh.f32 %v3028_v56  ;;  %v3029_v34 = vadd.f32 %v3021_v22, %v3005_v11  ;;  %v2964_v42 = vadd.f32 1.0, %v4346_v35  ;;  %v4348_v4 = vpop.eup %4347  ;;  %v3008_v11 = vadd.f32 %v5653_v52, %v5933_v7 }
 0xa32   :  { %4367 = vrcp.f32 %v2961_v12  ;;  %v4350_v30 = vpop.eup %4349  ;;  %v2966_v24 = vadd.f32 1.0, %v4348_v4  ;;  %v3017_v56 = vadd.f32 %v5642_v9, %v5961_v48 }
 0xa33   :  { %4369 = vtanh.f32 %v3029_v34  ;;  %v3044_v40 = vsub.f32 1.0, %v4350_v30  ;;  %v3060_v62 = vmul.f32 %v4350_v30, %v5623_v28 }
 0xa34   :  { %v4352_v54 = vpop.eup %4351  ;;  %4371 = vrcp.f32 %v2964_v42 }
 0xa35   :  { %v4354_v10 = vpop.eup %4353  ;;  %v3022_v49 = vmul.f32 %v4352_v54, %v3014_v21  ;;  %4373 = vpow2.f32 %v3447_v6 }
 0xa36   :  { %v4356_v36 = vpop.eup %4355  ;;  %4375 = vrcp.f32 %v2966_v24  ;;  %v3045_v63 = vsub.f32 1.0, %v4354_v10  ;;  %v3061_v51 = vmul.f32 %v4354_v10, %v5629_v13 }
 0xa37   :  { %v4358_v55 = vpop.eup %4357  ;;  %v3030_v45 = vadd.f32 %v3022_v49, %v3006_v1  ;;  %v3023_v14 = vmul.f32 %v4356_v36, %v3015_v17  ;;  %4377 = vrcp.f32 %v2963_v33  ;;  %v3010_v36 = vadd.f32 %v5653_v52, %v5931_v43 }
 0xa38   :  { %v4360_v61 = vpop.eup %4359  ;;  %4379 = vpow2.f32 %v3449_v44  ;;  %v2965_v18 = vadd.f32 1.0, %v4358_v55  ;;  %v3018_v44 = vadd.f32 %v5642_v9, %v5953_v29  ;;  %v3019_v55 = vadd.f32 %v5642_v9, %v5959_v25 }
 0xa39   :  { %v4362_v41 = vpop.eup %4361  ;;  %4381 = vtanh.f32 %v3030_v45  ;;  %v3031_v32 = vadd.f32 %v3023_v14, %v3007_v2  ;;  %v2968_v26 = vadd.f32 1.0, %v4360_v61  ;;  %v3011_v14 = vadd.f32 %v5653_v52, %v5935_v3 }
 0xa3a   :  { %v4364_v39 = vpop.eup %4363  ;;  %v2967_v60 = vadd.f32 1.0, %v4362_v41 }
 0xa3b   :  { %v4366_v23 = vpop.eup %4365  ;;  %4383 = vtanh.f32 %v3031_v32  ;;  %v2970_v47 = vadd.f32 1.0, %v4364_v39 }
 0xa3c   :  { %v4368_v37 = vpop.eup %4367  ;;  %4385 = vrcp.f32 %v2968_v26  ;;  %v3052_v57 = vmul.f32 %v4366_v23, %v3044_v40 }
 0xa3d   :  { %v4370_v58 = vpop.eup %4369  ;;  %4387 = vrcp.f32 %v2970_v47  ;;  %v3046_v4 = vsub.f32 1.0, %v4368_v37  ;;  %v3062_v24 = vmul.f32 %v4368_v37, %v5648_v20 }
 0xa3e   :  { %v4372_v31 = vpop.eup %4371  ;;  %v3053_v5 = vmul.f32 %v4370_v58, %v3045_v63  ;;  %v3068_v12 = vadd.f32 %v3060_v62, %v3052_v57  ;;  %4389 = vrcp.f32 %v2965_v18  ;;  %v3277_v58 = vld [vmem:[%s6043_s4] ss:$0 sm:$0xff] }
 0xa3f   :  { %v4374_v38 = vpop.eup %4373  ;;  %v3024_v22 = vmul.f32 %v4372_v31, %v3016_v27  ;;  %4391 = vrcp.f32 %v2967_v60 }
 0xa40   :  { %v4376_v28 = vpop.eup %4375  ;;  %v3069_v35 = vadd.f32 %v3061_v51, %v3053_v5  ;;  %v2969_v21 = vadd.f32 1.0, %v4374_v38 }
 0xa41   :  { %v4378_v59 = vpop.eup %4377  ;;  %v3032_v34 = vadd.f32 %v3024_v22, %v3008_v11  ;;  %v3025_v42 = vmul.f32 %v4376_v28, %v3017_v56 }
 0xa42   :  { %v4380_v13 = vpop.eup %4379  ;;  %v3076_v6 = vpack.c.bf16 %v3069_v35, %v3068_v12  ;;  %v3047_v48 = vsub.f32 1.0, %v4378_v59  ;;  %v3063_v17 = vmul.f32 %v4378_v59, %v5659_v16 }
 0xa43   :  { %v4382_v30 = vpop.eup %4381  ;;  %4393 = vtanh.f32 %v3032_v34  ;;  %v3033_v7 = vadd.f32 %v3025_v42, %v3009_v15  ;;  %v2971_v53 = vadd.f32 1.0, %v4380_v13 }
 0xa44   :  { %3997 = vmatpush3.bf16.msra.mxu1 %v3076_v6  ;;  %v3054_v33 = vmul.f32 %v4382_v30, %v3046_v4 }
 0xa45   :  { %v4384_v54 = vpop.eup %4383  ;;  %4395 = vtanh.f32 %v3033_v7  ;;  %3998 = vmatprep.subr.bf16.mxu1 %v6320_v19 }
 0xa46   :  { %v4386_v10 = vpop.eup %4385  ;;  %v3055_v1 = vmul.f32 %v4384_v54, %v3047_v48  ;;  %v3070_v49 = vadd.f32 %v3062_v24, %v3054_v33  ;;  %4397 = vrcp.f32 %v2969_v21 }
 0xa47   :  { %v3026_v20 = vmul.f32 %v4386_v10, %v3018_v44  ;;  %v4388_v2 = vpop.eup %4387  ;;  %4399 = vrcp.f32 %v2971_v53 }
 0xa48   :  { %v3071_v45 = vadd.f32 %v3063_v17, %v3055_v1  ;;  %v4390_v29 = vpop.eup %4389  ;;  %v3027_v41 = vmul.f32 %v4388_v2, %v3019_v55 }
 0xa49   :  { %v3034_v61 = vadd.f32 %v3026_v20, %v3010_v36  ;;  %v4392_v16 = vpop.eup %4391  ;;  %v3048_v43 = vsub.f32 1.0, %v4390_v29  ;;  %v3064_v40 = vmul.f32 %v4390_v29, %v5671_v50 }
 0xa4a   :  { %v3077_v32 = vpack.c.bf16 %v3071_v45, %v3070_v49  ;;  %v3035_v26 = vadd.f32 %v3027_v41, %v3011_v14  ;;  %v3049_v9 = vsub.f32 1.0, %v4392_v16  ;;  %v3065_v52 = vmul.f32 %v4392_v16, %v5673_v46  ;;  %v6321_v46 = vld [vmem:[#allocation7_spill] sm:$0xff] }
 0xa4b   :  { %4401 = vtanh.f32 %v3034_v61  ;;  %vm230_vm0 = vcmp.eq.s32.totalorder %v6321_v46, %v3277_v58 }
 0xa4c   :  { %3999 = vmatpush3.bf16.msra.mxu1 %v3077_v32  ;;  %4403 = vtanh.f32 %v3035_v26  ;;  %v3278_v56 = vsel %vm230_vm0, 1.0, %v6320_v19 }
 0xa4d   :  { %v4394_v39 = vpop.eup %4393  ;;  %4000 = vmatprep.subr.bf16.mxu1 %v6320_v19  ;;  %v233_v28 = vpack.c.bf16 %v3278_v56, %v3278_v56  ;;  %v235_v35 = vsel %vm234_vm1, %v3278_v56, 0.0 }
 0xa4e   :  { %v3056_v25 = vmul.f32 %v4394_v39, %v3048_v43  ;;  %236 = vadd.xlane.f32.xlu0 %v235_v35 }
 0xa4f   :  { %v4396_v23 = vpop.eup %4395 }
 0xa50   :  { %v3057_v18 = vmul.f32 %v4396_v23, %v3049_v9  ;;  %v3072_v3 = vadd.f32 %v3064_v40, %v3056_v25  ;;  %v4398_v47 = vpop.eup %4397 }
 0xa51   :  { %v4400_v63 = vpop.eup %4399  ;;  %v3050_v62 = vsub.f32 1.0, %v4398_v47  ;;  %v3066_v50 = vmul.f32 %v4398_v47, %v5683_v8  ;;  %v4164_v8 = vld [vmem:[%s6055_s16 + $0x38] sm:$0xff]   ;;  %s4455_s16 = scalar_lea.vmem %s3245_s30, 64 }
 0xa52   :  { %v3073_v37 = vadd.f32 %v3065_v52, %v3057_v18  ;;  %v3051_v60 = vsub.f32 1.0, %v4400_v63  ;;  %v3067_v12 = vmul.f32 %v4400_v63, %v5685_v0  ;;  %4023 = vmatpush3.bf16.msra.mxu0 %v4164_v8  ;;  %p4456_p0 = scmp.ne.s32.totalorder %s3245_s30, %s4455_s16  ;;  %p4461_p2 = scmp.lt.s32.totalorder %s4455_s16, %s4455_s16 }
 0xa54   :  { %v3078_v57 = vpack.c.bf16 %v3073_v37, %v3072_v3  ;;  %p4462_p3 = por %p4461_p2, %p4460_p1 }
 0xa55   :  { %v4402_v27 = vpop.eup %4401 }
 0xa56   :  { %4001 = vmatpush3.bf16.msra.mxu1 %v3078_v57  ;;  %v3058_v31 = vmul.f32 %v4402_v27, %v3050_v62  ;;  %v4404_v5 = vpop.eup %4403  ;;  %p4463_p4 = pnand %p4462_p3, %p4456_p0 }
 0xa57   :  { %4002 = vmatprep.subr.bf16.mxu1 %v6320_v19  ;;  %v3059_v51 = vmul.f32 %v4404_v5, %v3051_v60  ;;  %v3451_v19 = vld [vmem:[%s6056_s17] ss:$0 sm:$0xff] }
 0xa58   :  { %v3074_v38 = vadd.f32 %v3066_v50, %v3058_v31 }
 0xa59   :  { %v3075_v11 = vadd.f32 %v3067_v12, %v3059_v51 }
 0xa5b   :  { %v3079_v22 = vpack.c.bf16 %v3075_v11, %v3074_v38 }
 0xa5d   :  { %4003 = vmatpush3.bf16.msra.mxu1 %v3079_v22 }
 0xa60   :  { %4005 = vmatmul.mubr.msk.bf16.vlgmr.msra.gmra.mrb[96].mxu1 %vm789_vm3, %v233_v28  ;;  %vm3236_vm3 = vcmask 257024  }
 0xadb   :  { %v237_v13 = vpop.xlane.xlu0 %236 }
 0xadc   :  { %v3147_v6 = vmul.f32 %v3451_v19, %v237_v13 }
 0xb33   :  { %v3117_v59 = vpop.f32.mrb[96].mxu1 }
 0xb34   :  { %v3123_v15 = vpack.c.bf16 %v3117_v59, %v3117_v59  ;;  %v4006_v0 = vpop.f32.mrb[97].mxu1 }
 0xb35   :  { %v3120_v34 = vpop.f32.mrb[98].mxu1 }
 0xb36   :  { %v4007_v42 = vpop.f32.mrb[99].mxu1  ;;  %4025 = vmatmul.mubr.bf16.vlgmr.msra.gmra.mrb[112].mxu0 %v3123_v15 }
 0xc09   :  { %v3230_v4 = vpop.f32.mrb[112].mxu0 }
 0xc0a   :  { %v3231_v30 = vadd.f32 %v3230_v4, %v3147_v6  ;;  %v4026_v7 = vpop.f32.mrb[113].mxu0 }
 0xc0b   :  { %v3233_v21 = vpop.f32.mrb[114].mxu0 }
 0xc0c   :  { %v4027_v48 = vpop.f32.mrb[115].mxu0  ;;  %3237 = vst.msk [vmem:[#allocation2] sm:$0xf] %vm3236_vm3, %v3231_v30 }
 0xc0d   :  { %4466 = shalt.err (!%p4463_p4)
}
 0xc0e   :  { %s4467_s0 = scalar_lea.hbm %s6057_s18, 64 }
 0xc0f   :  { %p4468_p5 = scmp.ne.s32.totalorder %s6057_s18, %s4467_s0  ;;  %p4471_p6 = scmp.lt.u32.totalorder %s4467_s0, %s6057_s18 }
 0xc11   :  { %p4473_p7 = pnand %p4471_p6, %p4468_p5 }
 0xc13   :  { %4476 = shalt.err (!%p4473_p7)
}
 0xc14   :  { %3247 = dma.vmem_to_hbm [thread:$0]  %s3245_s30, 64, %s6057_s18, [#allocation3]  }
 0xc15   :  { %4477 = dma.done.wait [#allocation3], 64  }
 0xc16   :  { %4478 = vsyncadd [#allocation3], 4294967232 }
 0xc17   :  { %3251 = vsyncpa [#allocation3], 1 }

</bundles_post_ra>
